<compile_context>
chip_gen: v7x
topology: tpu7x:2x2x1
jax: 0.10.0
libtpu: 0.0.40
codegen_flags: <defaults>
</compile_context>

<pallas_src>
import functools

import jax
import jax.numpy as jnp
import numpy as np
from jax import lax
from jax.experimental import pallas as pl
from jax.experimental.pallas import tpu as pltpu

_L = 512            # feature width (torch: self.L)
_D = 128            # attention hidden width (torch: self.D)
_NEG_LARGE = -1e30  # finite "-inf": fully-masked tiles never hit exp(-inf - -inf) = NaN
_NUM_SPLITS = 2     # leading "parallel" grid axis; maps onto v7x's 2 TensorCores


def _dattention_kernel(n_ref,                                     # scalar prefetch (SMEM)
                       x_ref, w_feat_ref, b_feat_ref,
                       w_a1_ref, b_a1_ref, w_a2_ref, b_a2_ref,    # inputs  (VMEM)
                       attn_ref, pmax_ref, psum_ref, pacc_ref,    # outputs (VMEM)
                       max_sc, sum_sc, acc_sc,                    # scratch (VMEM)
                       *, tile_n, tiles_per_split):
    c = pl.program_id(0)          # split (TensorCore) index
    i = pl.program_id(1)          # tile index within the split (reduction axis)
    n_valid = n_ref[0]

    @pl.when(i == 0)
    def _init():
        max_sc[...] = jnp.full_like(max_sc, _NEG_LARGE)
        sum_sc[...] = jnp.zeros_like(sum_sc)
        acc_sc[...] = jnp.zeros_like(acc_sc)

    # Logical rows this grid step is responsible for (independent of the clamped x block
    # index used by the BlockSpec for "phantom" tiles past the end of the bag).
    row0 = (c * tiles_per_split + i) * tile_n
    row_valid = (row0 + lax.broadcasted_iota(jnp.int32, (tile_n, 1), 0)) < n_valid
    col_valid = (row0 + lax.broadcasted_iota(jnp.int32, (1, tile_n), 1)) < n_valid

    # feature = Dropout(ReLU(x @ W_feat + b_feat)); Dropout is identity in eval mode.
    # x is cast to bf16 in-register (no host pre-pass).  Bias + ReLU + row mask run in bf16.
    # Rows >= n_valid are zeroed so garbage/NaN padding can never reach the pooling matmul
    # (0 * NaN would otherwise poison the accumulator).
    x = x_ref[...].astype(jnp.bfloat16)
    feat = jnp.dot(x, w_feat_ref[...], preferred_element_type=jnp.float32)
    feat_bf = jnp.maximum(feat.astype(jnp.bfloat16) + b_feat_ref[...], 0)
    feat_bf = jnp.where(row_valid, feat_bf, 0)                         # (tile_n, L) bf16

    # attention MLP: tanh(feat @ W_a1 + b_a1) . w_a2 + b_a2, emitted lane-dense as (1, tile_n).
    # The dot_general contracts the minor dim of both operands (Q.K^T pattern) -> no XLU
    # transpose of the (tile_n, 128) tile is materialized.
    h = jnp.dot(feat_bf, w_a1_ref[...], preferred_element_type=jnp.float32)
    h = jnp.tanh(h + b_a1_ref[...])                                    # (tile_n, D) f32 (EUP)
    s = lax.dot_general(w_a2_ref[...], h.astype(jnp.bfloat16),
                        dimension_numbers=(((1,), (1,)), ((), ())),
                        preferred_element_type=jnp.float32) + b_a2_ref[...]   # (1, tile_n)
    attn_ref[0] = s        # raw A_ori, lane-dense store (entries >= n_valid are garbage)

    # Online (flash-style) softmax over the instances handled by this split.
    s_m = jnp.where(col_valid, s, _NEG_LARGE)
    tile_max = jnp.max(s_m, axis=-1, keepdims=True)                    # (1, 1)
    new_max = jnp.maximum(max_sc[...], tile_max)
    corr = jnp.exp(max_sc[...] - new_max)
    e = jnp.where(col_valid, jnp.exp(s_m - new_max), 0.0)              # (1, tile_n) f32

    sum_sc[...] = corr * sum_sc[...] + jnp.sum(e, axis=-1, keepdims=True)
    acc_sc[...] = corr * acc_sc[...] + jnp.dot(e.astype(jnp.bfloat16), feat_bf,
                                               preferred_element_type=jnp.float32)
    max_sc[...] = new_max

    # Emit this split's partial (max, sum, acc); the 2-way flash combine + classifier are a
    # handful of f32 FLOPs and run in the wrapper.
    @pl.when(i == pl.num_programs(1) - 1)
    def _finalize():
        pmax_ref[0] = max_sc[...]
        psum_ref[0] = sum_sc[...]
        pacc_ref[0] = acc_sc[...]


def _round_up(x, m):
    return (x + m - 1) // m * m


def _vmem_budget_bytes():
    """Generation-aware VMEM ceiling (v5e/v6e: 128 MiB physical, v7x: 64 MiB)."""
    try:
        cap = int(pltpu.get_tpu_info().vmem_capacity_bytes)
    except Exception:
        cap = 64 << 20                      # conservative (v7x-sized) fallback
    return int(min(cap * 3 // 4, 100 << 20))


def _pick_tile_n(n_rows, in_dim, vmem_budget):
    # Per-row VMEM footprint: x f32 double-buffered + in-kernel bf16 copy, f32 matmul result
    # + bf16 feat, f32 h.  Keep ~40% of the budget as headroom for resident weights, outputs
    # and compiler temporaries.
    per_row = in_dim * (2 * 4 + 2) + _L * (4 + 2) + _D * 4
    tile = (int(vmem_budget * 0.6) // per_row) // 256 * 256
    tile = max(256, min(8192, tile))
    return min(tile, _round_up(max(n_rows, 1), 256))    # never wider than the bag


@functools.partial(jax.jit, static_argnames=("tile_n",))
def dattention_forward(x1, params, n_valid=None, tile_n=None):
    """DAttention forward (eval mode).

    x1: (1, N_pad, input_dim) float32 or bfloat16.  `n_valid` (<= N_pad, dynamic) marks how
    many leading rows are real instances; rows beyond it may hold arbitrary padding, so
    callers can bucket N_pad upstream and avoid a Mosaic recompile per bag size.
    Returns (logits, Y_hat, Y_prob, results_dict).  results_dict['patch_attn'] has shape
    (N_pad, 1); only its first n_valid rows are meaningful.
    """
    x = jnp.squeeze(x1, axis=0)                       # (N_pad, input_dim)
    n_rows, in_dim = x.shape
    n_classes = params["w_cls"].shape[1]
    if n_valid is None:
        n_valid = n_rows
    n_arr = jnp.asarray(n_valid, jnp.int32).reshape((1,))

    vmem_budget = _vmem_budget_bytes()
    if tile_n is None:
        tile_n = _pick_tile_n(n_rows, in_dim, vmem_budget)
    num_real_tiles = (n_rows + tile_n - 1) // tile_n
    tiles_per_split = (num_real_tiles + _NUM_SPLITS - 1) // _NUM_SPLITS
    t_pad = _NUM_SPLITS * tiles_per_split
    last_blk = num_real_tiles - 1

    # Small, resident MXU operands in bf16 (biases feeding f32 adds stay f32).
    w_feat = params["w_feat"].astype(jnp.bfloat16)
    b_feat = params["b_feat"].astype(jnp.bfloat16)
    w_a1 = params["w_a1"].astype(jnp.bfloat16)
    w_a2_row = params["w_a2"].reshape(1, _D).astype(jnp.bfloat16)

    kernel = functools.partial(_dattention_kernel, tile_n=tile_n,
                               tiles_per_split=tiles_per_split)

    # x tiles: clamp the block index so phantom tiles past the end of the bag re-read the
    # last real block; the kernel masks them out via n_valid, so they contribute nothing.
    x_spec = pl.BlockSpec(
        (tile_n, in_dim),
        lambda c, i, n: (jnp.minimum(c * tiles_per_split + i, last_blk), 0))
    const2 = lambda shape: pl.BlockSpec(shape, lambda c, i, n: (0, 0))

    flops = 2 * n_rows * (in_dim * _L + _L * _D + _D + _L)
    bytes_accessed = (n_rows * in_dim * x.dtype.itemsize
                      + 2 * (in_dim * _L + _L * _D + _D)
                      + 4 * n_rows + 4 * _NUM_SPLITS * (_L + 2))

    attn_t, part_max, part_sum, part_acc = pl.pallas_call(
        kernel,
        out_shape=(
            jax.ShapeDtypeStruct((t_pad, 1, tile_n), jnp.float32),    # raw A_ori, lane-dense
            jax.ShapeDtypeStruct((_NUM_SPLITS, 1, 1), jnp.float32),   # partial running max
            jax.ShapeDtypeStruct((_NUM_SPLITS, 1, 1), jnp.float32),   # partial sum(exp)
            jax.ShapeDtypeStruct((_NUM_SPLITS, 1, _L), jnp.float32),  # partial sum(exp*feat)
        ),
        grid_spec=pltpu.PrefetchScalarGridSpec(
            num_scalar_prefetch=1,
            grid=(_NUM_SPLITS, tiles_per_split),
            in_specs=[
                x_spec,
                const2((in_dim, _L)), const2((1, _L)),     # w_feat, b_feat
                const2((_L, _D)), const2((1, _D)),         # w_a1, b_a1
                const2((1, _D)), const2((1, 1)),           # w_a2 (row), b_a2
            ],
            out_specs=(
                pl.BlockSpec((1, 1, tile_n),
                             lambda c, i, n: (c * tiles_per_split + i, 0, 0)),
                pl.BlockSpec((1, 1, 1), lambda c, i, n: (c, 0, 0)),
                pl.BlockSpec((1, 1, 1), lambda c, i, n: (c, 0, 0)),
                pl.BlockSpec((1, 1, _L), lambda c, i, n: (c, 0, 0)),
            ),
            scratch_shapes=[
                pltpu.VMEM((1, 1), jnp.float32),     # running max
                pltpu.VMEM((1, 1), jnp.float32),     # running sum(exp)
                pltpu.VMEM((1, _L), jnp.float32),    # running sum(exp * feat)
            ],
        ),
        compiler_params=pltpu.CompilerParams(
            dimension_semantics=("parallel", "arbitrary"),  # split axis // across TCs on v7x
            vmem_limit_bytes=vmem_budget,
        ),
        cost_estimate=pl.CostEstimate(flops=flops,
                                      transcendentals=n_rows * (_D + 1),
                                      bytes_accessed=bytes_accessed),
    )(
        n_arr, x,
        w_feat, b_feat, w_a1, params["b_a1"], w_a2_row, params["b_a2"],
    )

    # 2-way flash combine of the per-split partials + classifier: O(L) f32 work.
    pm = part_max[:, 0, 0]                                            # (_NUM_SPLITS,)
    w = jnp.exp(pm - jnp.max(pm))
    denom = jnp.sum(w * part_sum[:, 0, 0])
    m = (jnp.sum(w[:, None] * part_acc[:, 0, :], axis=0) / denom)[None, :]   # (1, L)
    logits = m @ params["w_cls"] + params["b_cls"]                    # (1, n_classes)

    attn = attn_t.reshape(-1)[:n_rows].reshape(n_rows, 1)             # torch (N, 1) layout
    y_hat = jnp.argmax(logits)                                        # torch.argmax (flat)
    y_prob = jax.nn.softmax(logits, axis=-1)                          # F.softmax -> dim=1
    results_dict = {"patch_attn": attn, "slide_feat": m}
    return logits, y_hat, y_prob, results_dict


def _xavier_normal(key, fan_in, fan_out):
    # nn.init.xavier_normal_ on a torch Linear weight of shape (out, in); we store the
    # transpose (in, out) so a Linear is `x @ W`.
    std = jnp.sqrt(2.0 / (fan_in + fan_out))
    return std * jax.random.normal(key, (fan_in, fan_out), dtype=jnp.float32)


def init_params(key, input_dim=256, n_classes=2):
    k_feat, k_a1, k_a2, k_cls = jax.random.split(key, 4)
    return {
        "w_feat": _xavier_normal(k_feat, input_dim, _L),
        "b_feat": jnp.zeros((1, _L), jnp.float32),
        "w_a1": _xavier_normal(k_a1, _L, _D),
        "b_a1": jnp.zeros((1, _D), jnp.float32),
        "w_a2": _xavier_normal(k_a2, _D, 1),
        "b_a2": jnp.zeros((1, 1), jnp.float32),
        "w_cls": _xavier_normal(k_cls, _L, n_classes),
        "b_cls": jnp.zeros((1, n_classes), jnp.float32),
    }


def reference_forward(x1, params):
    """Pure-JAX f32 reference for correctness checking."""
    x = jnp.squeeze(x1, axis=0)
    feat = jax.nn.relu(x @ params["w_feat"] + params["b_feat"])
    a = jnp.tanh(feat @ params["w_a1"] + params["b_a1"]) @ params["w_a2"] + params["b_a2"]
    w = jax.nn.softmax(jnp.transpose(a), axis=-1)
    m = w @ feat
    logits = m @ params["w_cls"] + params["b_cls"]
    return logits, a, m


if __name__ == "__main__":
    key = jax.random.PRNGKey(0)
    k_params, k_x = jax.random.split(key)

    N, INPUT_DIM, N_CLASSES = 200, 256, 2
    params = init_params(k_params, input_dim=INPUT_DIM, n_classes=N_CLASSES)
    x1 = jax.random.normal(k_x, (1, N, INPUT_DIM), dtype=jnp.float32)

    # 1) exact-size bag (ragged last tile handled purely by in-kernel masking, no jnp.pad).
    logits, y_hat, y_prob, results = dattention_forward(x1, params)
    jax.block_until_ready((logits, y_hat, y_prob,
                           results["patch_attn"], results["slide_feat"]))

    assert logits.shape == (1, N_CLASSES)
    assert results["patch_attn"].shape == (N, 1)
    assert results["slide_feat"].shape == (1, _L)

    ref_logits, ref_attn, ref_m = reference_forward(x1, params)
    np.testing.assert_allclose(np.asarray(logits), np.asarray(ref_logits),
                               atol=8e-2, rtol=8e-2)
    np.testing.assert_allclose(np.asarray(results["patch_attn"]), np.asarray(ref_attn),
                               atol=8e-2, rtol=8e-2)
    np.testing.assert_allclose(np.asarray(results["slide_feat"]), np.asarray(ref_m),
                               atol=8e-2, rtol=8e-2)

    # 2) bucketed call: bag padded upstream to 256 rows with garbage values + dynamic
    #    n_valid (bags sharing the bucketed shape reuse the same compiled kernel).
    pad = jnp.full((1, 256 - N, INPUT_DIM), 1e4, dtype=jnp.float32)
    x1_pad = jnp.concatenate([x1, pad], axis=1)
    logits_b, _, _, results_b = dattention_forward(x1_pad, params, n_valid=N)
    jax.block_until_ready(logits_b)
    np.testing.assert_allclose(np.asarray(logits_b), np.asarray(ref_logits),
                               atol=8e-2, rtol=8e-2)
    np.testing.assert_allclose(np.asarray(results_b["patch_attn"])[:N],
                               np.asarray(ref_attn), atol=8e-2, rtol=8e-2)
    np.testing.assert_allclose(np.asarray(results_b["slide_feat"]), np.asarray(ref_m),
                               atol=8e-2, rtol=8e-2)

    print("KERNEL_OK")
</pallas_src>

<mosaic_0001>
module attributes {stable_mosaic.version = 11 : i64} {
  func.func @_dattention_kernel(%arg0: i32, %arg1: i32, %arg2: memref<1xi32, #tpu.memory_space<smem>>, %arg3: memref<256x256xf32, #tpu.memory_space<vmem>>, %arg4: memref<256x512xbf16, #tpu.memory_space<vmem>>, %arg5: memref<1x512xbf16, #tpu.memory_space<vmem>>, %arg6: memref<512x128xbf16, #tpu.memory_space<vmem>>, %arg7: memref<1x128xf32, #tpu.memory_space<vmem>>, %arg8: memref<1x128xbf16, #tpu.memory_space<vmem>>, %arg9: memref<1x1xf32, #tpu.memory_space<vmem>>, %arg10: memref<1x1x256xf32, #tpu.memory_space<vmem>>, %arg11: memref<1x1x1xf32, #tpu.memory_space<vmem>>, %arg12: memref<1x1x1xf32, #tpu.memory_space<vmem>>, %arg13: memref<1x1x512xf32, #tpu.memory_space<vmem>>, %arg14: memref<1x1xf32, #tpu.memory_space<vmem>>, %arg15: memref<1x1xf32, #tpu.memory_space<vmem>>, %arg16: memref<1x512xf32, #tpu.memory_space<vmem>>) attributes {dimension_semantics = [#tpu.dimension_semantics<parallel>, #tpu.dimension_semantics<arbitrary>], iteration_bounds = array<i64: 2, 1>, scalar_prefetch = 1 : i64, scratch_operands = 3 : i64, tpu.core_type = #tpu.core_type<tc>, window_params = [{transform_indices = @transform_0, window_bounds = array<i64: 256, 256>}, {pipeline_mode = #tpu.pipeline_mode<synchronous>, transform_indices = @transform_1, window_bounds = array<i64: 256, 512>}, {pipeline_mode = #tpu.pipeline_mode<synchronous>, transform_indices = @transform_2, window_bounds = array<i64: 1, 512>}, {pipeline_mode = #tpu.pipeline_mode<synchronous>, transform_indices = @transform_3, window_bounds = array<i64: 512, 128>}, {pipeline_mode = #tpu.pipeline_mode<synchronous>, transform_indices = @transform_4, window_bounds = array<i64: 1, 128>}, {pipeline_mode = #tpu.pipeline_mode<synchronous>, transform_indices = @transform_5, window_bounds = array<i64: 1, 128>}, {pipeline_mode = #tpu.pipeline_mode<synchronous>, transform_indices = @transform_6, window_bounds = array<i64: 1, 1>}, {transform_indices = @transform_7, window_bounds = array<i64: 1, 1, 256>}, {transform_indices = @transform_8, window_bounds = array<i64: 1, 1, 1>}, {transform_indices = @transform_9, window_bounds = array<i64: 1, 1, 1>}, {transform_indices = @transform_10, window_bounds = array<i64: 1, 1, 512>}]} {
    %c0 = arith.constant 0 : index
    %0 = memref.load %arg2[%c0] : memref<1xi32, #tpu.memory_space<smem>>
    %c0_i32 = arith.constant 0 : i32
    %1 = arith.cmpi eq, %arg1, %c0_i32 : i32
    %2 = arith.extui %1 : i1 to i32
    %c0_i32_0 = arith.constant 0 : i32
    %3 = arith.cmpi ne, %2, %c0_i32_0 : i32
    scf.if %3 {
      %cst_43 = arith.constant -1.000000e+30 : f32
      %78 = vector.broadcast %cst_43 : f32 to vector<1x1xf32>
      %c0_44 = arith.constant 0 : index
      %c0_45 = arith.constant 0 : index
      %79 = vector.load %arg14[%c0_44, %c0_45] : memref<1x1xf32, #tpu.memory_space<vmem>>, vector<1x1xf32>
      tpu.vector_store %arg14[%c0_44, %c0_45], %78 {strides = array<i32>} : memref<1x1xf32, #tpu.memory_space<vmem>>, vector<1x1xf32>,
      %cst_46 = arith.constant 0.000000e+00 : f32
      %80 = vector.broadcast %cst_46 : f32 to vector<1x1xf32>
      %c0_47 = arith.constant 0 : index
      %c0_48 = arith.constant 0 : index
      %81 = vector.load %arg15[%c0_47, %c0_48] : memref<1x1xf32, #tpu.memory_space<vmem>>, vector<1x1xf32>
      tpu.vector_store %arg15[%c0_47, %c0_48], %80 {strides = array<i32>} : memref<1x1xf32, #tpu.memory_space<vmem>>, vector<1x1xf32>,
      %cst_49 = arith.constant 0.000000e+00 : f32
      %82 = vector.broadcast %cst_49 : f32 to vector<1x512xf32>
      %c0_50 = arith.constant 0 : index
      %c0_51 = arith.constant 0 : index
      %83 = vector.load %arg16[%c0_50, %c0_51] : memref<1x512xf32, #tpu.memory_space<vmem>>, vector<1x512xf32>
      tpu.vector_store %arg16[%c0_50, %c0_51], %82 {strides = array<i32>} : memref<1x512xf32, #tpu.memory_space<vmem>>, vector<1x512xf32>,
    } else {
    }
    %c1_i32 = arith.constant 1 : i32
    %4 = arith.muli %arg0, %c1_i32 : i32
    %5 = arith.addi %4, %arg1 : i32
    %c256_i32 = arith.constant 256 : i32
    %6 = arith.muli %5, %c256_i32 : i32
    %7 = tpu.iota {dimensions = array<i32: 0>} : vector<256x1xi32>
    %8 = vector.broadcast %6 : i32 to vector<256x1xi32>
    %9 = arith.addi %8, %7 : vector<256x1xi32>
    %10 = vector.broadcast %0 : i32 to vector<256x1xi32>
    %11 = arith.cmpi slt, %9, %10 : vector<256x1xi32>
    %12 = tpu.iota {dimensions = array<i32: 1>} : vector<1x256xi32>
    %13 = vector.broadcast %6 : i32 to vector<1x256xi32>
    %14 = arith.addi %13, %12 : vector<1x256xi32>
    %15 = vector.broadcast %0 : i32 to vector<1x256xi32>
    %16 = arith.cmpi slt, %14, %15 : vector<1x256xi32>
    %c0_1 = arith.constant 0 : index
    %c0_2 = arith.constant 0 : index
    %17 = vector.load %arg3[%c0_1, %c0_2] : memref<256x256xf32, #tpu.memory_space<vmem>>, vector<256x256xf32>
    %18 = arith.truncf %17 : vector<256x256xf32> to vector<256x256xbf16>
    %c0_3 = arith.constant 0 : index
    %c0_4 = arith.constant 0 : index
    %19 = vector.load %arg4[%c0_3, %c0_4] : memref<256x512xbf16, #tpu.memory_space<vmem>>, vector<256x512xbf16>
    %cst = arith.constant dense<0.000000e+00> : vector<256x512xf32>
    %20 = tpu.matmul %18, %19, %cst {dimension_numbers = #tpu.dot_dimension_numbers<[1], [0], [0], [1], [0, 0, 1, 1], [], []>} : vector<256x256xbf16>, vector<256x512xbf16>, vector<256x512xf32> -> vector<256x512xf32>
    %21 = arith.truncf %20 : vector<256x512xf32> to vector<256x512xbf16>
    %c0_5 = arith.constant 0 : index
    %c0_6 = arith.constant 0 : index
    %22 = vector.load %arg5[%c0_5, %c0_6] : memref<1x512xbf16, #tpu.memory_space<vmem>>, vector<1x512xbf16>
    %23 = vector.broadcast %22 : vector<1x512xbf16> to vector<256x512xbf16>
    %24 = arith.addf %21, %23 : vector<256x512xbf16>
    %cst_7 = arith.constant 0.000000e+00 : bf16
    %25 = vector.broadcast %cst_7 : bf16 to vector<256x512xbf16>
    %26 = arith.maximumf %24, %25 : vector<256x512xbf16>
    %c0_i32_8 = arith.constant 0 : i32
    %27 = arith.sitofp %c0_i32_8 : i32 to bf16
    %28 = vector.shape_cast %11 : vector<256x1xi1> to vector<256x1xi1>
    %29 = vector.broadcast %28 : vector<256x1xi1> to vector<256x512xi1>
    %30 = vector.broadcast %27 : bf16 to vector<256x512xbf16>
    %31 = arith.select %29, %26, %30 : vector<256x512xi1>, vector<256x512xbf16>
    %c0_9 = arith.constant 0 : index
    %c0_10 = arith.constant 0 : index
    %32 = vector.load %arg6[%c0_9, %c0_10] : memref<512x128xbf16, #tpu.memory_space<vmem>>, vector<512x128xbf16>
    %cst_11 = arith.constant dense<0.000000e+00> : vector<256x128xf32>
    %33 = tpu.matmul %31, %32, %cst_11 {dimension_numbers = #tpu.dot_dimension_numbers<[1], [0], [0], [1], [0, 0, 1, 1], [], []>} : vector<256x512xbf16>, vector<512x128xbf16>, vector<256x128xf32> -> vector<256x128xf32>
    %c0_12 = arith.constant 0 : index
    %c0_13 = arith.constant 0 : index
    %34 = vector.load %arg7[%c0_12, %c0_13] : memref<1x128xf32, #tpu.memory_space<vmem>>, vector<1x128xf32>
    %35 = vector.broadcast %34 : vector<1x128xf32> to vector<256x128xf32>
    %36 = arith.addf %33, %35 : vector<256x128xf32>
    %37 = math.tanh %36 : vector<256x128xf32>
    %c0_14 = arith.constant 0 : index
    %c0_15 = arith.constant 0 : index
    %38 = vector.load %arg8[%c0_14, %c0_15] : memref<1x128xbf16, #tpu.memory_space<vmem>>, vector<1x128xbf16>
    %39 = arith.truncf %37 : vector<256x128xf32> to vector<256x128xbf16>
    %cst_16 = arith.constant dense<0.000000e+00> : vector<1x256xf32>
    %40 = tpu.matmul %38, %39, %cst_16 {dimension_numbers = #tpu.dot_dimension_numbers<[1], [1], [0], [0], [0, 0, 1, 0], [], []>} : vector<1x128xbf16>, vector<256x128xbf16>, vector<1x256xf32> -> vector<1x256xf32>
    %c0_17 = arith.constant 0 : index
    %c0_18 = arith.constant 0 : index
    %41 = vector.load %arg9[%c0_17, %c0_18] : memref<1x1xf32, #tpu.memory_space<vmem>>, vector<1x1xf32>
    %42 = vector.broadcast %41 : vector<1x1xf32> to vector<1x256xf32>
    %43 = arith.addf %40, %42 : vector<1x256xf32>
    %c0_19 = arith.constant 0 : index
    %c0_20 = arith.constant 0 : index
    %c0_21 = arith.constant 0 : index
    %44 = vector.load %arg10[%c0_19, %c0_20, %c0_21] : memref<1x1x256xf32, #tpu.memory_space<vmem>>, vector<1x1x256xf32>
    %45 = vector.shape_cast %44 : vector<1x1x256xf32> to vector<1x256xf32>
    %46 = vector.shape_cast %43 : vector<1x256xf32> to vector<1x1x256xf32>
    tpu.vector_store %arg10[%c0_19, %c0_20, %c0_21], %46 {strides = array<i32>} : memref<1x1x256xf32, #tpu.memory_space<vmem>>, vector<1x1x256xf32>,
    %cst_22 = arith.constant -1.000000e+30 : f32
    %47 = vector.broadcast %cst_22 : f32 to vector<1x256xf32>
    %48 = arith.select %16, %43, %47 : vector<1x256xi1>, vector<1x256xf32>
    %cst_23 = arith.constant dense<0xFF800000> : vector<1xf32>
    %49 = vector.multi_reduction <maximumf>, %48, %cst_23 [1] : vector<1x256xf32> to vector<1xf32>
    %50 = vector.shape_cast %49 : vector<1xf32> to vector<1x1xf32>
    %c0_24 = arith.constant 0 : index
    %c0_25 = arith.constant 0 : index
    %51 = vector.load %arg14[%c0_24, %c0_25] : memref<1x1xf32, #tpu.memory_space<vmem>>, vector<1x1xf32>
    %52 = arith.maximumf %51, %50 : vector<1x1xf32>
    %c0_26 = arith.constant 0 : index
    %c0_27 = arith.constant 0 : index
    %53 = vector.load %arg14[%c0_26, %c0_27] : memref<1x1xf32, #tpu.memory_space<vmem>>, vector<1x1xf32>
    %54 = arith.subf %53, %52 : vector<1x1xf32>
    %55 = math.exp %54 : vector<1x1xf32>
    %56 = vector.broadcast %52 : vector<1x1xf32> to vector<1x256xf32>
    %57 = arith.subf %48, %56 : vector<1x256xf32>
    %58 = math.exp %57 : vector<1x256xf32>
    %cst_28 = arith.constant 0.000000e+00 : f32
    %59 = vector.broadcast %cst_28 : f32 to vector<1x256xf32>
    %60 = arith.select %16, %58, %59 : vector<1x256xi1>, vector<1x256xf32>
    %c0_29 = arith.constant 0 : index
    %c0_30 = arith.constant 0 : index
    %61 = vector.load %arg15[%c0_29, %c0_30] : memref<1x1xf32, #tpu.memory_space<vmem>>, vector<1x1xf32>
    %62 = arith.mulf %55, %61 : vector<1x1xf32>
    %cst_31 = arith.constant dense<0.000000e+00> : vector<1xf32>
    %63 = vector.multi_reduction <add>, %60, %cst_31 [1] : vector<1x256xf32> to vector<1xf32>
    %64 = vector.shape_cast %63 : vector<1xf32> to vector<1x1xf32>
    %65 = arith.addf %62, %64 : vector<1x1xf32>
    %c0_32 = arith.constant 0 : index
    %c0_33 = arith.constant 0 : index
    %66 = vector.load %arg15[%c0_32, %c0_33] : memref<1x1xf32, #tpu.memory_space<vmem>>, vector<1x1xf32>
    tpu.vector_store %arg15[%c0_32, %c0_33], %65 {strides = array<i32>} : memref<1x1xf32, #tpu.memory_space<vmem>>, vector<1x1xf32>,
    %c0_34 = arith.constant 0 : index
    %c0_35 = arith.constant 0 : index
    %67 = vector.load %arg16[%c0_34, %c0_35] : memref<1x512xf32, #tpu.memory_space<vmem>>, vector<1x512xf32>
    %68 = vector.broadcast %55 : vector<1x1xf32> to vector<1x512xf32>
    %69 = arith.mulf %68, %67 : vector<1x512xf32>
    %70 = arith.truncf %60 : vector<1x256xf32> to vector<1x256xbf16>
    %cst_36 = arith.constant dense<0.000000e+00> : vector<1x512xf32>
    %71 = tpu.matmul %70, %31, %cst_36 {dimension_numbers = #tpu.dot_dimension_numbers<[1], [0], [0], [1], [0, 0, 1, 1], [], []>} : vector<1x256xbf16>, vector<256x512xbf16>, vector<1x512xf32> -> vector<1x512xf32>
    %72 = arith.addf %69, %71 : vector<1x512xf32>
    %c0_37 = arith.constant 0 : index
    %c0_38 = arith.constant 0 : index
    %73 = vector.load %arg16[%c0_37, %c0_38] : memref<1x512xf32, #tpu.memory_space<vmem>>, vector<1x512xf32>
    tpu.vector_store %arg16[%c0_37, %c0_38], %72 {strides = array<i32>} : memref<1x512xf32, #tpu.memory_space<vmem>>, vector<1x512xf32>,
    %c0_39 = arith.constant 0 : index
    %c0_40 = arith.constant 0 : index
    %74 = vector.load %arg14[%c0_39, %c0_40] : memref<1x1xf32, #tpu.memory_space<vmem>>, vector<1x1xf32>
    tpu.vector_store %arg14[%c0_39, %c0_40], %52 {strides = array<i32>} : memref<1x1xf32, #tpu.memory_space<vmem>>, vector<1x1xf32>,
    %c0_i32_41 = arith.constant 0 : i32
    %75 = arith.cmpi eq, %arg1, %c0_i32_41 : i32
    %76 = arith.extui %75 : i1 to i32
    %c0_i32_42 = arith.constant 0 : i32
    %77 = arith.cmpi ne, %76, %c0_i32_42 : i32
    scf.if %77 {
      %c0_43 = arith.constant 0 : index
      %c0_44 = arith.constant 0 : index
      %78 = vector.load %arg14[%c0_43, %c0_44] : memref<1x1xf32, #tpu.memory_space<vmem>>, vector<1x1xf32>
      %c0_45 = arith.constant 0 : index
      %c0_46 = arith.constant 0 : index
      %c0_47 = arith.constant 0 : index
      %79 = vector.load %arg11[%c0_45, %c0_46, %c0_47] : memref<1x1x1xf32, #tpu.memory_space<vmem>>, vector<1x1x1xf32>
      %80 = vector.shape_cast %79 : vector<1x1x1xf32> to vector<1x1xf32>
      %81 = vector.shape_cast %78 : vector<1x1xf32> to vector<1x1x1xf32>
      tpu.vector_store %arg11[%c0_45, %c0_46, %c0_47], %81 {strides = array<i32>} : memref<1x1x1xf32, #tpu.memory_space<vmem>>, vector<1x1x1xf32>,
      %c0_48 = arith.constant 0 : index
      %c0_49 = arith.constant 0 : index
      %82 = vector.load %arg15[%c0_48, %c0_49] : memref<1x1xf32, #tpu.memory_space<vmem>>, vector<1x1xf32>
      %c0_50 = arith.constant 0 : index
      %c0_51 = arith.constant 0 : index
      %c0_52 = arith.constant 0 : index
      %83 = vector.load %arg12[%c0_50, %c0_51, %c0_52] : memref<1x1x1xf32, #tpu.memory_space<vmem>>, vector<1x1x1xf32>
      %84 = vector.shape_cast %83 : vector<1x1x1xf32> to vector<1x1xf32>
      %85 = vector.shape_cast %82 : vector<1x1xf32> to vector<1x1x1xf32>
      tpu.vector_store %arg12[%c0_50, %c0_51, %c0_52], %85 {strides = array<i32>} : memref<1x1x1xf32, #tpu.memory_space<vmem>>, vector<1x1x1xf32>,
      %c0_53 = arith.constant 0 : index
      %c0_54 = arith.constant 0 : index
      %86 = vector.load %arg16[%c0_53, %c0_54] : memref<1x512xf32, #tpu.memory_space<vmem>>, vector<1x512xf32>
      %c0_55 = arith.constant 0 : index
      %c0_56 = arith.constant 0 : index
      %c0_57 = arith.constant 0 : index
      %87 = vector.load %arg13[%c0_55, %c0_56, %c0_57] : memref<1x1x512xf32, #tpu.memory_space<vmem>>, vector<1x1x512xf32>
      %88 = vector.shape_cast %87 : vector<1x1x512xf32> to vector<1x512xf32>
      %89 = vector.shape_cast %86 : vector<1x512xf32> to vector<1x1x512xf32>
      tpu.vector_store %arg13[%c0_55, %c0_56, %c0_57], %89 {strides = array<i32>} : memref<1x1x512xf32, #tpu.memory_space<vmem>>, vector<1x1x512xf32>,
    } else {
    }
    return
  }
  func.func @transform_0(%arg0: i32, %arg1: i32, %arg2: memref<1xi32, #tpu.memory_space<smem>>) -> (i32, i32) {
    %c1_i32 = arith.constant 1 : i32
    %0 = arith.muli %arg0, %c1_i32 : i32
    %1 = arith.addi %0, %arg1 : i32
    %c0_i32 = arith.constant 0 : i32
    %2 = arith.minsi %1, %c0_i32 : i32
    %c0_i32_0 = arith.constant 0 : i32
    %c0_i32_1 = arith.constant 0 : i32
    return %2, %c0_i32_0 : i32, i32
  }
  func.func @transform_1(%arg0: i32, %arg1: i32, %arg2: memref<1xi32, #tpu.memory_space<smem>>) -> (i32, i32) {
    %c0_i32 = arith.constant 0 : i32
    %c0_i32_0 = arith.constant 0 : i32
    %c0_i32_1 = arith.constant 0 : i32
    return %c0_i32, %c0_i32_0 : i32, i32
  }
  func.func @transform_2(%arg0: i32, %arg1: i32, %arg2: memref<1xi32, #tpu.memory_space<smem>>) -> (i32, i32) {
    %c0_i32 = arith.constant 0 : i32
    %c0_i32_0 = arith.constant 0 : i32
    %c0_i32_1 = arith.constant 0 : i32
    return %c0_i32, %c0_i32_0 : i32, i32
  }
  func.func @transform_3(%arg0: i32, %arg1: i32, %arg2: memref<1xi32, #tpu.memory_space<smem>>) -> (i32, i32) {
    %c0_i32 = arith.constant 0 : i32
    %c0_i32_0 = arith.constant 0 : i32
    %c0_i32_1 = arith.constant 0 : i32
    return %c0_i32, %c0_i32_0 : i32, i32
  }
  func.func @transform_4(%arg0: i32, %arg1: i32, %arg2: memref<1xi32, #tpu.memory_space<smem>>) -> (i32, i32) {
    %c0_i32 = arith.constant 0 : i32
    %c0_i32_0 = arith.constant 0 : i32
    %c0_i32_1 = arith.constant 0 : i32
    return %c0_i32, %c0_i32_0 : i32, i32
  }
  func.func @transform_5(%arg0: i32, %arg1: i32, %arg2: memref<1xi32, #tpu.memory_space<smem>>) -> (i32, i32) {
    %c0_i32 = arith.constant 0 : i32
    %c0_i32_0 = arith.constant 0 : i32
    %c0_i32_1 = arith.constant 0 : i32
    return %c0_i32, %c0_i32_0 : i32, i32
  }
  func.func @transform_6(%arg0: i32, %arg1: i32, %arg2: memref<1xi32, #tpu.memory_space<smem>>) -> (i32, i32) {
    %c0_i32 = arith.constant 0 : i32
    %c0_i32_0 = arith.constant 0 : i32
    %c0_i32_1 = arith.constant 0 : i32
    return %c0_i32, %c0_i32_0 : i32, i32
  }
  func.func @transform_7(%arg0: i32, %arg1: i32, %arg2: memref<1xi32, #tpu.memory_space<smem>>) -> (i32, i32, i32) {
    %c1_i32 = arith.constant 1 : i32
    %0 = arith.muli %arg0, %c1_i32 : i32
    %1 = arith.addi %0, %arg1 : i32
    %c0_i32 = arith.constant 0 : i32
    %c0_i32_0 = arith.constant 0 : i32
    %c0_i32_1 = arith.constant 0 : i32
    return %1, %c0_i32, %c0_i32_0 : i32, i32, i32
  }
  func.func @transform_8(%arg0: i32, %arg1: i32, %arg2: memref<1xi32, #tpu.memory_space<smem>>) -> (i32, i32, i32) {
    %c0_i32 = arith.constant 0 : i32
    %c0_i32_0 = arith.constant 0 : i32
    %c0_i32_1 = arith.constant 0 : i32
    return %arg0, %c0_i32, %c0_i32_0 : i32, i32, i32
  }
  func.func @transform_9(%arg0: i32, %arg1: i32, %arg2: memref<1xi32, #tpu.memory_space<smem>>) -> (i32, i32, i32) {
    %c0_i32 = arith.constant 0 : i32
    %c0_i32_0 = arith.constant 0 : i32
    %c0_i32_1 = arith.constant 0 : i32
    return %arg0, %c0_i32, %c0_i32_0 : i32, i32, i32
  }
  func.func @transform_10(%arg0: i32, %arg1: i32, %arg2: memref<1xi32, #tpu.memory_space<smem>>) -> (i32, i32, i32) {
    %c0_i32 = arith.constant 0 : i32
    %c0_i32_0 = arith.constant 0 : i32
    %c0_i32_1 = arith.constant 0 : i32
    return %arg0, %c0_i32, %c0_i32_0 : i32, i32, i32
  }
}

</mosaic_0001>

<bundles_post_ra>
// kernel: dattention_forward.1
= control target key start
LH: loop header
LB: loop body
LE: loop exit
PB: predicated region body
PF: predicated region fallthrough
CT: control target
= control target key end

     0   :  { %s3787_s21 = smov 0   ;;  %s3789_s22 = smov 0   ;;  %s5713_s0 = inlined_call_operand.<no memory space> [shape: s32[1], index: 0, kind: input, shape index: {}]   ;;  %s5714_s1 = inlined_call_operand.vmem [shape: f32[200,256], index: 1, kind: input, shape index: {}]   ;;  %s5715_s2 = inlined_call_operand.vmem [shape: bf16[256,512], index: 2, kind: input, shape index: {}]   ;;  %s5716_s3 = inlined_call_operand.vmem [shape: bf16[1,512], index: 3, kind: input, shape index: {}]   ;;  %s5717_s4 = inlined_call_operand.vmem [shape: bf16[512,128], index: 4, kind: input, shape index: {}]   ;;  %s5718_s5 = inlined_call_operand.vmem [shape: f32[1,128], index: 5, kind: input, shape index: {}]   ;;  %s5719_s6 = inlined_call_operand.vmem [shape: bf16[1,128], index: 6, kind: input, shape index: {}]   ;;  %s5720_s7 = inlined_call_operand.<no memory space> [shape: f32[1,1], index: 7, kind: input, shape index: {}]   ;;  %s5721_s8 = inlined_call_operand.vmem [shape: f32[2,1,256], index: 8, kind: output, shape index: {0}]   ;;  %s5722_s9 = inlined_call_operand.vmem [shape: f32[2,1,1], index: 9, kind: output, shape index: {1}]   ;;  %s5723_s10 = inlined_call_operand.vmem [shape: f32[2,1,1], index: 10, kind: output, shape index: {2}]   ;;  %s5724_s11 = inlined_call_operand.vmem [shape: f32[2,1,512], index: 11, kind: output, shape index: {3}]  }
   0x1   :  { %17 = sst [smem:[#allocation6]] %s5713_s0  ;;  %v18_v0 = vstv %s5720_s7  ;;  %s3791_s23 = smov 0  }
   0x2   :  { %19 = vst [vmem:[#allocation7] sm:$0x1] %v18_v0 }
   0x3 LB: > { %s37_s0 = sadd.s32 1, %s3711_s22  ;;  %p2975_p0 = scmp.ge.s32.totalorder %s3715_s23, 1  ;;  %s3715_s23 = sphi %s3791_s23, %s25_s23   ;;  %s3711_s22 = sphi %s3789_s22, %s6085_s22   ;;  %s3707_s21 = sphi %s3787_s21, %s6084_s21  }
   0x4   : > { %p39_p1 = scmp.ge.s32.totalorder %s37_s0, 2  ;;  %p357_p2 = scmp.lt.s32.totalorder %s3715_s23, 3 }
   0x6   : > { %s6087_s0 = smov (%p39_p1, %s37_s0), 0  ;;  %p358_p3 = pnand %p2975_p0, %p357_p2 }
   0x8   : > { %361 = sbr.rel (%p358_p3) target bundleno = 1534 (0x5fe), region = 48 }
   0xf   : > { %v3495_v1 = vld [vmem:[%s5715_s2 + $0x4] ss:$16 sps:$4 sm:$0xff]   ;;  %p413_p4 = scmp.lt.s32.totalorder %s3707_s21, 0  ;;  %v3497_v2 = vld [vmem:[%s5715_s2] ss:$16 sps:$4 sm:$0xff]   ;;  %p432_p6 = scmp.lt.s32.totalorder %s3707_s21, 1 }
  0x10   : > { %1051 = vmatprep.subr.bf16.mxu0 %v3495_v1  ;;  %v3498_v3 = vld [vmem:[%s5715_s2 + $0x24] ss:$16 sps:$4 sm:$0xff]   ;;  %v3500_v4 = vld [vmem:[%s5715_s2 + $0x20] ss:$16 sps:$4 sm:$0xff]   ;;  %v3543_v23 = vld [vmem:[%s5715_s2 + $0xc] ss:$16 sps:$4 sm:$0xff]  }
  0x11   : > { %s414_s29 = scalar_select %p413_p4, %s3707_s21, 0  ;;  %1052 = vmatpush1.bf16.msra.mxu0 %v3497_v2  ;;  %v3501_v5 = vld [vmem:[%s5715_s2 + $0x44] ss:$16 sps:$4 sm:$0xff]   ;;  %v3503_v6 = vld [vmem:[%s5715_s2 + $0x40] ss:$16 sps:$4 sm:$0xff]   ;;  %1244 = vmatprep.subr.bf16.mxu1 %v3543_v23 }
  0x12   : > { %1053 = vmatprep.subr.bf16.mxu0 %v3498_v3  ;;  %v3504_v7 = vld [vmem:[%s5715_s2 + $0x64] ss:$16 sps:$4 sm:$0xff]   ;;  %v3506_v8 = vld [vmem:[%s5715_s2 + $0x60] ss:$16 sps:$4 sm:$0xff]   ;;  %v3545_v24 = vld [vmem:[%s5715_s2 + $0x8] ss:$16 sps:$4 sm:$0xff]  }
  0x13   : > { %s2976_s15 = sshll.u32 %s414_s29, 5  ;;  %v3507_v9 = vld [vmem:[%s5715_s2 + $0x84] ss:$16 sps:$4 sm:$0xff]   ;;  %v3509_v10 = vld [vmem:[%s5715_s2 + $0x80] ss:$16 sps:$4 sm:$0xff]   ;;  %1245 = vmatpush1.bf16.msra.mxu1 %v3545_v24  ;;  %s2981_s29 = sshll.u32 %s3707_s21, 8 }
  0x14   : > { %p419_p5 = scmp.lt.s32.totalorder %s2976_s15, 24  ;;  %v3510_v11 = vld [vmem:[%s5715_s2 + $0xa4] ss:$16 sps:$4 sm:$0xff]   ;;  %v3512_v12 = vld [vmem:[%s5715_s2 + $0xa0] ss:$16 sps:$4 sm:$0xff]   ;;  %s6091_s21 = smov (!%p432_p6, %s3707_s21), 1 }
  0x15   : > { %1054 = vmatpush1.bf16.msra.mxu0 %v3500_v4  ;;  %v3513_v13 = vld [vmem:[%s5715_s2 + $0xc4] ss:$16 sps:$4 sm:$0xff]   ;;  %v3515_v17 = vld [vmem:[%s5715_s2 + $0xc0] ss:$16 sps:$4 sm:$0xff]   ;;  %v3546_v27 = vld [vmem:[%s5715_s2 + $0x2c] ss:$16 sps:$4 sm:$0xff]   ;;  %s439_s20 = scalar_lea.vmem %s5722_s9, %s6091_s21  ;;  %s442_s25 = scalar_lea.vmem %s5723_s10, %s6091_s21 }
  0x16   : > { %1055 = vmatprep.subr.bf16.mxu0 %v3501_v5  ;;  %s6089_s15 = smov (!%p419_p5, %s2976_s15), 24  ;;  %v3516_v18 = vld [vmem:[%s5715_s2 + $0xe4] ss:$16 sps:$4 sm:$0xff]   ;;  %v3518_v19 = vld [vmem:[%s5715_s2 + $0xe0] ss:$16 sps:$4 sm:$0xff]   ;;  %1246 = vmatprep.subr.bf16.mxu1 %v3546_v27  ;;  %v3999_v4 = vld [vmem:[%s5717_s4 + $0x48] sm:$0xff]  }
  0x17   : > { %s3206_s28 = sshll.u32 %s6089_s15, 4  ;;  %v3519_v20 = vld [vmem:[%s5715_s2 + $0x104] ss:$16 sps:$4 sm:$0xff]   ;;  %v3521_v21 = vld [vmem:[%s5715_s2 + $0x100] ss:$16 sps:$4 sm:$0xff]   ;;  %v4081_v27 = vld [vmem:[%s5717_s4 + $0x68] sm:$0xff]  }
  0x18   : > { %s3845_s14 = scalar_lea.vmem %s5714_s1, %s3206_s28  ;;  %v3522_v22 = vld [vmem:[%s5715_s2 + $0x124] ss:$16 sps:$4 sm:$0xff]   ;;  %v3524_v25 = vld [vmem:[%s5715_s2 + $0x120] ss:$16 sps:$4 sm:$0xff]   ;;  %v3548_v28 = vld [vmem:[%s5715_s2 + $0x28] ss:$16 sps:$4 sm:$0xff]  }
  0x19   : > { %1056 = vmatpush1.bf16.msra.mxu0 %v3503_v6  ;;  %v572_v14 = vld [vmem:[%s3845_s14 + $0x8] sm:$0xff]  ;;  %v574_v15 = vld [vmem:[%s3845_s14 + $0x18] sm:$0xff]  ;;  %v3525_v26 = vld [vmem:[%s5715_s2 + $0x144] ss:$16 sps:$4 sm:$0xff]   ;;  %1247 = vmatpush1.bf16.msra.mxu1 %v3548_v28  ;;  %s2979_s13 = sshll.u32 %s6091_s21, 1  ;;  %s2980_s26 = sshll.u32 %s6091_s21, 2 }
  0x1a   : > { %1057 = vmatprep.subr.bf16.mxu0 %v3504_v7  ;;  %v636_v16 = vpack.c.bf16 %v574_v15, %v572_v14  ;;  %v3549_v29 = vld [vmem:[%s5715_s2 + $0x4c] ss:$16 sps:$4 sm:$0xff]   ;;  %v3527_v30 = vld [vmem:[%s5715_s2 + $0x140] ss:$16 sps:$4 sm:$0xff]   ;;  %v3528_v31 = vld [vmem:[%s5715_s2 + $0x164] ss:$16 sps:$4 sm:$0xff]   ;;  %s435_s18 = scalar_lea.vmem %s5721_s8, %s2979_s13 }
  0x1b   : > { %v3551_v32 = vld [vmem:[%s5715_s2 + $0x48] ss:$16 sps:$4 sm:$0xff]   ;;  %1248 = vmatprep.subr.bf16.mxu1 %v3549_v29  ;;  %v3552_v33 = vld [vmem:[%s5715_s2 + $0x6c] ss:$16 sps:$4 sm:$0xff]   ;;  %v3530_v34 = vld [vmem:[%s5715_s2 + $0x160] ss:$16 sps:$4 sm:$0xff]  }
  0x1c   : > { %1083 = vmatprep.mubr.bf16.mxu0 %v636_v16  ;;  %1276 = vmatprep.mubr.bf16.mxu1 %v636_v16  ;;  %v3531_v35 = vld [vmem:[%s5715_s2 + $0x184] ss:$16 sps:$4 sm:$0xff]   ;;  %v3554_v36 = vld [vmem:[%s5715_s2 + $0x68] ss:$16 sps:$4 sm:$0xff]   ;;  %v3555_v37 = vld [vmem:[%s5715_s2 + $0x8c] ss:$16 sps:$4 sm:$0xff]  }
  0x1d   : > { %1058 = vmatpush1.bf16.msra.mxu0 %v3506_v8  ;;  %1249 = vmatpush1.bf16.msra.mxu1 %v3551_v32  ;;  %v3533_v38 = vld [vmem:[%s5715_s2 + $0x180] ss:$16 sps:$4 sm:$0xff]   ;;  %v3534_v39 = vld [vmem:[%s5715_s2 + $0x1a4] ss:$16 sps:$4 sm:$0xff]   ;;  %v3557_v40 = vld [vmem:[%s5715_s2 + $0x88] ss:$16 sps:$4 sm:$0xff]  }
  0x1e   : > { %1059 = vmatprep.subr.bf16.mxu0 %v3507_v9  ;;  %1250 = vmatprep.subr.bf16.mxu1 %v3552_v33  ;;  %v3558_v41 = vld [vmem:[%s5715_s2 + $0xac] ss:$16 sps:$4 sm:$0xff]   ;;  %v3536_v42 = vld [vmem:[%s5715_s2 + $0x1a0] ss:$16 sps:$4 sm:$0xff]   ;;  %v3537_v43 = vld [vmem:[%s5715_s2 + $0x1c4] ss:$16 sps:$4 sm:$0xff]  }
  0x1f   : > { %v3560_v44 = vld [vmem:[%s5715_s2 + $0xa8] ss:$16 sps:$4 sm:$0xff]   ;;  %v3561_v45 = vld [vmem:[%s5715_s2 + $0xcc] ss:$16 sps:$4 sm:$0xff]   ;;  %v3539_v46 = vld [vmem:[%s5715_s2 + $0x1c0] ss:$16 sps:$4 sm:$0xff]  }
  0x20   : > { %v3540_v47 = vld [vmem:[%s5715_s2 + $0x1e4] ss:$16 sps:$4 sm:$0xff]   ;;  %v3563_v48 = vld [vmem:[%s5715_s2 + $0xc8] ss:$16 sps:$4 sm:$0xff]   ;;  %v3564_v49 = vld [vmem:[%s5715_s2 + $0xec] ss:$16 sps:$4 sm:$0xff]  }
  0x21   : > { %1060 = vmatpush1.bf16.msra.mxu0 %v3509_v10  ;;  %1251 = vmatpush1.bf16.msra.mxu1 %v3554_v36  ;;  %v3542_v50 = vld [vmem:[%s5715_s2 + $0x1e0] ss:$16 sps:$4 sm:$0xff]   ;;  %v576_v53 = vld [vmem:[%s3845_s14 + $0x28] sm:$0xff]  ;;  %v578_v54 = vld [vmem:[%s3845_s14 + $0x38] sm:$0xff] }
  0x22   : > { %1061 = vmatprep.subr.bf16.mxu0 %v3510_v11  ;;  %1252 = vmatprep.subr.bf16.mxu1 %v3555_v37  ;;  %v571_v51 = vld [vmem:[%s3845_s14] sm:$0xff]  ;;  %v573_v52 = vld [vmem:[%s3845_s14 + $0x10] sm:$0xff]  ;;  %v3566_v55 = vld [vmem:[%s5715_s2 + $0xe8] ss:$16 sps:$4 sm:$0xff]   ;;  %v3969_v58 = vpack.c.bf16 %v578_v54, %v576_v53 }
  0x23   : > { %v3567_v56 = vld [vmem:[%s5715_s2 + $0x10c] ss:$16 sps:$4 sm:$0xff]   ;;  %v3967_v57 = vpack.c.bf16 %v573_v52, %v571_v51  ;;  %v3569_v59 = vld [vmem:[%s5715_s2 + $0x108] ss:$16 sps:$4 sm:$0xff]   ;;  %v3980_v61 = vld [vmem:[%s5717_s4 + $0x40] sm:$0xff]  }
  0x24   : > { %v3570_v60 = vld [vmem:[%s5715_s2 + $0x12c] ss:$16 sps:$4 sm:$0xff]   ;;  %v575_v62 = vld [vmem:[%s3845_s14 + $0x20] sm:$0xff]  ;;  %v577_v63 = vld [vmem:[%s3845_s14 + $0x30] sm:$0xff] }
  0x25   : > { %1062 = vmatpush1.bf16.msra.mxu0 %v3512_v12  ;;  %1253 = vmatpush1.bf16.msra.mxu1 %v3557_v40  ;;  %v3572_v0 = vld [vmem:[%s5715_s2 + $0x128] ss:$16 sps:$4 sm:$0xff]   ;;  %v3990_v1 = vld [vmem:[%s5717_s4] sm:$0xff]   ;;  %v3573_v5 = vld [vmem:[%s5715_s2 + $0x14c] ss:$16 sps:$4 sm:$0xff]   ;;  %v4017_v8 = vpack.c.bf16 %v577_v63, %v575_v62 }
  0x26   : > { %1063 = vmatprep.subr.bf16.mxu0 %v3513_v13  ;;  %1254 = vmatprep.subr.bf16.mxu1 %v3558_v41  ;;  %v580_v2 = vld [vmem:[%s3845_s14 + $0x48] sm:$0xff]  ;;  %v582_v3 = vld [vmem:[%s3845_s14 + $0x58] sm:$0xff]  ;;  %v4015_v7 = vld [vmem:[%s5717_s4 + $0x50] sm:$0xff]  }
  0x27   : > { %v4009_v6 = vld [vmem:[%s5717_s4 + $0x8] sm:$0xff]   ;;  %v4022_v10 = vpack.c.bf16 %v582_v3, %v580_v2  ;;  %v4031_v12 = vld [vmem:[%s5717_s4 + $0x10] sm:$0xff]   ;;  %v579_v13 = vld [vmem:[%s3845_s14 + $0x40] sm:$0xff] }
  0x28   : > { %v3575_v9 = vld [vmem:[%s5715_s2 + $0x148] ss:$16 sps:$4 sm:$0xff]   ;;  %v3576_v11 = vld [vmem:[%s5715_s2 + $0x16c] ss:$16 sps:$4 sm:$0xff]   ;;  %v581_v14 = vld [vmem:[%s3845_s14 + $0x50] sm:$0xff] }
  0x29   : > { %1064 = vmatpush1.bf16.msra.mxu0 %v3515_v17  ;;  %1255 = vmatpush1.bf16.msra.mxu1 %v3560_v44  ;;  %v3578_v15 = vld [vmem:[%s5715_s2 + $0x168] ss:$16 sps:$4 sm:$0xff]   ;;  %v4066_v23 = vpack.c.bf16 %v581_v14, %v579_v13  ;;  %v3582_v24 = vld [vmem:[%s5715_s2 + $0x1ac] ss:$16 sps:$4 sm:$0xff]   ;;  %v583_v28 = vld [vmem:[%s3845_s14 + $0x60] sm:$0xff] }
  0x2a   : > { %1065 = vmatprep.subr.bf16.mxu0 %v3516_v18  ;;  %1256 = vmatprep.subr.bf16.mxu1 %v3561_v45  ;;  %v4042_v16 = vld [vmem:[%s5717_s4 + $0x58] sm:$0xff]   ;;  %v584_v17 = vld [vmem:[%s3845_s14 + $0x68] sm:$0xff]  ;;  %v585_v29 = vld [vmem:[%s3845_s14 + $0x70] sm:$0xff] }
  0x2b   : > { %v586_v18 = vld [vmem:[%s3845_s14 + $0x78] sm:$0xff]  ;;  %v592_v41 = vld [vmem:[%s3845_s14 + $0xa8] sm:$0xff]  ;;  %v591_v45 = vld [vmem:[%s3845_s14 + $0xa0] sm:$0xff] }
  0x2c   : > { %v590_v32 = vld [vmem:[%s3845_s14 + $0x98] sm:$0xff]  ;;  %v595_v51 = vld [vmem:[%s3845_s14 + $0xc0] sm:$0xff]  ;;  %v597_v52 = vld [vmem:[%s3845_s14 + $0xd0] sm:$0xff] }
  0x2d   : > { %1066 = vmatpush1.bf16.msra.mxu0 %v3518_v19  ;;  %1257 = vmatpush1.bf16.msra.mxu1 %v3563_v48  ;;  %v3579_v19 = vld [vmem:[%s5715_s2 + $0x18c] ss:$16 sps:$4 sm:$0xff]   ;;  %v3590_v40 = vld [vmem:[%s5715_s2 + $0x1e8] ss:$16 sps:$4 sm:$0xff]   ;;  %v603_v63 = vld [vmem:[%s3845_s14 + $0x100] sm:$0xff] }
  0x2e   : > { %1067 = vmatprep.subr.bf16.mxu0 %v3519_v20  ;;  %1258 = vmatprep.subr.bf16.mxu1 %v3564_v49  ;;  %v4053_v20 = vld [vmem:[%s5717_s4 + $0x18] sm:$0xff]   ;;  %v600_v53 = vld [vmem:[%s3845_s14 + $0xe8] sm:$0xff] }
  0x2f   : > { %v3585_v33 = vld [vmem:[%s5715_s2 + $0x1cc] ss:$16 sps:$4 sm:$0xff]  }
  0x30   : > { %v3588_v36 = vld [vmem:[%s5715_s2 + $0x1ec] ss:$16 sps:$4 sm:$0xff]  }
  0x31   : > { %1068 = vmatpush1.bf16.msra.mxu0 %v3521_v21  ;;  %1259 = vmatpush1.bf16.msra.mxu1 %v3566_v55  ;;  %v4059_v21 = vld [vmem:[%s5717_s4 + $0x60] sm:$0xff]   ;;  %v598_v48 = vld [vmem:[%s3845_s14 + $0xd8] sm:$0xff]  ;;  %v647_v55 = vpack.c.bf16 %v597_v52, %v595_v51  ;;  %v616_v13 = vld [vmem:[%s3845_s14 + $0x168] sm:$0xff]  ;;  %v5725_v51 = vlaneseq  ;;  %v3718_v52 = vmov 1966171168  }
  0x32   : > { %1069 = vmatprep.subr.bf16.mxu0 %v3522_v22  ;;  %1260 = vmatprep.subr.bf16.mxu1 %v3567_v56  ;;  %v3581_v22 = vld [vmem:[%s5715_s2 + $0x188] ss:$16 sps:$4 sm:$0xff]  }
  0x33   : > { %v602_v54 = vld [vmem:[%s3845_s14 + $0xf8] sm:$0xff] }
  0x34   : > { %v650_v56 = vpack.c.bf16 %v602_v54, %v600_v53  ;;  %v610_v2 = vld [vmem:[%s3845_s14 + $0x138] sm:$0xff]  ;;  %v1512_v53 = vunpack.c.l.s4 %v3718_v52  ;;  %v4205_v54 = vshrl.u32 %v5725_v51, 7 }
  0x35   : > { %1070 = vmatpush1.bf16.msra.mxu0 %v3524_v25  ;;  %1261 = vmatpush1.bf16.msra.mxu1 %v3569_v59  ;;  %v4074_v25 = vld [vmem:[%s5717_s4 + $0x20] sm:$0xff]   ;;  %v604_v59 = vld [vmem:[%s3845_s14 + $0x108] sm:$0xff]  ;;  %v618_v14 = vld [vmem:[%s3845_s14 + $0x178] sm:$0xff] }
  0x36   : > { %1071 = vmatprep.subr.bf16.mxu0 %v3525_v26  ;;  %1262 = vmatprep.subr.bf16.mxu1 %v3570_v60  ;;  %v4076_v26 = vpack.c.bf16 %v586_v18, %v584_v17  ;;  %v606_v60 = vld [vmem:[%s3845_s14 + $0x118] sm:$0xff]  ;;  %v615_v17 = vld [vmem:[%s3845_s14 + $0x160] sm:$0xff]  ;;  %v617_v18 = vld [vmem:[%s3845_s14 + $0x170] sm:$0xff] }
  0x37   : > { %v652_v62 = vpack.c.bf16 %v606_v60, %v604_v59 }
  0x39   : > { %1072 = vmatpush1.bf16.msra.mxu0 %v3527_v30  ;;  %1263 = vmatpush1.bf16.msra.mxu1 %v3572_v0  ;;  %v3584_v30 = vld [vmem:[%s5715_s2 + $0x1a8] ss:$16 sps:$4 sm:$0xff]   ;;  %v605_v0 = vld [vmem:[%s3845_s14 + $0x110] sm:$0xff] }
  0x3a   : > { %1073 = vmatprep.subr.bf16.mxu0 %v3528_v31  ;;  %1264 = vmatprep.subr.bf16.mxu1 %v3573_v5  ;;  %v588_v31 = vld [vmem:[%s3845_s14 + $0x88] sm:$0xff]  ;;  %v651_v3 = vpack.c.bf16 %v605_v0, %v603_v63  ;;  %v607_v5 = vld [vmem:[%s3845_s14 + $0x120] sm:$0xff] }
  0x3b   : > { %v644_v37 = vpack.c.bf16 %v590_v32, %v588_v31  ;;  %v626_v31 = vld [vmem:[%s3845_s14 + $0x1b8] sm:$0xff] }
  0x3d   : > { %1074 = vmatpush1.bf16.msra.mxu0 %v3530_v34  ;;  %1265 = vmatpush1.bf16.msra.mxu1 %v3575_v9  ;;  %v3587_v34 = vld [vmem:[%s5715_s2 + $0x1c8] ss:$16 sps:$4 sm:$0xff]  }
  0x3e   : > { %1075 = vmatprep.subr.bf16.mxu0 %v3531_v35  ;;  %1266 = vmatprep.subr.bf16.mxu1 %v3576_v11  ;;  %v641_v35 = vpack.c.bf16 %v585_v29, %v583_v28  ;;  %v611_v11 = vld [vmem:[%s3845_s14 + $0x140] sm:$0xff]  ;;  %v621_v28 = vld [vmem:[%s3845_s14 + $0x190] sm:$0xff]  ;;  %v3606_v29 = vld [vmem:[%s5717_s4 + $0x38] sm:$0xff]  }
  0x41   : > { %1076 = vmatpush1.bf16.msra.mxu0 %v3533_v38  ;;  %1267 = vmatpush1.bf16.msra.mxu1 %v3578_v15  ;;  %v587_v38 = vld [vmem:[%s3845_s14 + $0x80] sm:$0xff] }
  0x42   : > { %1077 = vmatprep.subr.bf16.mxu0 %v3534_v39  ;;  %1268 = vmatprep.subr.bf16.mxu1 %v3579_v19  ;;  %v589_v39 = vld [vmem:[%s3845_s14 + $0x90] sm:$0xff]  ;;  %v3602_v19 = vld [vmem:[%s5717_s4 + $0x28] sm:$0xff]  }
  0x45   : > { %1078 = vmatpush1.bf16.msra.mxu0 %v3536_v42  ;;  %1269 = vmatpush1.bf16.msra.mxu1 %v3581_v22  ;;  %v594_v42 = vld [vmem:[%s3845_s14 + $0xb8] sm:$0xff]  ;;  %v657_v22 = vpack.c.bf16 %v617_v18, %v615_v17  ;;  %v471_v17 = vadd.s32 40, %v4205_v54 }
  0x46   : > { %1079 = vmatprep.subr.bf16.mxu0 %v3537_v43  ;;  %1270 = vmatprep.subr.bf16.mxu1 %v3582_v24  ;;  %v643_v43 = vpack.c.bf16 %v589_v39, %v587_v38  ;;  %v646_v44 = vpack.c.bf16 %v594_v42, %v592_v41  ;;  %v630_v38 = vld [vmem:[%s3845_s14 + $0x1d8] sm:$0xff]  ;;  %v627_v41 = vld [vmem:[%s3845_s14 + $0x1c0] sm:$0xff]  ;;  %v629_v42 = vld [vmem:[%s3845_s14 + $0x1d0] sm:$0xff] }
  0x49   : > { %1080 = vmatpush1.bf16.msra.mxu0 %v3539_v46  ;;  %1271 = vmatpush1.bf16.msra.mxu1 %v3584_v30  ;;  %v593_v46 = vld [vmem:[%s3845_s14 + $0xb0] sm:$0xff]  ;;  %v624_v30 = vld [vmem:[%s3845_s14 + $0x1a8] sm:$0xff] }
  0x4a   : > { %1081 = vmatprep.subr.bf16.mxu0 %v3540_v47  ;;  %1272 = vmatprep.subr.bf16.mxu1 %v3585_v33  ;;  %v596_v47 = vld [vmem:[%s3845_s14 + $0xc8] sm:$0xff]  ;;  %v645_v49 = vpack.c.bf16 %v593_v46, %v591_v45  ;;  %v5727_v33 = vmov 0   ;;  %v663_v45 = vpack.c.bf16 %v629_v42, %v627_v41 }
  0x4b   : > { %3493 = vset.pattern.permute.xlu0 %v5727_v33  ;;  %3494 = vset.pattern.permute.xlu1 %v5727_v33 }
  0x4d   : > { %1082 = vmatpush1.bf16.msra.mxu0 %v3542_v50  ;;  %1273 = vmatpush1.bf16.msra.mxu1 %v3587_v34  ;;  %v648_v50 = vpack.c.bf16 %v598_v48, %v596_v47  ;;  %v662_v34 = vpack.c.bf16 %v626_v31, %v624_v30  ;;  %v631_v47 = vld [vmem:[%s3845_s14 + $0x1e0] sm:$0xff]  ;;  %v633_v48 = vld [vmem:[%s3845_s14 + $0x1f0] sm:$0xff] }
  0x4e   : > { %3207 = vmatprep.subr.bf16.mxu0 %v3980_v61  ;;  %1274 = vmatprep.subr.bf16.mxu1 %v3588_v36  ;;  %v625_v36 = vld [vmem:[%s3845_s14 + $0x1b0] sm:$0xff] }
  0x50   : > { %1084 = vmatmul.mubr.bf16.vlgmr.msra.gmra.mrb[0].mxu0 %v3967_v57 }
  0x51   : > { %1093 = vmatprep.mubr.bf16.mxu0 %v3969_v58  ;;  %3208 = vmatpush3.bf16.msra.mxu0 %v3990_v1 }
  0x52   : > { %3209 = vmatprep.subr.bf16.mxu0 %v3999_v4  ;;  %1275 = vmatpush1.bf16.msra.mxu1 %v3590_v40 }
  0x53   : > { %3449 = vmatprep.subr.bf16.mxu1 %v3980_v61 }
  0x55   : > { %3210 = vmatpush3.bf16.msra.mxu0 %v4009_v6  ;;  %1277 = vmatmul.mubr.bf16.vlgmr.msra.gmra.mrb[0].mxu1 %v3967_v57  ;;  %v599_v57 = vld [vmem:[%s3845_s14 + $0xe0] sm:$0xff] }
  0x56   : > { %3211 = vmatprep.subr.bf16.mxu0 %v4015_v7  ;;  %1286 = vmatprep.mubr.bf16.mxu1 %v3969_v58  ;;  %v601_v58 = vld [vmem:[%s3845_s14 + $0xf0] sm:$0xff] }
  0x57   : > { %3457 = vmatpush3.bf16.msra.mxu1 %v3990_v1  ;;  %v649_v61 = vpack.c.bf16 %v601_v58, %v599_v57  ;;  %v608_v1 = vld [vmem:[%s3845_s14 + $0x128] sm:$0xff]  ;;  %v4208_v57 = vstv %s2981_s29  ;;  %v3046_v58 = vld.sshfl [vmem:[%s5716_s3] sm:$0x33 pattern:$0x75316420] }
  0x58   : > { %1094 = vmatmul.mubr.bf16.gmra.mrb[4].mxu0 %v4017_v8  ;;  %3450 = vmatprep.subr.bf16.mxu1 %v3999_v4  ;;  %v4145_v4 = vpack.c.bf16 %v610_v2, %v608_v1  ;;  %5838 = vst [vmem:[#allocation8_spill] sm:$0xff] %v4208_v57  ;;  %v499_v60 = vadd.s32 %v4208_v57, %v4205_v54  ;;  %v468_v1 = vadd.s32 16, %v4205_v54 }
  0x59   : > { %1103 = vmatprep.mubr.bf16.mxu0 %v4022_v10  ;;  %3212 = vmatpush3.bf16.msra.mxu0 %v4031_v12 }
  0x5a   : > { %3213 = vmatprep.subr.bf16.mxu0 %v4042_v16 }
  0x5b   : > { %3458 = vmatpush3.bf16.msra.mxu1 %v4009_v6  ;;  %v609_v6 = vld [vmem:[%s3845_s14 + $0x130] sm:$0xff] }
  0x5c   : > { %3451 = vmatprep.subr.bf16.mxu1 %v4015_v7  ;;  %v612_v7 = vld [vmem:[%s3845_s14 + $0x148] sm:$0xff]  ;;  %v653_v9 = vpack.c.bf16 %v609_v6, %v607_v5  ;;  %v4234_v5 = vsub.s32 0, %v4205_v54  ;;  %v501_v6 = vadd.s32 %v4208_v57, %v468_v1 }
  0x5d   : > { %3214 = vmatpush3.bf16.msra.mxu0 %v4053_v20  ;;  %1287 = vmatmul.mubr.bf16.gmra.mrb[4].mxu1 %v4017_v8  ;;  %v614_v8 = vld [vmem:[%s3845_s14 + $0x158] sm:$0xff] }
  0x5e   : > { %3215 = vmatprep.subr.bf16.mxu0 %v4059_v21  ;;  %1296 = vmatprep.mubr.bf16.mxu1 %v4022_v10  ;;  %v4152_v10 = vpack.c.bf16 %v614_v8, %v612_v7  ;;  %5841 = vst [vmem:[#allocation11_spill] sm:$0xff] %v4234_v5 }
  0x5f   : > { %3459 = vmatpush3.bf16.msra.mxu1 %v4031_v12  ;;  %v613_v12 = vld [vmem:[%s3845_s14 + $0x150] sm:$0xff] }
  0x60   : > { %1104 = vmatmul.mubr.bf16.gmra.mrb[8].mxu0 %v4066_v23  ;;  %3452 = vmatprep.subr.bf16.mxu1 %v4042_v16  ;;  %v655_v15 = vpack.c.bf16 %v613_v12, %v611_v11  ;;  %v4159_v16 = vpack.c.bf16 %v618_v14, %v616_v13  ;;  %v470_v14 = vadd.s32 32, %v4205_v54 }
  0x61   : > { %1113 = vmatprep.mubr.bf16.mxu0 %v4076_v26  ;;  %3216 = vmatpush3.bf16.msra.mxu0 %v4074_v25 }
  0x62   : > { %3217 = vmatprep.subr.bf16.mxu0 %v4081_v27 }
  0x63   : > { %3460 = vmatpush3.bf16.msra.mxu1 %v4053_v20  ;;  %v620_v20 = vld [vmem:[%s3845_s14 + $0x188] sm:$0xff] }
  0x64   : > { %3453 = vmatprep.subr.bf16.mxu1 %v4059_v21  ;;  %v622_v21 = vld [vmem:[%s3845_s14 + $0x198] sm:$0xff] }
  0x65   : > { %1297 = vmatmul.mubr.bf16.gmra.mrb[8].mxu1 %v4066_v23  ;;  %3218 = vmatpush3.bf16.msra.mxu0 %v3602_v19  ;;  %v3603_v23 = vld [vmem:[%s5717_s4 + $0x70] sm:$0xff]   ;;  %v660_v24 = vpack.c.bf16 %v622_v21, %v620_v20 }
  0x66   : > { %1306 = vmatprep.mubr.bf16.mxu1 %v4076_v26  ;;  %3219 = vmatprep.subr.bf16.mxu0 %v3603_v23  ;;  %v3605_v26 = vld [vmem:[%s5717_s4 + $0x78] sm:$0xff]  }
  0x67   : > { %3461 = vmatpush3.bf16.msra.mxu1 %v4074_v25  ;;  %v3604_v25 = vld [vmem:[%s5717_s4 + $0x30] sm:$0xff]  }
  0x68   : > { %1114 = vmatmul.mubr.bf16.gmra.mrb[12].mxu0 %v641_v35  ;;  %3454 = vmatprep.subr.bf16.mxu1 %v4081_v27  ;;  %v619_v27 = vld [vmem:[%s3845_s14 + $0x180] sm:$0xff] }
  0x69   : > { %1123 = vmatprep.mubr.bf16.mxu0 %v644_v37  ;;  %3220 = vmatpush3.bf16.msra.mxu0 %v3604_v25  ;;  %v659_v32 = vpack.c.bf16 %v621_v28, %v619_v27 }
  0x6a   : > { %3221 = vmatprep.subr.bf16.mxu0 %v3605_v26 }
  0x6b   : > { %3462 = vmatpush3.bf16.msra.mxu1 %v3602_v19 }
  0x6c   : > { %3455 = vmatprep.subr.bf16.mxu1 %v3603_v23  ;;  %v503_v23 = vadd.s32 %v4208_v57, %v470_v14 }
  0x6d   : > { %1307 = vmatmul.mubr.bf16.gmra.mrb[12].mxu1 %v641_v35  ;;  %3222 = vmatpush3.bf16.msra.mxu0 %v3606_v29  ;;  %v623_v35 = vld [vmem:[%s3845_s14 + $0x1a0] sm:$0xff] }
  0x6e   : > { %1316 = vmatprep.mubr.bf16.mxu1 %v644_v37  ;;  %v628_v37 = vld [vmem:[%s3845_s14 + $0x1c8] sm:$0xff]  ;;  %v661_v39 = vpack.c.bf16 %v625_v36, %v623_v35  ;;  %v473_v36 = vadd.s32 56, %v4205_v54 }
  0x6f   : > { %3463 = vmatpush3.bf16.msra.mxu1 %v3604_v25  ;;  %v664_v40 = vpack.c.bf16 %v630_v38, %v628_v37  ;;  %v504_v25 = vadd.s32 %v4208_v57, %v471_v17 }
  0x70   : > { %1124 = vmatmul.mubr.bf16.gmra.mrb[16].mxu0 %v643_v43  ;;  %3456 = vmatprep.subr.bf16.mxu1 %v3605_v26 }
  0x71   : > { %1133 = vmatprep.mubr.bf16.mxu0 %v646_v44 }
  0x73   : > { %3464 = vmatpush3.bf16.msra.mxu1 %v3606_v29 }
  0x75   : > { %1317 = vmatmul.mubr.bf16.gmra.mrb[16].mxu1 %v643_v43  ;;  %v632_v43 = vld [vmem:[%s3845_s14 + $0x1e8] sm:$0xff] }
  0x76   : > { %1326 = vmatprep.mubr.bf16.mxu1 %v646_v44  ;;  %v634_v44 = vld [vmem:[%s3845_s14 + $0x1f8] sm:$0xff]  ;;  %s450_s14 = sld [smem:[#allocation6]] }
  0x77   : > { %v666_v46 = vpack.c.bf16 %v634_v44, %v632_v43  ;;  %v506_v44 = vadd.s32 %v4208_v57, %v473_v36 }
  0x78   : > { %1134 = vmatmul.mubr.bf16.gmra.mrb[20].mxu0 %v645_v49 }
  0x79   : > { %1143 = vmatprep.mubr.bf16.mxu0 %v648_v50 }
  0x7c   : > { %v4219_v63 = vstv %s450_s14  ;;  %s446_s14 = scalar_lea.vmem %s5724_s11, %s2980_s26 }
  0x7d   : > { %1327 = vmatmul.mubr.bf16.gmra.mrb[20].mxu1 %v645_v49  ;;  %v665_v49 = vpack.c.bf16 %v633_v48, %v631_v47  ;;  %5840 = vst [vmem:[#allocation10_spill] sm:$0xff] %v4219_v63  ;;  %vm532_vm0 = vcmp.lt.s32.totalorder %v499_v60, %v4219_v63  ;;  %vm534_vm4 = vcmp.lt.s32.totalorder %v501_v6, %v4219_v63 }
  0x7e   : > { %1336 = vmatprep.mubr.bf16.mxu1 %v648_v50  ;;  %v3607_v50 = vld [vmem:[%s5717_s4 + $0xc0] sm:$0xff]   ;;  %vm1747_vm2 = vmpackc.low %vm532_vm0, %vm532_vm0  ;;  %vm536_vm9 = vcmp.lt.s32.totalorder %v503_v23, %v4219_v63  ;;  %vm537_vm10 = vcmp.lt.s32.totalorder %v504_v25, %v4219_v63  ;;  %vm539_vm15 = vcmp.lt.s32.totalorder %v506_v44, %v4219_v63 }
  0x7f   : > { %3319 = vmatprep.subr.bf16.mxu1 %v3607_v50  ;;  %vm1749_vm6 = vmpackc.low %vm534_vm4, %vm534_vm4 }
  0x80   : > { %1144 = vmatmul.mubr.bf16.gmra.mrb[24].mxu0 %v647_v55  ;;  %v1781_v29 = vsel %vm1749_vm6, 65537, %v5727_v33  ;;  %vm1751_vm11 = vmpackc.low %vm536_vm9, %vm536_vm9 }
  0x81   : > { %1153 = vmatprep.mubr.bf16.mxu0 %v650_v56  ;;  %vm1752_vm12 = vmpackc.low %vm537_vm10, %vm537_vm10  ;;  %v1783_v48 = vsel %vm1751_vm11, 65537, %v5727_v33 }
  0x85   : > { %1337 = vmatmul.mubr.bf16.gmra.mrb[24].mxu1 %v647_v55  ;;  %v1513_v55 = vunpack.c.0.s8 %v1512_v53  ;;  %v474_v53 = vadd.s32 64, %v4205_v54 }
  0x86   : > { %1346 = vmatprep.mubr.bf16.mxu1 %v650_v56  ;;  %v467_v56 = vadd.s32 8, %v4205_v54 }
  0x87   : > { %v4214_v59 = vsub.s32 %v1513_v55, %v4205_v54 }
  0x88   : > { %1154 = vmatmul.mubr.bf16.gmra.mrb[28].mxu0 %v649_v61 }
  0x89   : > { %1163 = vmatprep.mubr.bf16.mxu0 %v652_v62  ;;  %5839 = vst [vmem:[#allocation9_spill] sm:$0xff] %v4214_v59  ;;  %v4222_v0 = vrot.slane %v3046_v58, %v4214_v59 }
  0x8d   : > { %1347 = vmatmul.mubr.bf16.gmra.mrb[28].mxu1 %v649_v61  ;;  %v1510_v61 = vcombine.high %v3046_v58, %v3046_v58 }
  0x8e   : > { %1356 = vmatprep.mubr.bf16.mxu1 %v652_v62  ;;  %v500_v62 = vadd.s32 %v4208_v57, %v467_v56  ;;  %v475_v56 = vadd.s32 72, %v4205_v54 }
  0x8f   : > { %v4227_v2 = vrot.slane %v1510_v61, %v4214_v59 }
  0x90   : > { %1164 = vmatmul.mubr.bf16.gmra.mrb[32].mxu0 %v651_v3  ;;  %vm533_vm1 = vcmp.lt.s32.totalorder %v500_v62, %v4219_v63  ;;  %v508_v6 = vadd.s32 %v4208_v57, %v475_v56 }
  0x91   : > { %1173 = vmatprep.mubr.bf16.mxu0 %v4145_v4  ;;  %vm1748_vm3 = vmpackc.low %vm533_vm1, %vm533_vm1  ;;  %v1535_v7 = vpack.i.b16 %v4227_v2, %v4227_v2 }
  0x92   : > { %v1780_v11 = vsel %vm1748_vm3, 65537, %v5727_v33  ;;  %vm1754_vm1 = vmpackc.low %vm539_vm15, %vm539_vm15  ;;  %vm541_vm4 = vcmp.lt.s32.totalorder %v508_v6, %v4219_v63 }
  0x93   : > { %vm1756_vm6 = vmpackc.low %vm541_vm4, %vm541_vm4 }
  0x95   : > { %1357 = vmatmul.mubr.bf16.gmra.mrb[32].mxu1 %v651_v3  ;;  %v469_v3 = vadd.s32 24, %v4205_v54 }
  0x96   : > { %1366 = vmatprep.mubr.bf16.mxu1 %v4145_v4  ;;  %v1528_v4 = vpack.i.b16 %v4222_v0, %v4222_v0 }
  0x97   : > { %v502_v8 = vadd.s32 %v4208_v57, %v469_v3  ;;  %v507_v3 = vadd.s32 %v4208_v57, %v474_v53 }
  0x98   : > { %1174 = vmatmul.mubr.bf16.gmra.mrb[36].mxu0 %v653_v9  ;;  %v4243_v13 = vrot.slane %v1528_v4, %v4234_v5 }
  0x99   : > { %1183 = vmatprep.mubr.bf16.mxu0 %v4152_v10  ;;  %vm535_vm5 = vcmp.lt.s32.totalorder %v502_v8, %v4219_v63  ;;  %vm540_vm3 = vcmp.lt.s32.totalorder %v507_v3, %v4219_v63 }
  0x9a   : > { %vm1750_vm7 = vmpackc.low %vm535_vm5, %vm535_vm5 }
  0x9b   : > { %v1782_v30 = vsel %vm1750_vm7, 65537, %v5727_v33  ;;  %vm1755_vm5 = vmpackc.low %vm540_vm3, %vm540_vm3 }
  0x9d   : > { %1367 = vmatmul.mubr.bf16.gmra.mrb[36].mxu1 %v653_v9 }
  0x9e   : > { %1376 = vmatprep.mubr.bf16.mxu1 %v4152_v10  ;;  %v1779_v10 = vsel %vm1747_vm2, 65537, %v5727_v33 }
  0x9f   : > { %v3047_v20 = vcombine.low %v1779_v10, %v1780_v11  ;;  %v1786_v11 = vsel %vm1754_vm1, 65537, %v5727_v33 }
  0xa0   : > { %1184 = vmatmul.mubr.bf16.gmra.mrb[40].mxu0 %v655_v15 }
  0xa1   : > { %1193 = vmatprep.mubr.bf16.mxu0 %v4159_v16  ;;  %vm4256_vm8 = vcmp.ne.s16.totalorder %v3047_v20, 0 }
  0xa5   : > { %1377 = vmatmul.mubr.bf16.gmra.mrb[40].mxu1 %v655_v15 }
  0xa6   : > { %1386 = vmatprep.mubr.bf16.mxu1 %v4159_v16  ;;  %v4248_v16 = vrot.slane %v1535_v7, %v4234_v5 }
  0xa8   : > { %1194 = vmatmul.mubr.bf16.gmra.mrb[44].mxu0 %v657_v22 }
  0xa9   : > { %1203 = vmatprep.mubr.bf16.mxu0 %v660_v24 }
  0xad   : > { %1387 = vmatmul.mubr.bf16.gmra.mrb[44].mxu1 %v657_v22 }
  0xae   : > { %1396 = vmatprep.mubr.bf16.mxu1 %v660_v24 }
  0xb0   : > { %1204 = vmatmul.mubr.bf16.gmra.mrb[48].mxu0 %v659_v32 }
  0xb1   : > { %1213 = vmatprep.mubr.bf16.mxu0 %v662_v34 }
  0xb5   : > { %1397 = vmatmul.mubr.bf16.gmra.mrb[48].mxu1 %v659_v32 }
  0xb6   : > { %1406 = vmatprep.mubr.bf16.mxu1 %v662_v34  ;;  %v472_v34 = vadd.s32 48, %v4205_v54 }
  0xb8   : > { %1214 = vmatmul.mubr.bf16.gmra.mrb[52].mxu0 %v661_v39  ;;  %v505_v42 = vadd.s32 %v4208_v57, %v472_v34  ;;  %v1787_v34 = vsel %vm1755_vm5, 65537, %v5727_v33 }
  0xb9   : > { %1223 = vmatprep.mubr.bf16.mxu0 %v664_v40 }
  0xba   : > { %vm538_vm14 = vcmp.lt.s32.totalorder %v505_v42, %v4219_v63  ;;  %v479_v42 = vadd.s32 104, %v4205_v54 }
  0xbb   : > { %vm1753_vm0 = vmpackc.low %vm538_vm14, %vm538_vm14 }
  0xbc   : > { %v1785_v10 = vsel %vm1753_vm0, 65537, %v5727_v33 }
  0xbd   : > { %1407 = vmatmul.mubr.bf16.gmra.mrb[52].mxu1 %v661_v39  ;;  %v3048_v39 = vcombine.low %v1781_v29, %v1782_v30 }
  0xbe   : > { %1416 = vmatprep.mubr.bf16.mxu1 %v664_v40 }
  0xbf   : > { %vm4282_vm13 = vcmp.ne.s16.totalorder %v3048_v39, 0  ;;  %v478_v39 = vadd.s32 96, %v4205_v54 }
  0xc0   : > { %1224 = vmatmul.mubr.bf16.gmra.mrb[56].mxu0 %v663_v45 }
  0xc1   : > { %1233 = vmatprep.mubr.bf16.mxu0 %v666_v46 }
  0xc5   : > { %1417 = vmatmul.mubr.bf16.gmra.mrb[56].mxu1 %v663_v45 }
  0xc6   : > { %1426 = vmatprep.mubr.bf16.mxu1 %v666_v46 }
  0xc8   : > { %1234 = vmatmul.mubr.bf16.gmra.mrb[60].mxu0 %v665_v49 }
  0xcd   : > { %1427 = vmatmul.mubr.bf16.gmra.mrb[60].mxu1 %v665_v49  ;;  %v1784_v49 = vsel %vm1752_vm12, 65537, %v5727_v33 }
  0xce   : > { %v3049_v61 = vcombine.low %v1783_v48, %v1784_v49 }
  0xd0   : > { %vm4308_vm2 = vcmp.ne.s16.totalorder %v3049_v61, 0  ;;  %v512_v61 = vadd.s32 %v4208_v57, %v479_v42 }
  0xd2   : > { %vm545_vm0 = vcmp.lt.s32.totalorder %v512_v61, %v4219_v63 }
  0xd3   : > { %vm1760_vm3 = vmpackc.low %vm545_vm0, %vm545_vm0 }
 0x123   : > { %v1085_v9 = vpop.f32.mrb[0].mxu0 }
 0x124   : > { %v1087_v12 = vpop.f32.mrb[1].mxu0 }
 0x125   : > { %v1089_v15 = vpop.f32.mrb[2].mxu0 }
 0x126   : > { %v1437_v18 = vpack.c.bf16 %v1089_v15, %v1085_v9  ;;  %v1091_v19 = vpop.f32.mrb[3].mxu0  ;;  %v476_v15 = vadd.s32 80, %v4205_v54 }
 0x127   : > { %v1438_v21 = vpack.c.bf16 %v1091_v19, %v1087_v12 }
 0x128   : > { %v1555_v22 = vadd.bf16 %v4243_v13, %v1437_v18  ;;  %v477_v18 = vadd.s32 88, %v4205_v54  ;;  %v4343_v36 = vpop.f32.mrb[0].mxu1 }
 0x129   : > { %v1556_v24 = vadd.bf16 %v4248_v16, %v1438_v21  ;;  %v3050_v21 = vcombine.low %v1785_v10, %v1786_v11 }
 0x12a   : > { %v4266_v31 = vmax.bf16 %v5727_v33, %v1555_v22 }
 0x12b   : > { %v4261_v27 = vmax.bf16 %v5727_v33, %v1556_v24  ;;  %v1095_v28 = vpop.f32.mrb[4].mxu0  ;;  %v509_v24 = vadd.s32 %v4208_v57, %v476_v15  ;;  %vm4334_vm7 = vcmp.ne.s16.totalorder %v3050_v21, 0 }
 0x12c   : > { %v1097_v32 = vpop.f32.mrb[5].mxu0 }
 0x12d   : > { %v1099_v35 = vpop.f32.mrb[6].mxu0  ;;  %3096 = vmatprep.mubr.msk.bf16.mxu0 %vm4256_vm8, %v4261_v27  ;;  %vm542_vm9 = vcmp.lt.s32.totalorder %v509_v24, %v4219_v63 }
 0x12e   : > { %v1441_v37 = vpack.c.bf16 %v1099_v35, %v1095_v28  ;;  %v1101_v38 = vpop.f32.mrb[7].mxu0  ;;  %3097 = vmatmul.mubr.msk.bf16.vlgmr.msra.gmra.mrb[64].mxu0 %vm4256_vm8, %v4266_v31  ;;  %v510_v28 = vadd.s32 %v4208_v57, %v477_v18  ;;  %v1788_v35 = vsel %vm1756_vm6, 65537, %v5727_v33  ;;  %vm1757_vm11 = vmpackc.low %vm542_vm9, %vm542_vm9  ;;  %v481_v18 = vadd.s32 120, %v4205_v54 }
 0x12f   : > { %v1442_v40 = vpack.c.bf16 %v1101_v38, %v1097_v32  ;;  %v3051_v48 = vcombine.low %v1787_v34, %v1788_v35 }
 0x130   : > { %v1559_v41 = vadd.bf16 %v4243_v13, %v1441_v37  ;;  %vm543_vm10 = vcmp.lt.s32.totalorder %v510_v28, %v4219_v63 }
 0x131   : > { %v1560_v43 = vadd.bf16 %v4248_v16, %v1442_v40  ;;  %v4350_v40 = vpop.f32.mrb[1].mxu1  ;;  %vm1758_vm12 = vmpackc.low %vm543_vm10, %vm543_vm10  ;;  %vm4372_vm14 = vcmp.ne.s16.totalorder %v3051_v48, 0 }
 0x132   : > { %v4292_v50 = vmax.bf16 %v5727_v33, %v1559_v41  ;;  %v1790_v6 = vsel %vm1758_vm12, 65537, %v5727_v33 }
 0x133   : > { %v4287_v46 = vmax.bf16 %v5727_v33, %v1560_v43  ;;  %v1105_v47 = vpop.f32.mrb[8].mxu0  ;;  %v4357_v43 = vpop.f32.mrb[2].mxu1 }
 0x134   : > { %v1107_v52 = vpop.f32.mrb[9].mxu0 }
 0x135   : > { %v1109_v55 = vpop.f32.mrb[10].mxu0  ;;  %3098 = vmatprep.mubr.msk.bf16.mxu0 %vm4282_vm13, %v4287_v46 }
 0x136   : > { %v1445_v58 = vpack.c.bf16 %v1109_v55, %v1105_v47  ;;  %v1111_v60 = vpop.f32.mrb[11].mxu0  ;;  %3099 = vmatmul.mubr.msk.bf16.gmra.mrb[68].mxu0 %vm4282_vm13, %v4292_v50 }
 0x137   : > { %v1446_v62 = vpack.c.bf16 %v1111_v60, %v1107_v52  ;;  %v4364_v52 = vpop.f32.mrb[3].mxu1 }
 0x138   : > { %v1563_v1 = vadd.bf16 %v4243_v13, %v1445_v58  ;;  %v511_v58 = vadd.s32 %v4208_v57, %v478_v39  ;;  %v5853_v39 = vmov 0 }
 0x139   : > { %v1564_v4 = vadd.bf16 %v4248_v16, %v1446_v62  ;;  %v5850_v62 = vmov 0 }
 0x13a   : > { %v4318_v12 = vmax.bf16 %v5727_v33, %v1563_v1  ;;  %v5851_v62 = vsel %vm4372_vm14, 4294967295, %v5850_v62  ;;  %vm544_vm15 = vcmp.lt.s32.totalorder %v511_v58, %v4219_v63  ;;  %v482_v58 = vadd.s32 128, %v4205_v54 }
 0x13b   : > { %v4313_v8 = vmax.bf16 %v5727_v33, %v1564_v4  ;;  %v1115_v9 = vpop.f32.mrb[12].mxu0  ;;  %5852 = vst [vmem:[#allocation12_spill] sm:$0xff] %v5851_v62  ;;  %v1789_v4 = vsel %vm1757_vm11, 65537, %v5727_v33  ;;  %vm1759_vm1 = vmpackc.low %vm544_vm15, %vm544_vm15 }
 0x13c   : > { %v1117_v14 = vpop.f32.mrb[13].mxu0 }
 0x13d   : > { %v1119_v17 = vpop.f32.mrb[14].mxu0  ;;  %3100 = vmatprep.mubr.msk.bf16.mxu0 %vm4308_vm2, %v4313_v8 }
 0x13e   : > { %v1449_v19 = vpack.c.bf16 %v1119_v17, %v1115_v9  ;;  %v1121_v20 = vpop.f32.mrb[15].mxu0  ;;  %3101 = vmatmul.mubr.msk.bf16.gmra.mrb[72].mxu0 %vm4308_vm2, %v4318_v12  ;;  %v4381_v9 = vpop.f32.mrb[4].mxu1 }
 0x13f   : > { %v1450_v22 = vpack.c.bf16 %v1121_v20, %v1117_v14  ;;  %v480_v14 = vadd.s32 112, %v4205_v54  ;;  %v4388_v15 = vpop.f32.mrb[5].mxu1 }
 0x140   : > { %v1567_v23 = vadd.bf16 %v4243_v13, %v1449_v19  ;;  %v4395_v19 = vpop.f32.mrb[6].mxu1 }
 0x141   : > { %v1568_v25 = vadd.bf16 %v4248_v16, %v1450_v22  ;;  %v3052_v22 = vcombine.low %v1789_v4, %v1790_v6  ;;  %v4402_v24 = vpop.f32.mrb[7].mxu1  ;;  %v513_v34 = vadd.s32 %v4208_v57, %v480_v14 }
 0x142   : > { %v4346_v37 = vmax.bf16 %v5727_v33, %v1567_v23  ;;  %v4419_v48 = vpop.f32.mrb[8].mxu1 }
 0x143   : > { %v4339_v30 = vmax.bf16 %v5727_v33, %v1568_v25  ;;  %v1125_v32 = vpop.f32.mrb[16].mxu0  ;;  %vm4410_vm4 = vcmp.ne.s16.totalorder %v3052_v22, 0  ;;  %vm546_vm5 = vcmp.lt.s32.totalorder %v513_v34, %v4219_v63 }
 0x144   : > { %v1127_v38 = vpop.f32.mrb[17].mxu0  ;;  %v5854_v39 = vsel %vm4410_vm4, 4294967295, %v5853_v39  ;;  %vm1761_vm9 = vmpackc.low %vm546_vm5, %vm546_vm5 }
 0x145   : > { %v1129_v41 = vpop.f32.mrb[18].mxu0  ;;  %3102 = vmatprep.mubr.msk.bf16.mxu0 %vm4334_vm7, %v4339_v30  ;;  %5855 = vst [vmem:[#allocation13_spill] sm:$0xff] %v5854_v39 }
 0x146   : > { %v1453_v44 = vpack.c.bf16 %v1129_v41, %v1125_v32  ;;  %v1131_v47 = vpop.f32.mrb[19].mxu0  ;;  %3103 = vmatmul.mubr.msk.bf16.gmra.mrb[76].mxu0 %vm4334_vm7, %v4346_v37 }
 0x147   : > { %v1454_v53 = vpack.c.bf16 %v1131_v47, %v1127_v38  ;;  %v514_v38 = vadd.s32 %v4208_v57, %v481_v18  ;;  %v1792_v47 = vsel %vm1760_vm3, 65537, %v5727_v33 }
 0x148   : > { %v1571_v56 = vadd.bf16 %v4243_v13, %v1453_v44  ;;  %v1791_v44 = vsel %vm1759_vm1, 65537, %v5727_v33 }
 0x149   : > { %v1572_v60 = vadd.bf16 %v4248_v16, %v1454_v53  ;;  %vm547_vm6 = vcmp.lt.s32.totalorder %v514_v38, %v4219_v63  ;;  %v3053_v14 = vcombine.low %v1791_v44, %v1792_v47  ;;  %v1793_v44 = vsel %vm1761_vm9, 65537, %v5727_v33 }
 0x14a   : > { %v4384_v10 = vmax.bf16 %v5727_v33, %v1571_v56  ;;  %vm1762_vm10 = vmpackc.low %vm547_vm6, %vm547_vm6 }
 0x14b   : > { %v4377_v1 = vmax.bf16 %v5727_v33, %v1572_v60  ;;  %v1135_v3 = vpop.f32.mrb[20].mxu0  ;;  %v4426_v60 = vpop.f32.mrb[9].mxu1  ;;  %vm4448_vm11 = vcmp.ne.s16.totalorder %v3053_v14, 0  ;;  %v1794_v47 = vsel %vm1762_vm10, 65537, %v5727_v33  ;;  %v485_v14 = vadd.s32 152, %v4205_v54 }
 0x14c   : > { %v1137_v11 = vpop.f32.mrb[21].mxu0  ;;  %v4433_v4 = vpop.f32.mrb[10].mxu1 }
 0x14d   : > { %v1139_v17 = vpop.f32.mrb[22].mxu0  ;;  %3104 = vmatprep.mubr.msk.bf16.mxu0 %vm4372_vm14, %v4377_v1  ;;  %v4440_v18 = vpop.f32.mrb[11].mxu1  ;;  %v518_v49 = vadd.s32 %v4208_v57, %v485_v14  ;;  %v486_v14 = vadd.s32 160, %v4205_v54 }
 0x14e   : > { %v1457_v20 = vpack.c.bf16 %v1139_v17, %v1135_v3  ;;  %v1141_v21 = vpop.f32.mrb[23].mxu0  ;;  %3105 = vmatmul.mubr.msk.bf16.gmra.mrb[80].mxu0 %vm4372_vm14, %v4384_v10  ;;  %v483_v3 = vadd.s32 136, %v4205_v54 }
 0x14f   : > { %v1458_v25 = vpack.c.bf16 %v1141_v21, %v1137_v11  ;;  %vm551_vm6 = vcmp.lt.s32.totalorder %v518_v49, %v4219_v63 }
 0x150   : > { %v1575_v32 = vadd.bf16 %v4243_v13, %v1457_v20  ;;  %v516_v34 = vadd.s32 %v4208_v57, %v483_v3  ;;  %v484_v3 = vadd.s32 144, %v4205_v54  ;;  %vm1766_vm10 = vmpackc.low %vm551_vm6, %vm551_vm6 }
 0x151   : > { %v1576_v35 = vadd.bf16 %v4248_v16, %v1458_v25  ;;  %v515_v25 = vadd.s32 %v4208_v57, %v482_v58 }
 0x152   : > { %v4422_v53 = vmax.bf16 %v5727_v33, %v1575_v32  ;;  %vm549_vm15 = vcmp.lt.s32.totalorder %v516_v34, %v4219_v63 }
 0x153   : > { %v4415_v41 = vmax.bf16 %v5727_v33, %v1576_v35  ;;  %v1145_v42 = vpop.f32.mrb[24].mxu0  ;;  %v5858_v35 = vmov 0  ;;  %vm548_vm12 = vcmp.lt.s32.totalorder %v515_v25, %v4219_v63  ;;  %v3054_v25 = vcombine.low %v1793_v44, %v1794_v47  ;;  %vm1764_vm1 = vmpackc.low %vm549_vm15, %vm549_vm15 }
 0x154   : > { %5857 = vst [vmem:[#allocation15_spill] sm:$0xff] %v4422_v53  ;;  %v1147_v56 = vpop.f32.mrb[25].mxu0  ;;  %v5859_v35 = vsel %vm4448_vm11, 4294967295, %v5858_v35  ;;  %vm1763_vm0 = vmpackc.low %vm548_vm12, %vm548_vm12  ;;  %v5864_v44 = vmov 0  ;;  %v1796_v51 = vsel %vm1764_vm1, 65537, %v5727_v33 }
 0x155   : > { %5856 = vst [vmem:[#allocation14_spill] sm:$0xff] %v4415_v41  ;;  %v1149_v61 = vpop.f32.mrb[26].mxu0  ;;  %3106 = vmatprep.mubr.msk.bf16.mxu0 %vm4410_vm4, %v4415_v41  ;;  %5860 = vst [vmem:[#allocation16_spill] sm:$0xff] %v5859_v35  ;;  %vm4486_vm3 = vcmp.ne.s16.totalorder %v3054_v25, 0 }
 0x156   : > { %v1461_v6 = vpack.c.bf16 %v1149_v61, %v1145_v42  ;;  %v1151_v11 = vpop.f32.mrb[27].mxu0  ;;  %3107 = vmatmul.mubr.msk.bf16.gmra.mrb[84].mxu0 %vm4410_vm4, %v4422_v53  ;;  %v5865_v44 = vsel %vm4486_vm3, 4294967295, %v5864_v44 }
 0x157   : > { %v1462_v20 = vpack.c.bf16 %v1151_v11, %v1147_v56  ;;  %v4457_v56 = vpop.f32.mrb[12].mxu1  ;;  %5866 = vst [vmem:[#allocation20_spill] sm:$0xff] %v5865_v44 }
 0x158   : > { %v1579_v22 = vadd.bf16 %v4243_v13, %v1461_v6  ;;  %5862 = vst [vmem:[#allocation18_spill] sm:$0xff] %v4457_v56  ;;  %v4464_v6 = vpop.f32.mrb[13].mxu1 }
 0x159   : > { %v1580_v32 = vadd.bf16 %v4248_v16, %v1462_v20  ;;  %v4471_v20 = vpop.f32.mrb[14].mxu1 }
 0x15a   : > { %v4460_v58 = vmax.bf16 %v5727_v33, %v1579_v22  ;;  %v4478_v17 = vpop.f32.mrb[15].mxu1 }
 0x15b   : > { %v4453_v38 = vmax.bf16 %v5727_v33, %v1580_v32  ;;  %v1155_v42 = vpop.f32.mrb[28].mxu0 }
 0x15c   : > { %5863 = vst [vmem:[#allocation19_spill] sm:$0xff] %v4460_v58  ;;  %v1157_v61 = vpop.f32.mrb[29].mxu0 }
 0x15d   : > { %5861 = vst [vmem:[#allocation17_spill] sm:$0xff] %v4453_v38  ;;  %v1159_v11 = vpop.f32.mrb[30].mxu0  ;;  %3108 = vmatprep.mubr.msk.bf16.mxu0 %vm4448_vm11, %v4453_v38 }
 0x15e   : > { %v1465_v22 = vpack.c.bf16 %v1159_v11, %v1155_v42  ;;  %v1161_v32 = vpop.f32.mrb[31].mxu0  ;;  %3109 = vmatmul.mubr.msk.bf16.gmra.mrb[88].mxu0 %vm4448_vm11, %v4460_v58  ;;  %v517_v42 = vadd.s32 %v4208_v57, %v484_v3 }
 0x15f   : > { %v1466_v23 = vpack.c.bf16 %v1161_v32, %v1157_v61  ;;  %v1795_v32 = vsel %vm1763_vm0, 65537, %v5727_v33 }
 0x160   : > { %v1583_v21 = vadd.bf16 %v4243_v13, %v1465_v22  ;;  %v4495_v22 = vpop.f32.mrb[16].mxu1  ;;  %vm550_vm5 = vcmp.lt.s32.totalorder %v517_v42, %v4219_v63  ;;  %v3055_v42 = vcombine.low %v1795_v32, %v1796_v51  ;;  %v5871_v51 = vmov 0 }
 0x161   : > { %v1584_v11 = vadd.bf16 %v4248_v16, %v1466_v23  ;;  %5868 = vst [vmem:[#allocation22_spill] sm:$0xff] %v4495_v22  ;;  %v4502_v25 = vpop.f32.mrb[17].mxu1  ;;  %vm1765_vm9 = vmpackc.low %vm550_vm5, %vm550_vm5  ;;  %v5874_v32 = vmov 0  }
 0x162   : > { %v4498_v3 = vmax.bf16 %v5727_v33, %v1583_v21  ;;  %v4509_v28 = vpop.f32.mrb[18].mxu1  ;;  %vm4524_vm12 = vcmp.ne.s16.totalorder %v3055_v42, 0  ;;  %v1798_v49 = vsel %vm1766_vm10, 65537, %v5874_v32 }
 0x163   : > { %v4491_v47 = vmax.bf16 %v5727_v33, %v1584_v11  ;;  %v1165_v61 = vpop.f32.mrb[32].mxu0  ;;  %v487_v11 = vadd.s32 168, %v4205_v54  ;;  %5870 = vst [vmem:[#allocation24_spill] sm:$0xff] %v4509_v28  ;;  %v4516_v59 = vpop.f32.mrb[19].mxu1  ;;  %v5872_v51 = vsel %vm4524_vm12, 4294967295, %v5871_v51 }
 0x164   : > { %5869 = vst [vmem:[#allocation23_spill] sm:$0xff] %v4498_v3  ;;  %v1167_v23 = vpop.f32.mrb[33].mxu0  ;;  %5873 = vst [vmem:[#allocation25_spill] sm:$0xff] %v5872_v51 }
 0x165   : > { %5867 = vst [vmem:[#allocation21_spill] sm:$0xff] %v4491_v47  ;;  %v1169_v34 = vpop.f32.mrb[34].mxu0  ;;  %3110 = vmatprep.mubr.msk.bf16.mxu0 %vm4486_vm3, %v4491_v47 }
 0x166   : > { %v1469_v21 = vpack.c.bf16 %v1169_v34, %v1165_v61  ;;  %v1171_v55 = vpop.f32.mrb[35].mxu0  ;;  %3111 = vmatmul.mubr.msk.bf16.gmra.mrb[92].mxu0 %vm4486_vm3, %v4498_v3  ;;  %v519_v34 = vadd.s32 %v4208_v57, %v486_v14  ;;  %v520_v3 = vadd.s32 %v4208_v57, %v487_v11  ;;  %v488_v11 = vadd.s32 176, %v4205_v54 }
 0x167   : > { %v1470_v58 = vpack.c.bf16 %v1171_v55, %v1167_v23  ;;  %v1797_v23 = vsel %vm1765_vm9, 65537, %v5874_v32 }
 0x168   : > { %v1587_v47 = vadd.bf16 %v4243_v13, %v1469_v21  ;;  %v4533_v21 = vpop.f32.mrb[20].mxu1  ;;  %vm552_vm15 = vcmp.lt.s32.totalorder %v519_v34, %v4219_v63  ;;  %vm553_vm0 = vcmp.lt.s32.totalorder %v520_v3, %v4219_v63  ;;  %v3056_v34 = vcombine.low %v1797_v23, %v1798_v49 }
 0x169   : > { %v1588_v61 = vadd.bf16 %v4248_v16, %v1470_v58  ;;  %5876 = vst [vmem:[#allocation27_spill] sm:$0xff] %v4533_v21  ;;  %v4540_v42 = vpop.f32.mrb[21].mxu1  ;;  %vm1767_vm1 = vmpackc.low %vm552_vm15, %vm552_vm15  ;;  %v5881_v49 = vmov 0 }
 0x16a   : > { %v4536_v14 = vmax.bf16 %v5874_v32, %v1587_v47  ;;  %5878 = vst [vmem:[#allocation29_spill] sm:$0xff] %v4540_v42  ;;  %v4547_v22 = vpop.f32.mrb[22].mxu1  ;;  %vm1768_vm5 = vmpackc.low %vm553_vm0, %vm553_vm0  ;;  %vm4562_vm6 = vcmp.ne.s16.totalorder %v3056_v34, 0 }
 0x16b   : > { %v4529_v33 = vmax.bf16 %v5874_v32, %v1588_v61  ;;  %v1175_v55 = vpop.f32.mrb[36].mxu0  ;;  %v489_v61 = vadd.s32 184, %v4205_v54  ;;  %5879 = vst [vmem:[#allocation30_spill] sm:$0xff] %v4547_v22  ;;  %v4554_v38 = vpop.f32.mrb[23].mxu1  ;;  %v5882_v49 = vsel %vm4562_vm6, 4294967295, %v5881_v49  ;;  %v1800_v35 = vsel %vm1768_vm5, 65537, %v5874_v32 }
 0x16c   : > { %5877 = vst [vmem:[#allocation28_spill] sm:$0xff] %v4536_v14  ;;  %v1177_v58 = vpop.f32.mrb[37].mxu0  ;;  %5880 = vst [vmem:[#allocation31_spill] sm:$0xff] %v4554_v38 }
 0x16d   : > { %5875 = vst [vmem:[#allocation26_spill] sm:$0xff] %v4529_v33  ;;  %v1179_v44 = vpop.f32.mrb[38].mxu0  ;;  %3112 = vmatprep.mubr.msk.bf16.mxu0 %vm4524_vm12, %v4529_v33  ;;  %5883 = vst [vmem:[#allocation32_spill] sm:$0xff] %v5882_v49 }
 0x16e   : > { %v1473_v47 = vpack.c.bf16 %v1179_v44, %v1175_v55  ;;  %v1181_v28 = vpop.f32.mrb[39].mxu0  ;;  %3113 = vmatmul.mubr.msk.bf16.gmra.mrb[96].mxu0 %vm4524_vm12, %v4536_v14  ;;  %v521_v44 = vadd.s32 %v4208_v57, %v488_v11  ;;  %v522_v14 = vadd.s32 %v4208_v57, %v489_v61  ;;  %v490_v61 = vadd.s32 192, %v4205_v54 }
 0x16f   : > { %v1474_v53 = vpack.c.bf16 %v1181_v28, %v1177_v58  ;;  %v1799_v58 = vsel %vm1767_vm1, 65537, %v5874_v32 }
 0x170   : > { %v1591_v33 = vadd.bf16 %v4243_v13, %v1473_v47  ;;  %v4571_v47 = vpop.f32.mrb[24].mxu1  ;;  %vm554_vm9 = vcmp.lt.s32.totalorder %v521_v44, %v4219_v63  ;;  %vm555_vm10 = vcmp.lt.s32.totalorder %v522_v14, %v4219_v63  ;;  %v3057_v44 = vcombine.low %v1799_v58, %v1800_v35 }
 0x171   : > { %v1592_v55 = vadd.bf16 %v4248_v16, %v1474_v53  ;;  %5885 = vst [vmem:[#allocation34_spill] sm:$0xff] %v4571_v47  ;;  %v4578_v34 = vpop.f32.mrb[25].mxu1  ;;  %vm1769_vm15 = vmpackc.low %vm554_vm9, %vm554_vm9  ;;  %v5890_v35 = vmov 0 }
 0x172   : > { %v4574_v11 = vmax.bf16 %v5874_v32, %v1591_v33  ;;  %5887 = vst [vmem:[#allocation36_spill] sm:$0xff] %v4578_v34  ;;  %v4585_v21 = vpop.f32.mrb[26].mxu1  ;;  %vm1770_vm0 = vmpackc.low %vm555_vm10, %vm555_vm10  ;;  %vm4600_vm1 = vcmp.ne.s16.totalorder %v3057_v44, 0 }
 0x173   : > { %v4567_v23 = vmax.bf16 %v5874_v32, %v1592_v55  ;;  %v1185_v28 = vpop.f32.mrb[40].mxu0  ;;  %v491_v55 = vadd.s32 200, %v4205_v54  ;;  %5888 = vst [vmem:[#allocation37_spill] sm:$0xff] %v4585_v21  ;;  %v4592_v42 = vpop.f32.mrb[27].mxu1  ;;  %v5891_v35 = vsel %vm4600_vm1, 4294967295, %v5890_v35  ;;  %v1802_v51 = vsel %vm1770_vm0, 65537, %v5874_v32 }
 0x174   : > { %5886 = vst [vmem:[#allocation35_spill] sm:$0xff] %v4574_v11  ;;  %v1187_v53 = vpop.f32.mrb[41].mxu0  ;;  %5889 = vst [vmem:[#allocation38_spill] sm:$0xff] %v4592_v42 }
 0x175   : > { %5884 = vst [vmem:[#allocation33_spill] sm:$0xff] %v4567_v23  ;;  %v1189_v3 = vpop.f32.mrb[42].mxu0  ;;  %3114 = vmatprep.mubr.msk.bf16.mxu0 %vm4562_vm6, %v4567_v23  ;;  %5892 = vst [vmem:[#allocation39_spill] sm:$0xff] %v5891_v35 }
 0x176   : > { %v1477_v33 = vpack.c.bf16 %v1189_v3, %v1185_v28  ;;  %v1191_v22 = vpop.f32.mrb[43].mxu0  ;;  %3115 = vmatmul.mubr.msk.bf16.gmra.mrb[100].mxu0 %vm4562_vm6, %v4574_v11  ;;  %v523_v3 = vadd.s32 %v4208_v57, %v490_v61  ;;  %v524_v11 = vadd.s32 %v4208_v57, %v491_v55  ;;  %v492_v55 = vadd.s32 208, %v4205_v54 }
 0x177   : > { %v1478_v38 = vpack.c.bf16 %v1191_v22, %v1187_v53  ;;  %v1801_v53 = vsel %vm1769_vm15, 65537, %v5874_v32 }
 0x178   : > { %v1595_v23 = vadd.bf16 %v4243_v13, %v1477_v33  ;;  %v4609_v33 = vpop.f32.mrb[28].mxu1  ;;  %vm556_vm5 = vcmp.lt.s32.totalorder %v523_v3, %v4219_v63  ;;  %vm557_vm9 = vcmp.lt.s32.totalorder %v524_v11, %v4219_v63  ;;  %v3058_v3 = vcombine.low %v1801_v53, %v1802_v51 }
 0x179   : > { %v1596_v28 = vadd.bf16 %v4248_v16, %v1478_v38  ;;  %5894 = vst [vmem:[#allocation41_spill] sm:$0xff] %v4609_v33  ;;  %v4616_v44 = vpop.f32.mrb[29].mxu1  ;;  %vm1771_vm10 = vmpackc.low %vm556_vm5, %vm556_vm5  ;;  %v5899_v51 = vmov 0 }
 0x17a   : > { %v4612_v61 = vmax.bf16 %v5874_v32, %v1595_v23  ;;  %5896 = vst [vmem:[#allocation43_spill] sm:$0xff] %v4616_v44  ;;  %v4623_v47 = vpop.f32.mrb[30].mxu1  ;;  %vm1772_vm15 = vmpackc.low %vm557_vm9, %vm557_vm9  ;;  %vm4638_vm0 = vcmp.ne.s16.totalorder %v3058_v3, 0 }
 0x17b   : > { %v4605_v58 = vmax.bf16 %v5874_v32, %v1596_v28  ;;  %v1195_v22 = vpop.f32.mrb[44].mxu0  ;;  %v493_v28 = vadd.s32 216, %v4205_v54  ;;  %5897 = vst [vmem:[#allocation44_spill] sm:$0xff] %v4623_v47  ;;  %v4630_v34 = vpop.f32.mrb[31].mxu1  ;;  %v5900_v51 = vsel %vm4638_vm0, 4294967295, %v5899_v51  ;;  %v1804_v49 = vsel %vm1772_vm15, 65537, %v5874_v32 }
 0x17c   : > { %5895 = vst [vmem:[#allocation42_spill] sm:$0xff] %v4612_v61  ;;  %v1197_v38 = vpop.f32.mrb[45].mxu0  ;;  %5898 = vst [vmem:[#allocation45_spill] sm:$0xff] %v4630_v34 }
 0x17d   : > { %5893 = vst [vmem:[#allocation40_spill] sm:$0xff] %v4605_v58  ;;  %v1199_v14 = vpop.f32.mrb[46].mxu0  ;;  %3116 = vmatprep.mubr.msk.bf16.mxu0 %vm4600_vm1, %v4605_v58  ;;  %5901 = vst [vmem:[#allocation46_spill] sm:$0xff] %v5900_v51 }
 0x17e   : > { %v1481_v23 = vpack.c.bf16 %v1199_v14, %v1195_v22  ;;  %v1201_v21 = vpop.f32.mrb[47].mxu0  ;;  %3117 = vmatmul.mubr.msk.bf16.gmra.mrb[104].mxu0 %vm4600_vm1, %v4612_v61  ;;  %v525_v14 = vadd.s32 %v4208_v57, %v492_v55  ;;  %v526_v61 = vadd.s32 %v4208_v57, %v493_v28  ;;  %v494_v28 = vadd.s32 224, %v4205_v54 }
 0x17f   : > { %v1482_v42 = vpack.c.bf16 %v1201_v21, %v1197_v38  ;;  %v1803_v38 = vsel %vm1771_vm10, 65537, %v5874_v32 }
 0x180   : > { %v1599_v58 = vadd.bf16 %v4243_v13, %v1481_v23  ;;  %v4647_v23 = vpop.f32.mrb[32].mxu1  ;;  %vm558_vm5 = vcmp.lt.s32.totalorder %v525_v14, %v4219_v63  ;;  %vm559_vm9 = vcmp.lt.s32.totalorder %v526_v61, %v4219_v63  ;;  %v3059_v14 = vcombine.low %v1803_v38, %v1804_v49 }
 0x181   : > { %v1600_v22 = vadd.bf16 %v4248_v16, %v1482_v42  ;;  %5903 = vst [vmem:[#allocation48_spill] sm:$0xff] %v4647_v23  ;;  %v4654_v3 = vpop.f32.mrb[33].mxu1  ;;  %vm1773_vm10 = vmpackc.low %vm558_vm5, %vm558_vm5  ;;  %v5908_v49 = vmov 0 }
 0x182   : > { %v4650_v55 = vmax.bf16 %v5874_v32, %v1599_v58  ;;  %5905 = vst [vmem:[#allocation50_spill] sm:$0xff] %v4654_v3  ;;  %v4661_v33 = vpop.f32.mrb[34].mxu1  ;;  %vm1774_vm15 = vmpackc.low %vm559_vm9, %vm559_vm9 }
 0x183   : > { %v4643_v53 = vmax.bf16 %v5874_v32, %v1600_v22  ;;  %v1205_v21 = vpop.f32.mrb[48].mxu0  ;;  %v495_v22 = vadd.s32 232, %v4205_v54  ;;  %5906 = vst [vmem:[#allocation51_spill] sm:$0xff] %v4661_v33  ;;  %v4668_v34 = vpop.f32.mrb[35].mxu1 }
 0x184   : > { %5904 = vst [vmem:[#allocation49_spill] sm:$0xff] %v4650_v55  ;;  %v1207_v42 = vpop.f32.mrb[49].mxu0  ;;  %5907 = vst [vmem:[#allocation52_spill] sm:$0xff] %v4668_v34  ;;  %v4688_v44 = vpop.f32.mrb[36].mxu1 }
 0x185   : > { %5902 = vst [vmem:[#allocation47_spill] sm:$0xff] %v4643_v53  ;;  %v1209_v11 = vpop.f32.mrb[50].mxu0  ;;  %3118 = vmatprep.mubr.msk.bf16.mxu0 %vm4638_vm0, %v4643_v53  ;;  %5911 = vst [vmem:[#allocation54_spill] sm:$0xff] %v4688_v44  ;;  %v4698_v61 = vpop.f32.mrb[37].mxu1 }
 0x186   : > { %v1485_v58 = vpack.c.bf16 %v1209_v11, %v1205_v21  ;;  %v1211_v47 = vpop.f32.mrb[51].mxu0  ;;  %3119 = vmatmul.mubr.msk.bf16.gmra.mrb[108].mxu0 %vm4638_vm0, %v4650_v55  ;;  %v527_v11 = vadd.s32 %v4208_v57, %v494_v28  ;;  %v528_v55 = vadd.s32 %v4208_v57, %v495_v22  ;;  %vm4676_vm0 = vcmp.ne.s16.totalorder %v3059_v14, 0  ;;  %v3609_v14 = vld [vmem:[%s5717_s4 + $0xc8] sm:$0xff]   ;;  %5912 = vst [vmem:[#allocation55_spill] sm:$0xff] %v4698_v61  ;;  %v4705_v33 = vpop.f32.mrb[38].mxu1 }
 0x187   : > { %v1486_v35 = vpack.c.bf16 %v1211_v47, %v1207_v42  ;;  %v5909_v49 = vsel %vm4676_vm0, 4294967295, %v5908_v49  ;;  %v3608_v42 = vld [vmem:[%s5717_s4 + $0x80] sm:$0xff]   ;;  %v1806_v28 = vsel %vm1774_vm15, 65537, %v5874_v32  ;;  %5913 = vst [vmem:[#allocation56_spill] sm:$0xff] %v4705_v33  ;;  %v4712_v41 = vpop.f32.mrb[39].mxu1 }
 0x188   : > { %v1603_v53 = vadd.bf16 %v4243_v13, %v1485_v58  ;;  %5910 = vst [vmem:[#allocation53_spill] sm:$0xff] %v5909_v49  ;;  %v1805_v58 = vsel %vm1773_vm10, 65537, %v5874_v32  ;;  %vm560_vm5 = vcmp.lt.s32.totalorder %v527_v11, %v4219_v63  ;;  %vm561_vm9 = vcmp.lt.s32.totalorder %v528_v55, %v4219_v63  ;;  %5914 = vst [vmem:[#allocation57_spill] sm:$0xff] %v4712_v41  ;;  %v3612_v55 = vld [vmem:[%s5717_s4 + $0x90] sm:$0xff]   ;;  %v3614_v41 = vld [vmem:[%s5717_s4 + $0x98] sm:$0xff]  }
 0x189   : > { %v1604_v21 = vadd.bf16 %v4248_v16, %v1486_v35  ;;  %v3060_v51 = vcombine.low %v1805_v58, %v1806_v28  ;;  %vm1775_vm10 = vmpackc.low %vm560_vm5, %vm560_vm5  ;;  %v3611_v58 = vld [vmem:[%s5717_s4 + $0xd0] sm:$0xff]   ;;  %v5915_v28 = vmov 0 }
 0x18a   : > { %v4691_v35 = vmax.bf16 %v5874_v32, %v1603_v53  ;;  %v497_v53 = vadd.s32 248, %v4205_v54  ;;  %vm1776_vm15 = vmpackc.low %vm561_vm9, %vm561_vm9 }
 0x18b   : > { %v4681_v38 = vmax.bf16 %v5874_v32, %v1604_v21  ;;  %v1215_v47 = vpop.f32.mrb[52].mxu0  ;;  %v496_v21 = vadd.s32 240, %v4205_v54  ;;  %v3610_v54 = vld [vmem:[%s5717_s4 + $0x88] sm:$0xff]   ;;  %vm4732_vm5 = vcmp.ne.s16.totalorder %v3060_v51, 0  ;;  %v4746_v51 = vpop.f32.mrb[40].mxu1 }
 0x18c   : > { %v1217_v22 = vpop.f32.mrb[53].mxu0  ;;  %v5916_v28 = vsel %vm4732_vm5, 4294967295, %v5915_v28  ;;  %5919 = vst [vmem:[#allocation60_spill] sm:$0xff] %v4746_v51  ;;  %v4755_v39 = vpop.f32.mrb[41].mxu1 }
 0x18d   : > { %v1219_v23 = vpop.f32.mrb[54].mxu0  ;;  %3120 = vmatprep.mubr.msk.bf16.mxu1 %vm4676_vm0, %v4681_v38  ;;  %5917 = vst [vmem:[#allocation58_spill] sm:$0xff] %v5916_v28  ;;  %5920 = vst [vmem:[#allocation61_spill] sm:$0xff] %v4755_v39  ;;  %v3618_v39 = vld [vmem:[%s5717_s4 + $0xa8] sm:$0xff]  }
 0x18e   : > { %v1489_v3 = vpack.c.bf16 %v1219_v23, %v1215_v47  ;;  %v1221_v34 = vpop.f32.mrb[55].mxu0  ;;  %3121 = vmatmul.mubr.msk.bf16.vlgmr.msra.gmra.mrb[64].mxu1 %vm4676_vm0, %v4691_v35 }
 0x18f   : > { %v1490_v56 = vpack.c.bf16 %v1221_v34, %v1217_v22  ;;  %3320 = vmatpush3.bf16.msra.mxu1 %v3608_v42  ;;  %v529_v34 = vadd.s32 %v4208_v57, %v496_v21  ;;  %v530_v42 = vadd.s32 %v4208_v57, %v497_v53  ;;  %v1808_v21 = vsel %vm1776_vm15, 65537, %v5874_v32 }
 0x190   : > { %v1607_v47 = vadd.bf16 %v4243_v13, %v1489_v3  ;;  %3321 = vmatprep.subr.bf16.mxu1 %v3609_v14  ;;  %v1807_v14 = vsel %vm1775_vm10, 65537, %v5874_v32 }
 0x191   : > { %v1608_v11 = vadd.bf16 %v4248_v16, %v1490_v56  ;;  %v1526_v56 = vcombine.high %v4227_v2, %v4227_v2  ;;  %vm562_vm9 = vcmp.lt.s32.totalorder %v529_v34, %v4219_v63  ;;  %vm563_vm10 = vcmp.lt.s32.totalorder %v530_v42, %v4219_v63  ;;  %v4761_v2 = vpop.f32.mrb[42].mxu1 }
 0x192   : > { %v4749_v53 = vmax.bf16 %v5874_v32, %v1607_v47  ;;  %5921 = vst [vmem:[#allocation62_spill] sm:$0xff] %v4761_v2  ;;  %v4768_v33 = vpop.f32.mrb[43].mxu1  ;;  %vm1777_vm15 = vmpackc.low %vm562_vm9, %vm562_vm9  ;;  %v5923_v34 = vmov 0 }
 0x193   : > { %v4737_v3 = vmax.bf16 %v5874_v32, %v1608_v11  ;;  %3322 = vmatpush3.bf16.msra.mxu1 %v3610_v54  ;;  %v1225_v22 = vpop.f32.mrb[56].mxu0  ;;  %v3613_v54 = vld [vmem:[%s5717_s4 + $0xd8] sm:$0xff]   ;;  %5922 = vst [vmem:[#allocation63_spill] sm:$0xff] %v4768_v33  ;;  %v1809_v42 = vsel %vm1777_vm15, 65537, %v5874_v32  ;;  %vm5993_vm15 = vnez %v5916_v28 }
 0x194   : > { %v1227_v11 = vpop.f32.mrb[57].mxu0  ;;  %3323 = vmatprep.subr.bf16.mxu1 %v3611_v58  ;;  %v3061_v58 = vcombine.low %v1807_v14, %v1808_v21 }
 0x195   : > { %5918 = vst [vmem:[#allocation59_spill] sm:$0xff] %v4737_v3  ;;  %v1229_v23 = vpop.f32.mrb[58].mxu0  ;;  %3122 = vmatprep.mubr.msk.bf16.mxu1 %vm4732_vm5, %v4737_v3  ;;  %v1549_v3 = vpack.i.b16 %v1526_v56, %v1526_v56  ;;  %v3616_v56 = vld [vmem:[%s5717_s4 + $0xa0] sm:$0xff]  }
 0x196   : > { %v1493_v47 = vpack.c.bf16 %v1229_v23, %v1225_v22  ;;  %v1231_v57 = vpop.f32.mrb[59].mxu0  ;;  %3123 = vmatmul.mubr.msk.bf16.gmra.mrb[68].mxu1 %vm4732_vm5, %v4749_v53  ;;  %vm1778_vm5 = vmpackc.low %vm563_vm10, %vm563_vm10  ;;  %vm4786_vm0 = vcmp.ne.s16.totalorder %v3061_v58, 0  ;;  %vm5985_vm10 = vnez %v5909_v49 }
 0x197   : > { %v1494_v61 = vpack.c.bf16 %v1231_v57, %v1227_v11  ;;  %3324 = vmatpush3.bf16.msra.mxu1 %v3612_v55  ;;  %v3615_v57 = vld [vmem:[%s5717_s4 + $0xe0] sm:$0xff]   ;;  %v5924_v34 = vsel %vm4786_vm0, 4294967295, %v5923_v34  ;;  %v4797_v11 = vrot.slane %v1549_v3, %v4234_v5 }
 0x198   : > { %v1611_v22 = vadd.bf16 %v4243_v13, %v1493_v47  ;;  %3325 = vmatprep.subr.bf16.mxu1 %v3613_v54  ;;  %5925 = vst [vmem:[#allocation64_spill] sm:$0xff] %v5924_v34  ;;  %v4801_v54 = vpop.f32.mrb[44].mxu1 }
 0x199   : > { %v1612_v55 = vadd.bf16 %v4248_v16, %v1494_v61  ;;  %v1810_v61 = vsel %vm1778_vm5, 65537, %v5874_v32  ;;  %v4811_v3 = vpop.f32.mrb[45].mxu1 }
 0x19a   : > { %v4804_v47 = vmax.bf16 %v5874_v32, %v1611_v22  ;;  %v4816_v23 = vpop.f32.mrb[46].mxu1 }
 0x19b   : > { %v4791_v14 = vmax.bf16 %v5874_v32, %v1612_v55  ;;  %3326 = vmatpush3.bf16.msra.mxu1 %v3614_v41  ;;  %v1235_v21 = vpop.f32.mrb[60].mxu0  ;;  %v3617_v41 = vld [vmem:[%s5717_s4 + $0xe8] sm:$0xff]   ;;  %v1525_v55 = vcombine.high %v4222_v0, %v4222_v0  ;;  %v4823_v0 = vpop.f32.mrb[47].mxu1 }
 0x19c   : > { %v1237_v58 = vpop.f32.mrb[61].mxu0  ;;  %3327 = vmatprep.subr.bf16.mxu1 %v3615_v57  ;;  %v3062_v57 = vcombine.low %v1809_v42, %v1810_v61 }
 0x19d   : > { %v1239_v44 = vpop.f32.mrb[62].mxu0  ;;  %3124 = vmatprep.mubr.msk.bf16.mxu1 %vm4786_vm0, %v4791_v14  ;;  %v1542_v61 = vpack.i.b16 %v1525_v55, %v1525_v55 }
 0x19e   : > { %v1497_v22 = vpack.c.bf16 %v1239_v44, %v1235_v21  ;;  %v1241_v63 = vpop.f32.mrb[63].mxu0  ;;  %3125 = vmatmul.mubr.msk.bf16.gmra.mrb[72].mxu1 %vm4786_vm0, %v4804_v47  ;;  %v5926_v44 = vpack.c.bf16 %v4364_v52, %v4350_v40  ;;  %vm4839_vm5 = vcmp.ne.s16.totalorder %v3062_v57, 0 }
 0x19f   : > { %v1498_v2 = vpack.c.bf16 %v1241_v63, %v1237_v58  ;;  %3328 = vmatpush3.bf16.msra.mxu1 %v3616_v56  ;;  %v3619_v63 = vld [vmem:[%s5717_s4 + $0xf0] sm:$0xff]   ;;  %v5927_v58 = vmov 0 }
 0x1a0   : > { %v1558_v21 = vadd.bf16 %v4797_v11, %v5926_v44  ;;  %v1615_v42 = vadd.bf16 %v4243_v13, %v1497_v22  ;;  %3329 = vmatprep.subr.bf16.mxu1 %v3617_v41  ;;  %v5928_v58 = vsel %vm4839_vm5, 4294967295, %v5927_v58  ;;  %v3620_v13 = vld [vmem:[%s5717_s4 + $0xb0] sm:$0xff]   ;;  %v4852_v41 = vpop.f32.mrb[48].mxu1 }
 0x1a1   : > { %v1616_v56 = vadd.bf16 %v4248_v16, %v1498_v2  ;;  %5929 = vst [vmem:[#allocation65_spill] sm:$0xff] %v5928_v58  ;;  %v4858_v16 = vrot.slane %v1542_v61, %v4234_v5  ;;  %v4863_v2 = vpop.f32.mrb[49].mxu1 }
 0x1a2   : > { %v4847_v52 = vmax.bf16 %v5874_v32, %v1558_v21  ;;  %v4855_v55 = vmax.bf16 %v5874_v32, %v1615_v42  ;;  %v4868_v22 = vpop.f32.mrb[50].mxu1  ;;  %v3622_v21 = vld [vmem:[%s5717_s4 + $0xb8] sm:$0xff]   ;;  %v5930_v42 = vpack.c.bf16 %v4402_v24, %v4388_v15 }
 0x1a3   : > { %v4844_v40 = vmax.bf16 %v5874_v32, %v1616_v56  ;;  %3330 = vmatpush3.bf16.msra.mxu1 %v3618_v39  ;;  %v3621_v39 = vld [vmem:[%s5717_s4 + $0xf8] sm:$0xff]   ;;  %v4875_v44 = vpop.f32.mrb[51].mxu1  ;;  %v5931_v56 = vpack.c.bf16 %v4357_v43, %v4343_v36  ;;  %v1875_v36 = vsel %vm4256_vm8, %v4266_v31, 0  ;;  %v5933_v31 = vpack.c.bf16 %v4395_v19, %v4381_v9 }
 0x1a4   : > { %3331 = vmatprep.subr.bf16.mxu1 %v3619_v63  ;;  %v1562_v61 = vadd.bf16 %v4797_v11, %v5930_v42  ;;  %v4896_v51 = vpop.f32.mrb[52].mxu1 }
 0x1a5   : > { %3126 = vmatprep.mubr.msk.bf16.mxu1 %vm4839_vm5, %v4844_v40  ;;  %v4904_v15 = vpop.f32.mrb[53].mxu1 }
 0x1a6   : > { %3127 = vmatmul.mubr.msk.bf16.gmra.mrb[76].mxu1 %vm4839_vm5, %v4855_v55  ;;  %v4894_v57 = vmax.bf16 %v5874_v32, %v1562_v61  ;;  %v4906_v24 = vpop.f32.mrb[54].mxu1  ;;  %v1561_v61 = vadd.bf16 %v4858_v16, %v5933_v31 }
 0x1a7   : > { %3332 = vmatpush3.bf16.msra.mxu1 %v3620_v13  ;;  %3128 = vmatprep.mubr.msk.bf16.mxu1 %vm4256_vm8, %v4847_v52  ;;  %v1557_v13 = vadd.bf16 %v4858_v16, %v5931_v56  ;;  %v1879_v56 = vsel %vm4282_vm13, %v4292_v50, 0  ;;  %v1883_v50 = vsel %vm4308_vm2, %v4318_v12, 0  ;;  %v5935_v12 = vpack.c.bf16 %v4433_v4, %v4419_v48 }
 0x1a8   : > { %3333 = vmatprep.subr.bf16.mxu1 %v3621_v39  ;;  %v4916_v39 = vpop.f32.mrb[55].mxu1 }
 0x1a9   : > { %v4899_v33 = vmax.bf16 %v5874_v32, %v1557_v13  ;;  %v4943_v13 = vmax.bf16 %v5874_v32, %v1561_v61  ;;  %v1565_v31 = vadd.bf16 %v4858_v16, %v5935_v12  ;;  %v1887_v61 = vsel %vm4334_vm7, %v4346_v37, 0 }
 0x1aa   : > { %v1891_v37 = vsel %vm4372_vm14, %v4384_v10, 0  ;;  %v5937_v10 = vld [vmem:[#allocation18_spill] sm:$0xff] }
 0x1ab   : > { %3334 = vmatpush3.bf16.msra.mxu1 %v3622_v21  ;;  %v5938_v12 = vpack.c.bf16 %v4471_v20, %v5937_v10  ;;  %v5945_v20 = vld [vmem:[#allocation19_spill] sm:$0xff] }
 0x1ac   : > { %3160 = vmatprep.subr.msk.bf16.mxu1 %vm4256_vm8, %v4261_v27  ;;  %v5932_v27 = vpack.c.bf16 %v4440_v18, %v4426_v60  ;;  %v4940_v18 = vpop.f32.mrb[56].mxu1  ;;  %v1899_v10 = vsel %vm4448_vm11, %v5945_v20, 0  ;;  %v5954_v20 = vld [vmem:[#allocation23_spill] sm:$0xff] }
 0x1ad   : > { %v4948_v9 = vpop.f32.mrb[57].mxu1 }
 0x1ae   : > { %3129 = vmatmul.mubr.msk.bf16.vlgmr.msra.gmra.mrb[80].mxu1 %vm4256_vm8, %v4899_v33  ;;  %v1566_v21 = vadd.bf16 %v4797_v11, %v5932_v27 }
 0x1af   : > { %2701 = vmatpush1.bf16.msra.mxu1 %v1875_v36  ;;  %3130 = vmatprep.mubr.msk.bf16.mxu1 %vm4282_vm13, %v4894_v57 }
 0x1b0   : > { %3161 = vmatprep.subr.msk.bf16.mxu1 %vm4282_vm13, %v4287_v46  ;;  %v4938_v60 = vmax.bf16 %v5874_v32, %v1566_v21  ;;  %v4950_v46 = vpop.f32.mrb[58].mxu1  ;;  %v5952_v21 = vld [vmem:[#allocation21_spill] sm:$0xff] }
 0x1b1   : > { %v4960_v36 = vpop.f32.mrb[59].mxu1 }
 0x1b3   : > { %2703 = vmatpush1.bf16.msra.mxu1 %v1879_v56  ;;  %v4987_v56 = vmax.bf16 %v5874_v32, %v1565_v31  ;;  %v1569_v31 = vadd.bf16 %v4858_v16, %v5938_v12 }
 0x1b4   : > { %3162 = vmatprep.subr.msk.bf16.mxu1 %vm4308_vm2, %v4313_v8  ;;  %v5934_v8 = vpack.c.bf16 %v4478_v17, %v4464_v6  ;;  %v4984_v6 = vpop.f32.mrb[60].mxu1 }
 0x1b5   : > { %v4992_v48 = vpop.f32.mrb[61].mxu1 }
 0x1b6   : > { %3131 = vmatmul.mubr.msk.bf16.gmra.mrb[84].mxu1 %vm4282_vm13, %v4943_v13  ;;  %v1570_v27 = vadd.bf16 %v4797_v11, %v5934_v8 }
 0x1b7   : > { %2705 = vmatpush1.bf16.msra.mxu1 %v1883_v50  ;;  %3132 = vmatprep.mubr.msk.bf16.mxu1 %vm4308_vm2, %v4938_v60 }
 0x1b8   : > { %3163 = vmatprep.subr.msk.bf16.mxu1 %vm4334_vm7, %v4339_v30  ;;  %v4982_v17 = vmax.bf16 %v5874_v32, %v1570_v27  ;;  %v4994_v30 = vpop.f32.mrb[62].mxu1 }
 0x1b9   : > { %v5004_v50 = vpop.f32.mrb[63].mxu1 }
 0x1bb   : > { %2707 = vmatpush1.bf16.msra.mxu1 %v1887_v61  ;;  %v5939_v61 = vld [vmem:[#allocation14_spill] sm:$0xff] }
 0x1bc   : > { %3164 = vmatprep.subr.msk.bf16.mxu1 %vm4372_vm14, %v4377_v1  ;;  %v5936_v1 = vpack.c.bf16 %v4516_v59, %v4502_v25  ;;  %v5029_v25 = vmax.bf16 %v5874_v32, %v1569_v31 }
 0x1be   : > { %3133 = vmatmul.mubr.msk.bf16.gmra.mrb[88].mxu1 %vm4308_vm2, %v4987_v56  ;;  %v1574_v8 = vadd.bf16 %v4797_v11, %v5936_v1  ;;  %v5943_v1 = vld [vmem:[#allocation17_spill] sm:$0xff]  ;;  %v1889_v26 = vsel %vm4334_vm7, %v5029_v25, 0 }
 0x1bf   : > { %2709 = vmatpush1.bf16.msra.mxu1 %v1891_v37  ;;  %3134 = vmatprep.mubr.msk.bf16.mxu1 %vm4334_vm7, %v4982_v17  ;;  %v5941_v37 = vld [vmem:[#allocation15_spill] sm:$0xff] }
 0x1c0   : > { %3165 = vmatprep.subr.msk.bf16.mxu1 %vm4410_vm4, %v5939_v61  ;;  %v1895_v19 = vsel %vm4410_vm4, %v5941_v37, 0  ;;  %v5026_v59 = vmax.bf16 %v5874_v32, %v1574_v8  ;;  %v5947_v8 = vld [vmem:[#allocation29_spill] sm:$0xff]  ;;  %v5949_v61 = vld [vmem:[#allocation24_spill] sm:$0xff]  ;;  %v5950_v37 = vld [vmem:[#allocation22_spill] sm:$0xff] }
 0x1c2   : > { %5942 = vst [vmem:[#allocation18_spill] sm:$0xff] %v5026_v59 }
 0x1c3   : > { %2711 = vmatpush1.bf16.msra.mxu1 %v1895_v19  ;;  %v5946_v19 = vld [vmem:[#allocation31_spill] sm:$0xff] }
 0x1c4   : > { %3166 = vmatprep.subr.msk.bf16.mxu1 %vm4448_vm11, %v5943_v1  ;;  %v5948_v12 = vpack.c.bf16 %v5946_v19, %v5947_v8  ;;  %v5951_v1 = vpack.c.bf16 %v5949_v61, %v5950_v37  ;;  %v5957_v8 = vld [vmem:[#allocation26_spill] sm:$0xff] }
 0x1c6   : > { %3135 = vmatmul.mubr.msk.bf16.gmra.mrb[92].mxu1 %vm4334_vm7, %v5029_v25  ;;  %v1578_v31 = vadd.bf16 %v4797_v11, %v5948_v12  ;;  %v1573_v43 = vadd.bf16 %v4858_v16, %v5951_v1 }
 0x1c7   : > { %2713 = vmatpush1.bf16.msra.mxu1 %v1899_v10  ;;  %3136 = vmatprep.mubr.msk.bf16.mxu1 %vm4372_vm14, %v5026_v59  ;;  %v1903_v10 = vsel %vm4486_vm3, %v5954_v20, 0  ;;  %v5963_v20 = vld [vmem:[#allocation30_spill] sm:$0xff] }
 0x1c8   : > { %3167 = vmatprep.subr.msk.bf16.mxu1 %vm4486_vm3, %v5952_v21  ;;  %v5058_v63 = vmax.bf16 %v5874_v32, %v1578_v31  ;;  %v5061_v19 = vmax.bf16 %v5874_v32, %v1573_v43  ;;  %v5959_v21 = vld [vmem:[#allocation28_spill] sm:$0xff]  ;;  %v5960_v31 = vld [vmem:[#allocation38_spill] sm:$0xff] }
 0x1c9   : > { %v1907_v61 = vsel %vm4524_vm12, %v5959_v21, 0  ;;  %v5961_v43 = vld [vmem:[#allocation36_spill] sm:$0xff]  ;;  %v5968_v21 = vld [vmem:[#allocation35_spill] sm:$0xff]  ;;  %v5981_v59 = vld [vmem:[#allocation46_spill] sm:$0xff] }
 0x1ca   : > { %5955 = vst [vmem:[#allocation14_spill] sm:$0xff] %v5058_v63  ;;  %5956 = vst [vmem:[#allocation15_spill] sm:$0xff] %v5061_v19  ;;  %v5962_v37 = vpack.c.bf16 %v5960_v31, %v5961_v43  ;;  %v5971_v43 = vld [vmem:[#allocation40_spill] sm:$0xff]  ;;  %vm5982_vm9 = vnez %v5981_v59  ;;  %v6043_v45 = vld [vmem:[#allocation18_spill] sm:$0xff] }
 0x1cb   : > { %2715 = vmatpush1.bf16.msra.mxu1 %v1903_v10  ;;  %v5964_v10 = vld [vmem:[#allocation27_spill] sm:$0xff] }
 0x1cc   : > { %3168 = vmatprep.subr.msk.bf16.mxu1 %vm4524_vm12, %v5957_v8  ;;  %v1582_v1 = vadd.bf16 %v4797_v11, %v5962_v37  ;;  %v5965_v8 = vpack.c.bf16 %v5963_v20, %v5964_v10 }
 0x1ce   : > { %3137 = vmatmul.mubr.msk.bf16.gmra.mrb[96].mxu1 %vm4372_vm14, %v5061_v19  ;;  %v1577_v5 = vadd.bf16 %v4858_v16, %v5965_v8  ;;  %v5966_v19 = vld [vmem:[#allocation33_spill] sm:$0xff] }
 0x1cf   : > { %2717 = vmatpush1.bf16.msra.mxu1 %v1907_v61  ;;  %3138 = vmatprep.mubr.msk.bf16.mxu1 %vm4410_vm4, %v5058_v63  ;;  %v1911_v61 = vsel %vm4562_vm6, %v5968_v21, 0  ;;  %v5090_v63 = vmax.bf16 %v5874_v32, %v1582_v1  ;;  %v5974_v1 = vld [vmem:[#allocation45_spill] sm:$0xff] }
 0x1d0   : > { %3169 = vmatprep.subr.msk.bf16.mxu1 %vm4562_vm6, %v5966_v19  ;;  %v5093_v31 = vmax.bf16 %v5874_v32, %v1577_v5  ;;  %v5973_v19 = vld [vmem:[#allocation42_spill] sm:$0xff]  ;;  %v5975_v5 = vld [vmem:[#allocation43_spill] sm:$0xff]  ;;  %v5977_v21 = vld [vmem:[#allocation37_spill] sm:$0xff] }
 0x1d1   : > { %5969 = vst [vmem:[#allocation17_spill] sm:$0xff] %v5090_v63  ;;  %v1915_v20 = vsel %vm4600_vm1, %v5973_v19, 0  ;;  %v5976_v10 = vpack.c.bf16 %v5974_v1, %v5975_v5  ;;  %v5983_v19 = vld [vmem:[#allocation49_spill] sm:$0xff]  ;;  %v5986_v5 = vld [vmem:[#allocation52_spill] sm:$0xff]  ;;  %v6046_v7 = vld [vmem:[#allocation14_spill] sm:$0xff] }
 0x1d2   : > { %5970 = vst [vmem:[#allocation16_spill] sm:$0xff] %v5093_v31 }
 0x1d3   : > { %2719 = vmatpush1.bf16.msra.mxu1 %v1911_v61  ;;  %v1586_v8 = vadd.bf16 %v4797_v11, %v5976_v10  ;;  %v5978_v61 = vld [vmem:[#allocation34_spill] sm:$0xff] }
 0x1d4   : > { %3170 = vmatprep.subr.msk.bf16.mxu1 %vm4600_vm1, %v5971_v43  ;;  %v5979_v43 = vpack.c.bf16 %v5977_v21, %v5978_v61  ;;  %v5989_v21 = vld [vmem:[#allocation44_spill] sm:$0xff] }
 0x1d6   : > { %3139 = vmatmul.mubr.msk.bf16.gmra.mrb[100].mxu1 %vm4410_vm4, %v5093_v31  ;;  %v1581_v4 = vadd.bf16 %v4858_v16, %v5979_v43  ;;  %v5980_v31 = vld [vmem:[#allocation47_spill] sm:$0xff] }
 0x1d7   : > { %2721 = vmatpush1.bf16.msra.mxu1 %v1915_v20  ;;  %3140 = vmatprep.mubr.msk.bf16.mxu1 %vm4448_vm11, %v5090_v63  ;;  %v1919_v20 = vsel %vm5982_vm9, %v5983_v19, 0  ;;  %v5122_v63 = vmax.bf16 %v5874_v32, %v1586_v8  ;;  %v5992_v19 = vld [vmem:[#allocation59_spill] sm:$0xff] }
 0x1d8   : > { %3171 = vmatprep.subr.msk.bf16.mxu1 %vm5982_vm9, %v5980_v31  ;;  %v5125_v1 = vmax.bf16 %v5874_v32, %v1581_v4  ;;  %v1923_v31 = vsel %vm5985_vm10, %v4691_v35, 0  ;;  %v5987_v4 = vld [vmem:[#allocation50_spill] sm:$0xff]  ;;  %v1927_v35 = vsel %vm5993_vm15, %v4749_v53, 0  ;;  %v5996_v53 = vld [vmem:[#allocation57_spill] sm:$0xff] }
 0x1d9   : > { %5984 = vst [vmem:[#allocation19_spill] sm:$0xff] %v5122_v63  ;;  %v5988_v10 = vpack.c.bf16 %v5986_v5, %v5987_v4  ;;  %v1931_v5 = vsel %vm4786_vm0, %v4804_v47, 0  ;;  %v5997_v4 = vld [vmem:[#allocation55_spill] sm:$0xff]  ;;  %v1935_v47 = vsel %vm4839_vm5, %v4855_v55, 0  ;;  %v6049_v29 = vld [vmem:[#allocation17_spill] sm:$0xff] }
 0x1da   : > { %v1901_v25 = vsel %vm4448_vm11, %v5125_v1, 0 }
 0x1db   : > { %2723 = vmatpush1.bf16.msra.mxu1 %v1919_v20  ;;  %v1590_v8 = vadd.bf16 %v4797_v11, %v5988_v10  ;;  %v5998_v10 = vpack.c.bf16 %v5996_v53, %v5997_v4  ;;  %v6007_v53 = vld [vmem:[#allocation56_spill] sm:$0xff]  ;;  %v6008_v4 = vld [vmem:[#allocation54_spill] sm:$0xff] }
 0x1dc   : > { %3172 = vmatprep.subr.msk.bf16.mxu1 %vm5985_vm10, %v4681_v38  ;;  %v5990_v38 = vld [vmem:[#allocation41_spill] sm:$0xff] }
 0x1dd   : > { %v5991_v61 = vpack.c.bf16 %v5989_v21, %v5990_v38  ;;  %v5154_v20 = vmax.bf16 %v5874_v32, %v1590_v8  ;;  %v1594_v8 = vadd.bf16 %v4797_v11, %v5998_v10  ;;  %v5999_v21 = vld [vmem:[#allocation51_spill] sm:$0xff]  ;;  %v6009_v10 = vpack.c.bf16 %v6007_v53, %v6008_v4 }
 0x1de   : > { %3141 = vmatmul.mubr.msk.bf16.gmra.mrb[104].mxu1 %vm4448_vm11, %v5125_v1  ;;  %v6019_v4 = vpack.c.bf16 %v4816_v23, %v4801_v54  ;;  %v6022_v23 = vpack.c.bf16 %v4916_v39, %v4904_v15  ;;  %v6027_v39 = vpack.c.bf16 %v4906_v24, %v4896_v51  ;;  %v6030_v51 = vpack.c.bf16 %v5004_v50, %v4992_v48 }
 0x1df   : > { %2725 = vmatpush1.bf16.msra.mxu1 %v1923_v31  ;;  %3142 = vmatprep.mubr.msk.bf16.mxu1 %vm4486_vm3, %v5122_v63  ;;  %v1585_v43 = vadd.bf16 %v4858_v16, %v5991_v61  ;;  %5994 = vst [vmem:[#allocation31_spill] sm:$0xff] %v5154_v20 }
 0x1e0   : > { %3173 = vmatprep.subr.msk.bf16.mxu1 %vm5993_vm15, %v5992_v19  ;;  %v1610_v54 = vadd.bf16 %v4797_v11, %v6022_v23  ;;  %v1609_v23 = vadd.bf16 %v4858_v16, %v6027_v39  ;;  %v1618_v24 = vadd.bf16 %v4797_v11, %v6030_v51 }
 0x1e1   : > { %v5157_v31 = vmax.bf16 %v5874_v32, %v1585_v43  ;;  %v5186_v43 = vmax.bf16 %v5874_v32, %v1594_v8  ;;  %v1593_v8 = vadd.bf16 %v4858_v16, %v6009_v10  ;;  %v1601_v10 = vadd.bf16 %v4858_v16, %v6019_v4 }
 0x1e3   : > { %2727 = vmatpush1.bf16.msra.mxu1 %v1927_v35  ;;  %5995 = vst [vmem:[#allocation29_spill] sm:$0xff] %v5157_v31  ;;  %6002 = vst [vmem:[#allocation24_spill] sm:$0xff] %v5186_v43  ;;  %v6005_v35 = vld [vmem:[#allocation61_spill] sm:$0xff] }
 0x1e4   : > { %3174 = vmatprep.subr.msk.bf16.mxu1 %vm4786_vm0, %v4791_v14  ;;  %v6000_v14 = vld [vmem:[#allocation48_spill] sm:$0xff] }
 0x1e5   : > { %v6001_v38 = vpack.c.bf16 %v5999_v21, %v6000_v14  ;;  %v5209_v14 = vmax.bf16 %v5874_v32, %v1593_v8 }
 0x1e6   : > { %3143 = vmatmul.mubr.msk.bf16.gmra.mrb[108].mxu1 %vm4486_vm3, %v5157_v31 }
 0x1e7   : > { %2729 = vmatpush1.bf16.msra.mxu1 %v1931_v5  ;;  %3144 = vmatprep.mubr.msk.bf16.mxu1 %vm4524_vm12, %v5154_v20  ;;  %v1589_v61 = vadd.bf16 %v4858_v16, %v6001_v38  ;;  %6011 = vst [vmem:[#allocation23_spill] sm:$0xff] %v5209_v14  ;;  %v6012_v38 = vpack.c.bf16 %v4823_v0, %v4811_v3 }
 0x1e8   : > { %3175 = vmatprep.subr.msk.bf16.mxu1 %vm4839_vm5, %v4844_v40  ;;  %v6004_v40 = vld [vmem:[#allocation63_spill] sm:$0xff]  ;;  %v6018_v3 = vpack.c.bf16 %v4875_v44, %v4863_v2  ;;  %v6023_v44 = vpack.c.bf16 %v4868_v22, %v4852_v41  ;;  %v6026_v41 = vpack.c.bf16 %v4960_v36, %v4948_v9  ;;  %v6031_v36 = vpack.c.bf16 %v4950_v46, %v4940_v18 }
 0x1e9   : > { %v5189_v19 = vmax.bf16 %v5874_v32, %v1589_v61  ;;  %v6006_v5 = vpack.c.bf16 %v6004_v40, %v6005_v35  ;;  %v1602_v61 = vadd.bf16 %v4797_v11, %v6012_v38  ;;  %v6014_v40 = vld [vmem:[#allocation60_spill] sm:$0xff] }
 0x1ea   : > { %v1606_v0 = vadd.bf16 %v4797_v11, %v6018_v3  ;;  %v1605_v3 = vadd.bf16 %v4858_v16, %v6023_v44  ;;  %v1614_v22 = vadd.bf16 %v4797_v11, %v6026_v41  ;;  %v1613_v41 = vadd.bf16 %v4858_v16, %v6031_v36  ;;  %v6056_v27 = vld [vmem:[#allocation24_spill] sm:$0xff] }
 0x1eb   : > { %2731 = vmatpush1.bf16.msra.mxu1 %v1935_v47  ;;  %6003 = vst [vmem:[#allocation22_spill] sm:$0xff] %v5189_v19  ;;  %v1598_v55 = vadd.bf16 %v4797_v11, %v6006_v5  ;;  %v6013_v47 = vld [vmem:[#allocation62_spill] sm:$0xff]  ;;  %v6034_v11 = vpack.c.bf16 %v4994_v30, %v4984_v6 }
 0x1ec   : > { %v6015_v35 = vpack.c.bf16 %v6013_v47, %v6014_v40  ;;  %v5248_v40 = vmax.bf16 %v5874_v32, %v1606_v0 }
 0x1ed   : > { %v5206_v21 = vmax.bf16 %v5874_v32, %v1598_v55  ;;  %v5226_v55 = vmax.bf16 %v5874_v32, %v1602_v61  ;;  %v1617_v18 = vadd.bf16 %v4858_v16, %v6034_v11 }
 0x1ee   : > { %3145 = vmatmul.mubr.msk.bf16.gmra.mrb[112].mxu1 %vm4524_vm12, %v5189_v19  ;;  %v1597_v5 = vadd.bf16 %v4858_v16, %v6015_v35  ;;  %6020 = vst [vmem:[#allocation38_spill] sm:$0xff] %v5248_v40  ;;  %v5251_v35 = vmax.bf16 %v5874_v32, %v1601_v10 }
 0x1ef   : > { %3146 = vmatprep.mubr.msk.bf16.mxu1 %vm4562_vm6, %v5186_v43  ;;  %6010 = vst [vmem:[#allocation21_spill] sm:$0xff] %v5206_v21  ;;  %6016 = vst [vmem:[#allocation26_spill] sm:$0xff] %v5226_v55  ;;  %v5340_v36 = vmax.bf16 %v5874_v32, %v1617_v18 }
 0x1f0   : > { %v5229_v53 = vmax.bf16 %v5874_v32, %v1597_v5  ;;  %6021 = vst [vmem:[#allocation36_spill] sm:$0xff] %v5251_v35 }
 0x1f1   : > { %6035 = vst [vmem:[#allocation45_spill] sm:$0xff] %v5340_v36 }
 0x1f2   : > { %6017 = vst [vmem:[#allocation28_spill] sm:$0xff] %v5229_v53 }
 0x1f6   : > { %3147 = vmatmul.mubr.msk.bf16.gmra.mrb[116].mxu1 %vm4562_vm6, %v5209_v14 }
 0x1f7   : > { %3148 = vmatprep.mubr.msk.bf16.mxu1 %vm4600_vm1, %v5206_v21 }
 0x1fe   : > { %3149 = vmatmul.mubr.msk.bf16.gmra.mrb[120].mxu1 %vm4600_vm1, %v5229_v53 }
 0x1ff   : > { %3150 = vmatprep.mubr.msk.bf16.mxu1 %vm5982_vm9, %v5226_v55 }
 0x201   : > { %v3223_v8 = vpop.f32.mrb[64].mxu0 }
 0x202   : > { %v3224_v38 = vpop.f32.mrb[65].mxu0 }
 0x203   : > { %v5245_v61 = vadd.f32 %v3224_v38, %v3223_v8  ;;  %v3226_v47 = vpop.f32.mrb[66].mxu0  ;;  %v5272_v38 = vmax.bf16 %v5874_v32, %v1610_v54 }
 0x204   : > { %v3227_v5 = vpop.f32.mrb[67].mxu0 }
 0x205   : > { %v5253_v2 = vadd.f32 %v3227_v5, %v3226_v47  ;;  %6024 = vst [vmem:[#allocation30_spill] sm:$0xff] %v5272_v38  ;;  %v5275_v47 = vmax.bf16 %v5874_v32, %v1605_v3 }
 0x206   : > { %3151 = vmatmul.mubr.msk.bf16.gmra.mrb[124].mxu1 %vm5982_vm9, %v5251_v35 }
 0x207   : > { %3152 = vmatprep.mubr.msk.bf16.mxu1 %vm5985_vm10, %v5248_v40  ;;  %6025 = vst [vmem:[#allocation27_spill] sm:$0xff] %v5275_v47 }
 0x209   : > { %v3229_v0 = vpop.f32.mrb[68].mxu0 }
 0x20a   : > { %v3230_v4 = vpop.f32.mrb[69].mxu0 }
 0x20b   : > { %v5269_v10 = vadd.f32 %v3230_v4, %v3229_v0  ;;  %v3232_v8 = vpop.f32.mrb[70].mxu0  ;;  %v5296_v4 = vmax.bf16 %v5874_v32, %v1614_v22 }
 0x20c   : > { %v3233_v5 = vpop.f32.mrb[71].mxu0 }
 0x20d   : > { %v5277_v15 = vadd.f32 %v3233_v5, %v3232_v8  ;;  %6028 = vst [vmem:[#allocation33_spill] sm:$0xff] %v5296_v4  ;;  %v5299_v8 = vmax.bf16 %v5874_v32, %v1609_v23 }
 0x20e   : > { %3153 = vmatmul.mubr.msk.bf16.gmra.mrb[128].mxu1 %vm5985_vm10, %v5275_v47 }
 0x20f   : > { %3154 = vmatprep.mubr.msk.bf16.mxu1 %vm5993_vm15, %v5272_v38  ;;  %6029 = vst [vmem:[#allocation35_spill] sm:$0xff] %v5299_v8 }
 0x211   : > { %v3235_v54 = vpop.f32.mrb[72].mxu0 }
 0x212   : > { %v3236_v44 = vpop.f32.mrb[73].mxu0 }
 0x213   : > { %v5293_v3 = vadd.f32 %v3236_v44, %v3235_v54  ;;  %v3238_v0 = vpop.f32.mrb[74].mxu0  ;;  %v5320_v44 = vmax.bf16 %v5874_v32, %v1618_v24 }
 0x214   : > { %v3239_v5 = vpop.f32.mrb[75].mxu0 }
 0x215   : > { %v5301_v9 = vadd.f32 %v3239_v5, %v3238_v0  ;;  %6032 = vst [vmem:[#allocation40_spill] sm:$0xff] %v5320_v44  ;;  %v5323_v0 = vmax.bf16 %v5874_v32, %v1613_v41 }
 0x216   : > { %3155 = vmatmul.mubr.msk.bf16.gmra.mrb[132].mxu1 %vm5993_vm15, %v5299_v8 }
 0x217   : > { %3156 = vmatprep.mubr.msk.bf16.mxu1 %vm4786_vm0, %v5296_v4  ;;  %6033 = vst [vmem:[#allocation42_spill] sm:$0xff] %v5323_v0 }
 0x219   : > { %v3241_v22 = vpop.f32.mrb[76].mxu0 }
 0x21a   : > { %v3242_v39 = vpop.f32.mrb[77].mxu0 }
 0x21b   : > { %v5317_v23 = vadd.f32 %v3242_v39, %v3241_v22  ;;  %v3244_v54 = vpop.f32.mrb[78].mxu0 }
 0x21c   : > { %v3245_v5 = vpop.f32.mrb[79].mxu0 }
 0x21d   : > { %v5325_v48 = vadd.f32 %v3245_v5, %v3244_v54 }
 0x21e   : > { %3157 = vmatmul.mubr.msk.bf16.gmra.mrb[136].mxu1 %vm4786_vm0, %v5323_v0 }
 0x21f   : > { %3158 = vmatprep.mubr.msk.bf16.mxu1 %vm4839_vm5, %v5320_v44 }
 0x221   : > { %v3247_v46 = vpop.f32.mrb[80].mxu0 }
 0x222   : > { %v3248_v50 = vpop.f32.mrb[81].mxu0 }
 0x223   : > { %v5337_v51 = vadd.f32 %v3248_v50, %v3247_v46  ;;  %v3250_v24 = vpop.f32.mrb[82].mxu0 }
 0x224   : > { %v3251_v41 = vpop.f32.mrb[83].mxu0 }
 0x225   : > { %v5342_v22 = vadd.f32 %v3251_v41, %v3250_v24 }
 0x226   : > { %3159 = vmatmul.mubr.msk.bf16.gmra.mrb[140].mxu1 %vm4839_vm5, %v5340_v36 }
 0x229   : > { %v3253_v39 = vpop.f32.mrb[84].mxu0 }
 0x22a   : > { %v3254_v54 = vpop.f32.mrb[85].mxu0 }
 0x22b   : > { %v5347_v6 = vadd.f32 %v3254_v54, %v3253_v39  ;;  %v3256_v16 = vpop.f32.mrb[86].mxu0 }
 0x22c   : > { %v3257_v30 = vpop.f32.mrb[87].mxu0 }
 0x22d   : > { %v5349_v5 = vadd.f32 %v3257_v30, %v3256_v16 }
 0x231   : > { %v3259_v11 = vpop.f32.mrb[88].mxu0 }
 0x232   : > { %v3260_v46 = vpop.f32.mrb[89].mxu0 }
 0x233   : > { %v5351_v50 = vadd.f32 %v3260_v46, %v3259_v11  ;;  %v3262_v32 = vpop.f32.mrb[90].mxu0 }
 0x234   : > { %v3263_v18 = vpop.f32.mrb[91].mxu0 }
 0x235   : > { %v5353_v24 = vadd.f32 %v3263_v18, %v3262_v32 }
 0x239   : > { %v3265_v41 = vpop.f32.mrb[92].mxu0 }
 0x23a   : > { %v3266_v44 = vpop.f32.mrb[93].mxu0 }
 0x23b   : > { %v5355_v58 = vadd.f32 %v3266_v44, %v3265_v41  ;;  %v3268_v36 = vpop.f32.mrb[94].mxu0 }
 0x23c   : > { %v3269_v0 = vpop.f32.mrb[95].mxu0 }
 0x23d   : > { %v5357_v39 = vadd.f32 %v3269_v0, %v3268_v36 }
 0x241   : > { %v3271_v54 = vpop.f32.mrb[96].mxu0 }
 0x242   : > { %v3272_v34 = vpop.f32.mrb[97].mxu0 }
 0x243   : > { %v5359_v16 = vadd.f32 %v3272_v34, %v3271_v54  ;;  %v3274_v30 = vpop.f32.mrb[98].mxu0 }
 0x244   : > { %v3275_v4 = vpop.f32.mrb[99].mxu0 }
 0x245   : > { %v5361_v11 = vadd.f32 %v3275_v4, %v3274_v30 }
 0x249   : > { %v3277_v46 = vpop.f32.mrb[100].mxu0 }
 0x24a   : > { %v3278_v8 = vpop.f32.mrb[101].mxu0 }
 0x24b   : > { %v5363_v32 = vadd.f32 %v3278_v8, %v3277_v46  ;;  %v3280_v18 = vpop.f32.mrb[102].mxu0 }
 0x24c   : > { %v3281_v28 = vpop.f32.mrb[103].mxu0 }
 0x24d   : > { %v5365_v44 = vadd.f32 %v3281_v28, %v3280_v18 }
 0x251   : > { %v3283_v41 = vpop.f32.mrb[104].mxu0 }
 0x252   : > { %v3284_v38 = vpop.f32.mrb[105].mxu0 }
 0x253   : > { %v5367_v0 = vadd.f32 %v3284_v38, %v3283_v41  ;;  %v3286_v36 = vpop.f32.mrb[106].mxu0 }
 0x254   : > { %v3287_v47 = vpop.f32.mrb[107].mxu0 }
 0x255   : > { %v5369_v34 = vadd.f32 %v3287_v47, %v3286_v36 }
 0x259   : > { %v3289_v54 = vpop.f32.mrb[108].mxu0 }
 0x25a   : > { %v3290_v49 = vpop.f32.mrb[109].mxu0 }
 0x25b   : > { %v5371_v4 = vadd.f32 %v3290_v49, %v3289_v54  ;;  %v3292_v30 = vpop.f32.mrb[110].mxu0 }
 0x25c   : > { %v3293_v40 = vpop.f32.mrb[111].mxu0 }
 0x25d   : > { %v5373_v8 = vadd.f32 %v3293_v40, %v3292_v30 }
 0x261   : > { %v3295_v46 = vpop.f32.mrb[64].mxu1 }
 0x262   : > { %v3296_v35 = vpop.f32.mrb[65].mxu1 }
 0x263   : > { %v5375_v28 = vadd.f32 %v3296_v35, %v3295_v46  ;;  %v3298_v18 = vpop.f32.mrb[66].mxu1 }
 0x264   : > { %v3299_v59 = vpop.f32.mrb[67].mxu1 }
 0x265   : > { %v5377_v38 = vadd.f32 %v3299_v59, %v3298_v18 }
 0x269   : > { %v3301_v41 = vpop.f32.mrb[68].mxu1 }
 0x26a   : > { %v3302_v55 = vpop.f32.mrb[69].mxu1 }
 0x26b   : > { %v5379_v47 = vadd.f32 %v3302_v55, %v3301_v41  ;;  %v3304_v36 = vpop.f32.mrb[70].mxu1 }
 0x26c   : > { %v3305_v53 = vpop.f32.mrb[71].mxu1 }
 0x26d   : > { %v5381_v49 = vadd.f32 %v3305_v53, %v3304_v36  ;;  %v5394_v53 = vld [vmem:[%s5718_s5] ss:$0 sm:$0xff] }
 0x26e   : > { %v2237_v36 = vadd.f32 %v5245_v61, %v5394_v53  ;;  %v2245_v12 = vadd.f32 %v5269_v10, %v5394_v53  ;;  %v2248_v61 = vadd.f32 %v5277_v15, %v5394_v53 }
 0x271   : > { %v3307_v54 = vpop.f32.mrb[72].mxu1 }
 0x272   : > { %v3308_v37 = vpop.f32.mrb[73].mxu1 }
 0x273   : > { %v5383_v40 = vadd.f32 %v3308_v37, %v3307_v54  ;;  %v3310_v30 = vpop.f32.mrb[74].mxu1 }
 0x274   : > { %v3311_v21 = vpop.f32.mrb[75].mxu1 }
 0x275   : > { %v5385_v35 = vadd.f32 %v3311_v21, %v3310_v30 }
 0x279   : > { %v3313_v46 = vpop.f32.mrb[76].mxu1 }
 0x27a   : > { %v3314_v14 = vpop.f32.mrb[77].mxu1 }
 0x27b   : > { %v5387_v59 = vadd.f32 %v3314_v14, %v3313_v46  ;;  %v3316_v18 = vpop.f32.mrb[78].mxu1  ;;  %v2240_v14 = vadd.f32 %v5253_v2, %v5394_v53 }
 0x27c   : > { %v3317_v62 = vpop.f32.mrb[79].mxu1 }
 0x27d   : > { %v5389_v55 = vadd.f32 %v3317_v62, %v3316_v18 }
 0x281   : > { %v3335_v41 = vpop.f32.mrb[80].mxu1 }
 0x282   : > { %v3336_v37 = vpop.f32.mrb[81].mxu1 }
 0x283   : > { %v3337_v21 = vadd.f32 %v3336_v37, %v3335_v41  ;;  %v3338_v54 = vpop.f32.mrb[82].mxu1 }
 0x284   : > { %v3339_v30 = vpop.f32.mrb[83].mxu1 }
 0x285   : > { %v2398_v46 = vadd.f32 %v3337_v21, %v2237_v36  ;;  %v3340_v43 = vadd.f32 %v3339_v30, %v3338_v54 }
 0x287   : > { %v2401_v62 = vadd.f32 %v3340_v43, %v2240_v14  ;;  %3623 = vtanh.f32 %v2398_v46  ;;  %v5407_v43 = vld [vmem:[%s5719_s6] sm:$0x1] }
 0x288   : > { %3447 = vmatprep.mubr.bf16.mxu0 %v5407_v43 }
 0x289   : > { %3625 = vtanh.f32 %v2401_v62  ;;  %v3341_v18 = vpop.f32.mrb[84].mxu1 }
 0x28a   : > { %v3342_v19 = vpop.f32.mrb[85].mxu1 }
 0x28b   : > { %v3343_v20 = vadd.f32 %v3342_v19, %v3341_v18  ;;  %v3344_v31 = vpop.f32.mrb[86].mxu1 }
 0x28c   : > { %v3345_v42 = vpop.f32.mrb[87].mxu1 }
 0x28d   : > { %v2406_v41 = vadd.f32 %v3343_v20, %v2245_v12  ;;  %v3346_v37 = vadd.f32 %v3345_v42, %v3344_v31  ;;  %v2253_v12 = vadd.f32 %v5293_v3, %v5394_v53  ;;  %v2261_v3 = vadd.f32 %v5317_v23, %v5394_v53 }
 0x28e   : > { %v2269_v23 = vadd.f32 %v5337_v51, %v5394_v53  ;;  %v2277_v51 = vadd.f32 %v5347_v6, %v5394_v53  ;;  %v2285_v6 = vadd.f32 %v5351_v50, %v5394_v53  ;;  %v2293_v50 = vadd.f32 %v5355_v58, %v5394_v53 }
 0x28f   : > { %v2409_v63 = vadd.f32 %v3346_v37, %v2248_v61  ;;  %3627 = vtanh.f32 %v2406_v41  ;;  %v2301_v58 = vadd.f32 %v5359_v16, %v5394_v53  ;;  %v2309_v16 = vadd.f32 %v5363_v32, %v5394_v53 }
 0x290   : > { %v2317_v32 = vadd.f32 %v5367_v0, %v5394_v53 }
 0x291   : > { %3629 = vtanh.f32 %v2409_v63  ;;  %v3347_v2 = vpop.f32.mrb[88].mxu1  ;;  %v5410_v10 = vpop.eup %3623  ;;  %v2256_v63 = vadd.f32 %v5301_v9, %v5394_v53 }
 0x292   : > { %v3348_v19 = vpop.f32.mrb[89].mxu1 }
 0x293   : > { %v5412_v36 = vpop.eup %3625  ;;  %v3349_v42 = vadd.f32 %v3348_v19, %v3347_v2  ;;  %v3350_v20 = vpop.f32.mrb[90].mxu1  ;;  %v2264_v2 = vadd.f32 %v5325_v48, %v5394_v53  ;;  %v2573_v48 = vld [vmem:[#allocation7] sm:$0x1] }
 0x294   : > { %v3351_v31 = vpop.f32.mrb[91].mxu1  ;;  %v2557_v15 = vpack.c.bf16 %v5412_v36, %v5410_v10  ;;  %2576 = vperm.xlu0 %3493, %v2573_v48   ;;  %v2325_v48 = vadd.f32 %v5371_v4, %v5394_v53 }
 0x295   : > { %v2414_v21 = vadd.f32 %v3349_v42, %v2253_v12  ;;  %v3352_v54 = vadd.f32 %v3351_v31, %v3350_v20 }
 0x297   : > { %v2417_v30 = vadd.f32 %v3352_v54, %v2256_v63  ;;  %3631 = vtanh.f32 %v2414_v21 }
 0x299   : > { %3633 = vtanh.f32 %v2417_v30  ;;  %v3353_v14 = vpop.f32.mrb[92].mxu1  ;;  %v5420_v46 = vpop.eup %3627 }
 0x29a   : > { %v3354_v62 = vpop.f32.mrb[93].mxu1 }
 0x29b   : > { %v5422_v18 = vpop.eup %3629  ;;  %v3355_v61 = vadd.f32 %v3354_v62, %v3353_v14  ;;  %v3356_v41 = vpop.f32.mrb[94].mxu1  ;;  %v2272_v62 = vadd.f32 %v5342_v22, %v5394_v53 }
 0x29c   : > { %v3357_v37 = vpop.f32.mrb[95].mxu1  ;;  %v6036_v36 = vpack.c.bf16 %v5422_v18, %v5420_v46 }
 0x29d   : > { %v2422_v19 = vadd.f32 %v3355_v61, %v2261_v3  ;;  %v3358_v12 = vadd.f32 %v3357_v37, %v3356_v41 }
 0x29f   : > { %v2425_v42 = vadd.f32 %v3358_v12, %v2264_v2  ;;  %3635 = vtanh.f32 %v2422_v19 }
 0x2a1   : > { %3637 = vtanh.f32 %v2425_v42  ;;  %v3359_v20 = vpop.f32.mrb[96].mxu1  ;;  %v5430_v31 = vpop.eup %3631 }
 0x2a2   : > { %v3360_v63 = vpop.f32.mrb[97].mxu1 }
 0x2a3   : > { %v5432_v21 = vpop.eup %3633  ;;  %v3361_v54 = vadd.f32 %v3360_v63, %v3359_v20  ;;  %v3362_v30 = vpop.f32.mrb[98].mxu1 }
 0x2a4   : > { %v3363_v14 = vpop.f32.mrb[99].mxu1  ;;  %v6037_v18 = vpack.c.bf16 %v5432_v21, %v5430_v31 }
 0x2a5   : > { %v2430_v3 = vadd.f32 %v3361_v54, %v2269_v23  ;;  %v3364_v61 = vadd.f32 %v3363_v14, %v3362_v30  ;;  %v2280_v23 = vadd.f32 %v5349_v5, %v5394_v53 }
 0x2a7   : > { %v2433_v41 = vadd.f32 %v3364_v61, %v2272_v62  ;;  %3639 = vtanh.f32 %v2430_v3 }
 0x2a9   : > { %3641 = vtanh.f32 %v2433_v41  ;;  %v3365_v37 = vpop.f32.mrb[100].mxu1  ;;  %v5440_v2 = vpop.eup %3635 }
 0x2aa   : > { %v3366_v19 = vpop.f32.mrb[101].mxu1 }
 0x2ab   : > { %v5442_v12 = vpop.eup %3637  ;;  %v3367_v42 = vadd.f32 %v3366_v19, %v3365_v37  ;;  %v3368_v20 = vpop.f32.mrb[102].mxu1 }
 0x2ac   : > { %v3369_v63 = vpop.f32.mrb[103].mxu1  ;;  %v6038_v21 = vpack.c.bf16 %v5442_v12, %v5440_v2 }
 0x2ad   : > { %v2438_v54 = vadd.f32 %v3367_v42, %v2277_v51  ;;  %v3370_v30 = vadd.f32 %v3369_v63, %v3368_v20  ;;  %v2288_v51 = vadd.f32 %v5353_v24, %v5394_v53 }
 0x2af   : > { %v2441_v14 = vadd.f32 %v3370_v30, %v2280_v23  ;;  %3643 = vtanh.f32 %v2438_v54 }
 0x2b1   : > { %3645 = vtanh.f32 %v2441_v14  ;;  %v3371_v62 = vpop.f32.mrb[104].mxu1  ;;  %v5450_v3 = vpop.eup %3639 }
 0x2b2   : > { %v3372_v61 = vpop.f32.mrb[105].mxu1 }
 0x2b3   : > { %v5452_v41 = vpop.eup %3641  ;;  %v3373_v37 = vadd.f32 %v3372_v61, %v3371_v62  ;;  %v3374_v19 = vpop.f32.mrb[106].mxu1 }
 0x2b4   : > { %v3375_v22 = vpop.f32.mrb[107].mxu1  ;;  %v6039_v12 = vpack.c.bf16 %v5452_v41, %v5450_v3 }
 0x2b5   : > { %v2446_v42 = vadd.f32 %v3373_v37, %v2285_v6  ;;  %v3376_v20 = vadd.f32 %v3375_v22, %v3374_v19  ;;  %v2296_v22 = vadd.f32 %v5357_v39, %v5394_v53 }
 0x2b7   : > { %v2449_v63 = vadd.f32 %v3376_v20, %v2288_v51  ;;  %3647 = vtanh.f32 %v2446_v42 }
 0x2b9   : > { %3649 = vtanh.f32 %v2449_v63  ;;  %v3377_v23 = vpop.f32.mrb[108].mxu1  ;;  %v5460_v54 = vpop.eup %3643 }
 0x2ba   : > { %v3378_v30 = vpop.f32.mrb[109].mxu1 }
 0x2bb   : > { %v5462_v14 = vpop.eup %3645  ;;  %v3379_v62 = vadd.f32 %v3378_v30, %v3377_v23  ;;  %v3380_v61 = vpop.f32.mrb[110].mxu1 }
 0x2bc   : > { %v3381_v5 = vpop.f32.mrb[111].mxu1  ;;  %v6040_v41 = vpack.c.bf16 %v5462_v14, %v5460_v54  ;;  %v1877_v54 = vsel %vm4256_vm8, %v4899_v33, 0  ;;  %v1881_v14 = vsel %vm4282_vm13, %v4943_v13, 0 }
 0x2bd   : > { %v2454_v6 = vadd.f32 %v3379_v62, %v2293_v50  ;;  %v3382_v37 = vadd.f32 %v3381_v5, %v3380_v61  ;;  %v2304_v5 = vadd.f32 %v5361_v11, %v5394_v53 }
 0x2bf   : > { %v2457_v19 = vadd.f32 %v3382_v37, %v2296_v22  ;;  %3651 = vtanh.f32 %v2454_v6 }
 0x2c1   : > { %3653 = vtanh.f32 %v2457_v19  ;;  %v3383_v51 = vpop.f32.mrb[112].mxu1  ;;  %v5470_v42 = vpop.eup %3647 }
 0x2c2   : > { %v3384_v20 = vpop.f32.mrb[113].mxu1 }
 0x2c3   : > { %v5472_v63 = vpop.eup %3649  ;;  %v3385_v23 = vadd.f32 %v3384_v20, %v3383_v51  ;;  %v3386_v30 = vpop.f32.mrb[114].mxu1 }
 0x2c4   : > { %v3387_v24 = vpop.f32.mrb[115].mxu1 }
 0x2c5   : > { %v2462_v50 = vadd.f32 %v3385_v23, %v2301_v58  ;;  %v3388_v62 = vadd.f32 %v3387_v24, %v3386_v30  ;;  %v2312_v24 = vadd.f32 %v5365_v44, %v5394_v53  ;;  %v2320_v44 = vadd.f32 %v5369_v34, %v5394_v53 }
 0x2c7   : > { %v2465_v61 = vadd.f32 %v3388_v62, %v2304_v5  ;;  %3655 = vtanh.f32 %v2462_v50 }
 0x2c9   : > { %3657 = vtanh.f32 %v2465_v61  ;;  %v3389_v22 = vpop.f32.mrb[116].mxu1  ;;  %v5480_v6 = vpop.eup %3651 }
 0x2ca   : > { %v3390_v37 = vpop.f32.mrb[117].mxu1 }
 0x2cb   : > { %v5482_v19 = vpop.eup %3653  ;;  %v3391_v51 = vadd.f32 %v3390_v37, %v3389_v22  ;;  %v3392_v20 = vpop.f32.mrb[118].mxu1 }
 0x2cc   : > { %v3393_v39 = vpop.f32.mrb[119].mxu1 }
 0x2cd   : > { %v2470_v58 = vadd.f32 %v3391_v51, %v2309_v16  ;;  %v3394_v23 = vadd.f32 %v3393_v39, %v3392_v20 }
 0x2cf   : > { %v2473_v30 = vadd.f32 %v3394_v23, %v2312_v24  ;;  %3659 = vtanh.f32 %v2470_v58 }
 0x2d1   : > { %3661 = vtanh.f32 %v2473_v30  ;;  %v3395_v5 = vpop.f32.mrb[120].mxu1  ;;  %v3656_v50 = vpop.eup %3655 }
 0x2d2   : > { %v3396_v62 = vpop.f32.mrb[121].mxu1 }
 0x2d3   : > { %v3658_v61 = vpop.eup %3657  ;;  %v3397_v22 = vadd.f32 %v3396_v62, %v3395_v5  ;;  %v3398_v37 = vpop.f32.mrb[122].mxu1 }
 0x2d4   : > { %v3399_v9 = vpop.f32.mrb[123].mxu1  ;;  %v2565_v11 = vpack.c.bf16 %v3658_v61, %v3656_v50 }
 0x2d5   : > { %v2478_v39 = vadd.f32 %v3397_v22, %v2317_v32  ;;  %v3400_v16 = vadd.f32 %v3399_v9, %v3398_v37  ;;  %v2328_v9 = vadd.f32 %v5373_v8, %v5394_v53  ;;  %v2333_v32 = vadd.f32 %v5375_v28, %v5394_v53 }
 0x2d6   : > { %3431 = vmatprep.subr.bf16.mxu0 %v2565_v11 }
 0x2d7   : > { %v2481_v51 = vadd.f32 %v3400_v16, %v2320_v44  ;;  %3432 = vmatpush3.bf16.xpose.msra.mxu0 %v2557_v15  ;;  %3663 = vtanh.f32 %v2478_v39  ;;  %v2336_v39 = vadd.f32 %v5377_v38, %v5394_v53 }
 0x2d9   : > { %3665 = vtanh.f32 %v2481_v51  ;;  %v3401_v0 = vpop.f32.mrb[124].mxu1  ;;  %v3660_v20 = vpop.eup %3659 }
 0x2da   : > { %v3402_v24 = vpop.f32.mrb[125].mxu1 }
 0x2db   : > { %v3662_v58 = vpop.eup %3661  ;;  %v3403_v23 = vadd.f32 %v3402_v24, %v3401_v0  ;;  %v3404_v30 = vpop.f32.mrb[126].mxu1 }
 0x2dc   : > { %v3405_v34 = vpop.f32.mrb[127].mxu1  ;;  %v2566_v5 = vpack.c.bf16 %v3662_v58, %v3660_v20  ;;  %v2341_v58 = vadd.f32 %v5379_v47, %v5394_v53 }
 0x2dd   : > { %v2486_v11 = vadd.f32 %v3403_v23, %v2325_v48  ;;  %v3406_v50 = vadd.f32 %v3405_v34, %v3404_v30  ;;  %v2344_v34 = vadd.f32 %v5381_v49, %v5394_v53 }
 0x2de   : > { %3433 = vmatprep.subr.bf16.mxu0 %v2566_v5 }
 0x2df   : > { %v2489_v10 = vadd.f32 %v3406_v50, %v2328_v9  ;;  %3434 = vmatpush3.bf16.xpose.msra.mxu0 %v6036_v36  ;;  %3667 = vtanh.f32 %v2486_v11  ;;  %v2349_v36 = vadd.f32 %v5383_v40, %v5394_v53 }
 0x2e1   : > { %3669 = vtanh.f32 %v2489_v10  ;;  %v3407_v15 = vpop.f32.mrb[128].mxu1  ;;  %v3664_v62 = vpop.eup %3663 }
 0x2e2   : > { %v3408_v4 = vpop.f32.mrb[129].mxu1 }
 0x2e3   : > { %v3666_v61 = vpop.eup %3665  ;;  %v3409_v22 = vadd.f32 %v3408_v4, %v3407_v15  ;;  %v3410_v37 = vpop.f32.mrb[130].mxu1 }
 0x2e4   : > { %v3411_v8 = vpop.f32.mrb[131].mxu1  ;;  %v2567_v44 = vpack.c.bf16 %v3666_v61, %v3664_v62  ;;  %v2352_v61 = vadd.f32 %v5385_v35, %v5394_v53 }
 0x2e5   : > { %v2494_v16 = vadd.f32 %v3409_v22, %v2333_v32  ;;  %v3412_v51 = vadd.f32 %v3411_v8, %v3410_v37 }
 0x2e6   : > { %3435 = vmatprep.subr.bf16.mxu0 %v2567_v44 }
 0x2e7   : > { %v2497_v46 = vadd.f32 %v3412_v51, %v2336_v39  ;;  %3436 = vmatpush3.bf16.xpose.msra.mxu0 %v6037_v18  ;;  %3671 = vtanh.f32 %v2494_v16  ;;  %v2357_v39 = vadd.f32 %v5387_v59, %v5394_v53  ;;  %v2360_v18 = vadd.f32 %v5389_v55, %v5394_v53 }
 0x2e9   : > { %3673 = vtanh.f32 %v2497_v46  ;;  %v3413_v0 = vpop.f32.mrb[132].mxu1  ;;  %v3668_v20 = vpop.eup %3667 }
 0x2ea   : > { %v3414_v28 = vpop.f32.mrb[133].mxu1 }
 0x2eb   : > { %v3670_v24 = vpop.eup %3669  ;;  %v3415_v48 = vadd.f32 %v3414_v28, %v3413_v0  ;;  %v3416_v23 = vpop.f32.mrb[134].mxu1 }
 0x2ec   : > { %v3417_v38 = vpop.f32.mrb[135].mxu1  ;;  %v2568_v30 = vpack.c.bf16 %v3670_v24, %v3668_v20 }
 0x2ed   : > { %v2502_v5 = vadd.f32 %v3415_v48, %v2341_v58  ;;  %v3418_v9 = vadd.f32 %v3417_v38, %v3416_v23  ;;  %v6041_v58 = vpack.c.bf16 %v5472_v63, %v5470_v42  ;;  %v6042_v23 = vpack.c.bf16 %v5482_v19, %v5480_v6  ;;  %v6052_v63 = vld [vmem:[#allocation29_spill] sm:$0xff]  ;;  %v6053_v19 = vld [vmem:[#allocation31_spill] sm:$0xff] }
 0x2ee   : > { %3437 = vmatprep.subr.bf16.mxu0 %v2568_v30  ;;  %v1905_v6 = vsel %vm4486_vm3, %v6052_v63, 0  ;;  %v6055_v30 = vld [vmem:[#allocation22_spill] sm:$0xff] }
 0x2ef   : > { %v2505_v31 = vadd.f32 %v3418_v9, %v2344_v34  ;;  %3438 = vmatpush3.bf16.xpose.msra.mxu0 %v6038_v21  ;;  %3675 = vtanh.f32 %v2502_v5  ;;  %v1909_v34 = vsel %vm4524_vm12, %v6055_v30, 0  ;;  %v6058_v5 = vld [vmem:[#allocation23_spill] sm:$0xff] }
 0x2f0   : > { %v1913_v9 = vsel %vm4562_vm6, %v6058_v5, 0 }
 0x2f1   : > { %3677 = vtanh.f32 %v2505_v31  ;;  %v3419_v11 = vpop.f32.mrb[136].mxu1  ;;  %v3672_v50 = vpop.eup %3671  ;;  %v6059_v31 = vld [vmem:[#allocation21_spill] sm:$0xff] }
 0x2f2   : > { %v3420_v47 = vpop.f32.mrb[137].mxu1 }
 0x2f3   : > { %v3674_v10 = vpop.eup %3673  ;;  %v3421_v15 = vadd.f32 %v3420_v47, %v3419_v11  ;;  %v3422_v62 = vpop.f32.mrb[138].mxu1  ;;  %v6061_v11 = vld [vmem:[#allocation28_spill] sm:$0xff]  ;;  %v6062_v47 = vld [vmem:[#allocation26_spill] sm:$0xff] }
 0x2f4   : > { %v3423_v49 = vpop.f32.mrb[139].mxu1  ;;  %v2569_v4 = vpack.c.bf16 %v3674_v10, %v3672_v50  ;;  %v1917_v50 = vsel %vm4600_vm1, %v6061_v11, 0 }
 0x2f5   : > { %v2510_v32 = vadd.f32 %v3421_v15, %v2349_v36  ;;  %v3424_v22 = vadd.f32 %v3423_v49, %v3422_v62  ;;  %v6064_v36 = vld [vmem:[#allocation36_spill] sm:$0xff]  ;;  %v6065_v62 = vld [vmem:[#allocation38_spill] sm:$0xff] }
 0x2f6   : > { %3439 = vmatprep.subr.bf16.mxu0 %v2569_v4  ;;  %v1921_v15 = vsel %vm5982_vm9, %v6064_v36, 0  ;;  %v6067_v4 = vld [vmem:[#allocation27_spill] sm:$0xff] }
 0x2f7   : > { %v2513_v2 = vadd.f32 %v3424_v22, %v2352_v61  ;;  %3440 = vmatpush3.bf16.xpose.msra.mxu0 %v6039_v12  ;;  %3679 = vtanh.f32 %v2510_v32  ;;  %v1925_v61 = vsel %vm5985_vm10, %v6067_v4, 0  ;;  %v6068_v32 = vld [vmem:[#allocation30_spill] sm:$0xff] }
 0x2f9   : > { %3681 = vtanh.f32 %v2513_v2  ;;  %v3425_v37 = vpop.f32.mrb[140].mxu1  ;;  %v3676_v8 = vpop.eup %3675  ;;  %v6070_v2 = vld [vmem:[#allocation35_spill] sm:$0xff] }
 0x2fa   : > { %v3426_v40 = vpop.f32.mrb[141].mxu1  ;;  %v1929_v12 = vsel %vm5993_vm15, %v6070_v2, 0 }
 0x2fb   : > { %v3678_v44 = vpop.eup %3677  ;;  %v3427_v16 = vadd.f32 %v3426_v40, %v3425_v37  ;;  %v3428_v51 = vpop.f32.mrb[142].mxu1  ;;  %v6071_v37 = vld [vmem:[#allocation33_spill] sm:$0xff]  ;;  %v6073_v40 = vld [vmem:[#allocation42_spill] sm:$0xff] }
 0x2fc   : > { %v3429_v35 = vpop.f32.mrb[143].mxu1  ;;  %v2570_v46 = vpack.c.bf16 %v3678_v44, %v3676_v8  ;;  %v1933_v44 = vsel %vm4786_vm0, %v6073_v40, 0 }
 0x2fd   : > { %v2518_v0 = vadd.f32 %v3427_v16, %v2357_v39  ;;  %v3430_v20 = vadd.f32 %v3429_v35, %v3428_v51  ;;  %v6074_v39 = vld [vmem:[#allocation40_spill] sm:$0xff]  ;;  %v6076_v51 = vld [vmem:[#allocation45_spill] sm:$0xff] }
 0x2fe   : > { %3441 = vmatprep.subr.bf16.mxu0 %v2570_v46  ;;  %v1937_v35 = vsel %vm4839_vm5, %v6076_v51, 0  ;;  %v3719_v46 = vmov -1e+30  }
 0x2ff   : > { %v2521_v3 = vadd.f32 %v3430_v20, %v2360_v18  ;;  %3442 = vmatpush3.bf16.xpose.msra.mxu0 %v6040_v41  ;;  %3683 = vtanh.f32 %v2518_v0  ;;  %v6077_v18 = vlaneseq  ;;  %v6078_v41 = vld [vmem:[#allocation8_spill] sm:$0xff] }
 0x301   : > { %3685 = vtanh.f32 %v2521_v3  ;;  %v3680_v28 = vpop.eup %3679  ;;  %v565_v0 = vand.u32 127, %v6077_v18 }
 0x303   : > { %v3682_v24 = vpop.eup %3681  ;;  %v566_v20 = vadd.s32 128, %v565_v0 }
 0x304   : > { %v2571_v59 = vpack.c.bf16 %v3682_v24, %v3680_v28  ;;  %v567_v28 = vadd.s32 %v565_v0, %v6078_v41  ;;  %v6079_v24 = vld [vmem:[#allocation11_spill] sm:$0xff] }
 0x306   : > { %3443 = vmatprep.subr.bf16.mxu0 %v2571_v59 }
 0x307   : > { %3444 = vmatpush3.bf16.xpose.msra.mxu0 %v6041_v58  ;;  %v568_v58 = vadd.s32 %v566_v20, %v6078_v41 }
 0x309   : > { %v3684_v48 = vpop.eup %3683 }
 0x30b   : > { %v3686_v55 = vpop.eup %3685 }
 0x30c   : > { %v2572_v53 = vpack.c.bf16 %v3686_v55, %v3684_v48  ;;  %v6080_v48 = vld [vmem:[#allocation10_spill] sm:$0xff] }
 0x30e   : > { %3445 = vmatprep.subr.bf16.mxu0 %v2572_v53 }
 0x30f   : > { %3446 = vmatpush3.bf16.xpose.msra.mxu0 %v6042_v23 }
 0x310   : > { %3182 = vmatprep.subr.msk.bf16.mxu0 %vm4256_vm8, %v4847_v52  ;;  %v1885_v52 = vsel %vm4308_vm2, %v4987_v56, 0  ;;  %v6048_v56 = vld [vmem:[#allocation16_spill] sm:$0xff]  ;;  %vm455_vm8 = vcmask 0  }
 0x311   : > { %456 = vst.msk [vmem:[#allocation2] sm:$0x1] %vm455_vm8, %v3719_v46 }
 0x313   : > { %v2577_v3 = vpop.permute.xlu0 %2576 }
 0x314   : > { %v2582_v59 = vrot.slane %v2577_v3, %v6079_v24 }
 0x316   : > { %3448 = vmatmul.mubr.bf16.vlgmr.msra.gmra.mrb[112].mxu0 %v5407_v43  ;;  %v6050_v43 = vld [vmem:[#allocation19_spill] sm:$0xff] }
 0x317   : > { %2742 = vmatpush1.bf16.msra.mxu0 %v1877_v54 }
 0x318   : > { %3183 = vmatprep.subr.msk.bf16.mxu0 %vm4282_vm13, %v4894_v57  ;;  %v6045_v57 = vld [vmem:[#allocation15_spill] sm:$0xff]  ;;  %vm569_vm13 = vcmp.lt.s32.totalorder %v567_v28, %v6080_v48 }
 0x31b   : > { %2744 = vmatpush1.bf16.msra.mxu0 %v1881_v14 }
 0x31c   : > { %3184 = vmatprep.subr.msk.bf16.mxu0 %vm4308_vm2, %v4938_v60  ;;  %v1893_v60 = vsel %vm4372_vm14, %v6045_v57, 0  ;;  %vm570_vm2 = vcmp.lt.s32.totalorder %v568_v58, %v6080_v48 }
 0x31f   : > { %2746 = vmatpush1.bf16.msra.mxu0 %v1885_v52 }
 0x320   : > { %3185 = vmatprep.subr.msk.bf16.mxu0 %vm4334_vm7, %v4982_v17  ;;  %v1897_v17 = vsel %vm4410_vm4, %v6048_v56, 0  ;;  %vm2649_vm7 = vcmask 1040384  }
 0x323   : > { %2748 = vmatpush1.bf16.msra.mxu0 %v1889_v26 }
 0x324   : > { %3186 = vmatprep.subr.msk.bf16.mxu0 %vm4372_vm14, %v6043_v45  ;;  %vm2644_vm14 = vcmp.lt.s32.totalorder %v6077_v18, 256 }
 0x327   : > { %2750 = vmatpush1.bf16.msra.mxu0 %v1893_v60 }
 0x328   : > { %3187 = vmatprep.subr.msk.bf16.mxu0 %vm4410_vm4, %v6046_v7  ;;  %v6081_v7 = vld [vmem:[#allocation9_spill] sm:$0xff]  ;;  %vm5667_vm4 = vcmp.lt.s32.totalorder %v6077_v18, 512 }
 0x32b   : > { %2752 = vmatpush1.bf16.msra.mxu0 %v1897_v17 }
 0x32c   : > { %3188 = vmatprep.subr.msk.bf16.mxu0 %vm4448_vm11, %v6049_v29  ;;  %v3720_v29 = vmov 0.0   ;;  %vm3176_vm11 = vmpackc.low %vm570_vm2, %vm570_vm2 }
 0x32d   : > { %457 = vst.msk [vmem:[#allocation3] sm:$0x1] %vm455_vm8, %v3720_v29 }
 0x32e   : > { %462 = vst.msk [vmem:[#allocation4] sm:$0xf] %vm5667_vm4, %v3720_v29 }
 0x32f   : > { %2754 = vmatpush1.bf16.msra.mxu0 %v1901_v25  ;;  %v2655_v25 = vld [vmem:[#allocation2] sm:$0x1] }
 0x330   : > { %3189 = vmatprep.subr.msk.bf16.mxu0 %vm4486_vm3, %v6050_v43  ;;  %vm3179_vm3 = vmpackc.low %vm569_vm13, %vm569_vm13 }
 0x333   : > { %2756 = vmatpush1.bf16.msra.mxu0 %v1905_v6 }
 0x334   : > { %3190 = vmatprep.subr.msk.bf16.mxu0 %vm4524_vm12, %v6053_v19  ;;  %v2677_v4 = vld [vmem:[#allocation3] sm:$0x1] }
 0x335   : > { %v2687_v41 = vld [vmem:[#allocation4] sm:$0xf] }
 0x337   : > { %2758 = vmatpush1.bf16.msra.mxu0 %v1909_v34 }
 0x338   : > { %3191 = vmatprep.subr.msk.bf16.mxu0 %vm4562_vm6, %v6056_v27 }
 0x33b   : > { %2760 = vmatpush1.bf16.msra.mxu0 %v1913_v9 }
 0x33c   : > { %3192 = vmatprep.subr.msk.bf16.mxu0 %vm4600_vm1, %v6059_v31 }
 0x33f   : > { %2762 = vmatpush1.bf16.msra.mxu0 %v1917_v50 }
 0x340   : > { %3193 = vmatprep.subr.msk.bf16.mxu0 %vm5982_vm9, %v6062_v47 }
 0x343   : > { %2764 = vmatpush1.bf16.msra.mxu0 %v1921_v15 }
 0x344   : > { %3194 = vmatprep.subr.msk.bf16.mxu0 %vm5985_vm10, %v6065_v62 }
 0x347   : > { %2766 = vmatpush1.bf16.msra.mxu0 %v1925_v61 }
 0x348   : > { %3195 = vmatprep.subr.msk.bf16.mxu0 %vm5993_vm15, %v6068_v32 }
 0x34b   : > { %2768 = vmatpush1.bf16.msra.mxu0 %v1929_v12 }
 0x34c   : > { %3196 = vmatprep.subr.msk.bf16.mxu0 %vm4786_vm0, %v6071_v37 }
 0x34f   : > { %2770 = vmatpush1.bf16.msra.mxu0 %v1933_v44 }
 0x350   : > { %3197 = vmatprep.subr.msk.bf16.mxu0 %vm4839_vm5, %v6074_v39 }
 0x353   : > { %2772 = vmatpush1.bf16.msra.mxu0 %v1937_v35 }
 0x3e9   : > { %v2617_v55 = vpop.f32.mrb[112].mxu0 }
 0x3ea   : > { %v2618_v53 = vadd.f32 %v2617_v55, %v2582_v59  ;;  %v2619_v23 = vpop.f32.mrb[113].mxu0 }
 0x3eb   : > { %v2620_v54 = vadd.f32 %v2619_v23, %v2582_v59  ;;  %v2621_v14 = vpop.f32.mrb[114].mxu0 }
 0x3ec   : > { %v2647_v52 = vsel %vm569_vm13, %v2618_v53, -1e+30  ;;  %v2622_v26 = vpop.f32.mrb[115].mxu0 }
 0x3ed   : > { %v2626_v45 = vcombine.low %v2618_v53, %v2620_v54  ;;  %v2648_v33 = vsel %vm570_vm2, %v2620_v54, -1e+30  ;;  %v2650_v57 = vsel %vm2649_vm7, %v2647_v52, -inf }
 0x3ee   : > { %v2651_v60 = vsel %vm2649_vm7, %v2648_v33, -inf }
 0x3ef   : > { %v2633_v13 = vrot.slane %v2626_v45, %v6081_v7  ;;  %v2652_v56 = vmax.f32 %v2650_v57, %v2651_v60 }
 0x3f1   : > { %v2640_v17 = vrot.slane %v2633_v13, %v6081_v7  ;;  %2653 = vmax.xlane.f32.xlu0 %v2652_v56 }
 0x3f3   : > { %2646 = vst.msk [vmem:[%s435_s18] sm:$0x3] %vm2644_vm14, %v2640_v17 }
 0x47e   : > { %v2654_v43 = vpop.xlane.xlu0 %2653 }
 0x47f   : > { %v2656_v42 = vmax.f32 %v2655_v25, %v2654_v43 }
 0x481   : > { %v2657_v63 = vsub.f32 %v2655_v25, %v2656_v42  ;;  %2815 = vst.msk [vmem:[#allocation2] sm:$0x1] %vm455_vm8, %v2656_v42  ;;  %2662 = vperm.xlu1 %3494, %v2656_v42  }
 0x483   : > { %v2658_v6 = vmul.f32 1.442695, %v2657_v63 }
 0x485   : > { %3687 = vpow2.f32 %v2658_v6 }
 0x488   : > { %v2819_v19 = vld [vmem:[#allocation2] sm:$0x1] }
 0x489   : > { %2820 = vst.msk [vmem:[%s439_s20] sm:$0x1] %vm455_vm8, %v2819_v19 }
 0x48f   : > { %v3688_v30 = vpop.eup %3687 }
 0x490   : > { %2690 = vperm.xlu0 %3493, %v3688_v30   ;;  %v2678_v61 = vmul.f32 %v3688_v30, %v2677_v4 }
 0x500   : > { %v2663_v34 = vpop.permute.xlu1 %2662 }
 0x501   : > { %v2668_v27 = vrot.slane %v2663_v34, %v6079_v24 }
 0x503   : > { %v2669_v1 = vsub.f32 %v2647_v52, %v2668_v27  ;;  %v2670_v5 = vsub.f32 %v2648_v33, %v2668_v27 }
 0x505   : > { %v2671_v9 = vmul.f32 1.442695, %v2669_v1  ;;  %v2673_v31 = vmul.f32 1.442695, %v2670_v5 }
 0x507   : > { %3689 = vpow2.f32 %v2671_v9 }
 0x508   : > { %3691 = vpow2.f32 %v2673_v31 }
 0x50f   : > { %v2691_v12 = vpop.permute.xlu0 %2690 }
 0x510   : > { %v2696_v0 = vrot.slane %v2691_v12, %v6079_v24 }
 0x511   : > { %v3690_v21 = vpop.eup %3689 }
 0x512   : > { %v3692_v11 = vpop.eup %3691  ;;  %v3180_v50 = vpack.c.bf16 %v3690_v21, %v3690_v21  ;;  %v2675_v47 = vsel %vm569_vm13, %v3690_v21, 0.0  ;;  %v2697_v59 = vmul.f32 %v2696_v0, %v2687_v41 }
 0x513   : > { %v3177_v10 = vpack.c.bf16 %v3692_v11, %v3692_v11  ;;  %v2676_v36 = vsel %vm570_vm2, %v3692_v11, 0.0  ;;  %v2679_v15 = vsel %vm2649_vm7, %v2675_v47, 0.0 }
 0x514   : > { %v2680_v62 = vsel %vm2649_vm7, %v2676_v36, 0.0 }
 0x515   : > { %3178 = vmatprep.mubr.msk.bf16.mxu1 %vm3176_vm11, %v3177_v10  ;;  %3200 = vmatprep.mubr.msk.bf16.mxu0 %vm3176_vm11, %v3177_v10  ;;  %v2681_v49 = vadd.f32 %v2680_v62, %v2679_v15 }
 0x516   : > { %3181 = vmatmul.mubr.msk.bf16.vlgmr.msra.gmra.mrb[144].mxu1 %vm3179_vm3, %v3180_v50  ;;  %3203 = vmatmul.mubr.msk.bf16.vlgmr.msra.gmra.mrb[116].mxu0 %vm3179_vm3, %v3180_v50 }
 0x517   : > { %2682 = vadd.xlane.f32.xlu1 %v2681_v49 }
 0x5a4   : > { %v2683_v32 = vpop.xlane.xlu1 %2682 }
 0x5a5   : > { %v2684_v22 = vadd.f32 %v2683_v32, %v2678_v61 }
 0x5a7   : > { %2686 = vst.msk [vmem:[#allocation3] sm:$0x1] %vm455_vm8, %v2684_v22 }
 0x5ae   : > { %v2821_v2 = vld [vmem:[#allocation3] sm:$0x1] }
 0x5af   : > { %2822 = vst.msk [vmem:[%s442_s25] sm:$0x1] %vm455_vm8, %v2821_v2 }
 0x5e9   : > { %v2734_v37 = vpop.f32.mrb[144].mxu1  ;;  %v2775_v8 = vpop.f32.mrb[116].mxu0 }
 0x5ea   : > { %v2736_v40 = vpop.f32.mrb[145].mxu1  ;;  %v2777_v44 = vpop.f32.mrb[117].mxu0 }
 0x5eb   : > { %v2786_v39 = vcombine.low %v2734_v37, %v2736_v40  ;;  %v2787_v16 = vcombine.low %v2775_v8, %v2777_v44  ;;  %v2738_v51 = vpop.f32.mrb[146].mxu1  ;;  %v2779_v35 = vpop.f32.mrb[118].mxu0 }
 0x5ec   : > { %v2739_v46 = vpop.f32.mrb[147].mxu1  ;;  %v2780_v18 = vpop.f32.mrb[119].mxu0 }
 0x5ed   : > { %v2794_v20 = vrot.slane %v2786_v39, %v6081_v7  ;;  %v2801_v3 = vrot.slane %v2787_v16, %v6081_v7 }
 0x5ef   : > { %v2802_v28 = vcombine.low %v2794_v20, %v2801_v3 }
 0x5f1   : > { %v2809_v58 = vrot.slane %v2802_v28, %v6081_v7 }
 0x5f3   : > { %v2811_v48 = vadd.f32 %v2809_v58, %v2697_v59 }
 0x5f5   : > { %2814 = vst.msk [vmem:[#allocation4] sm:$0xf] %vm5667_vm4, %v2811_v48 }
 0x5fc   : > { %v2823_v55 = vld [vmem:[#allocation4] sm:$0xf] }
 0x5fd   : > { %2824 = vst.msk [vmem:[%s446_s14] sm:$0xf] %vm5667_vm4, %v2823_v55 }
 0x5fe PF: > { %s25_s23 = sadd.s32 1, %s3715_s23   ;;  %s6084_s21 = smov %s3711_s22 }
 0x5ff   : > { %p22_p7 = scmp.ge.s32.totalorder %s25_s23, 4   ;;  %s6085_s22 = smov %s6087_s0 }
 0x601   :  { %24 = sbr.rel (!%p22_p7) target bundleno = 3 (0x3), region = 122 }

</bundles_post_ra>
